<compile_context>
chip_gen: v5e
topology: v5e:2x2
jax: 0.10.0
libtpu: 0.0.40
codegen_flags: <defaults>
</compile_context>

<pallas_src>
import jax
import jax.numpy as jnp
from jax.experimental import pallas as pl
from jax.experimental.pallas import tpu as pltpu

_BN_EPS = 1e-5
_LANES = 128          # lane-dense output channels / matmul N
_N_PAIRS = 5          # 9 conv2 taps -> 4 K=256 pairs + 1 pair (tap8 + shortcut)


def _round_up(x, m):
    return (x + m - 1) // m * m


# ---------------------------------------------------------------------------
# The fused Pallas kernel: whole Block forward for a tile of images per step.
# ---------------------------------------------------------------------------
def _make_block_kernel(stride, ho, wo, cin, cp, b_tile, n_phase):
    taps = [(kh, kw) for kh in range(3) for kw in range(3)]
    m = b_tile * ho * wo

    def kernel(*args):
        ph_refs = args[:n_phase]
        w1_ref, b1_ref, w2_ref, bo_ref, o_ref, h1_ref, acc_ref = args[n_phase:]

        def x_tap(kh, kw):
            # Tap (kh, kw) of the zero-padded input == a contiguous slice of
            # one space-to-depth phase (no strided loads in-kernel).
            ph = (kh % stride) * stride + (kw % stride)
            r0, c0 = kh // stride, kw // stride
            return ph_refs[ph][:, r0:r0 + ho, c0:c0 + wo, :]  # (b,ho,wo,cin)

        # ---- conv1: implicit im2col in VMEM, ONE K=9*cin matmul -------------
        x_taps = [x_tap(kh, kw) for kh, kw in taps]
        patch1 = jnp.concatenate(x_taps, axis=-1)              # (b,ho,wo,9cin)
        h1 = jnp.dot(patch1.reshape(m, 9 * cin), w1_ref[...],
                     preferred_element_type=jnp.float32)
        h1 = jnp.maximum(h1 + b1_ref[...], 0.0).astype(jnp.bfloat16)

        # ---- stage h1 (bf16) in scratch with a 1-pixel zero halo ------------
        # Only the halo border is rewritten each step; the interior is fully
        # overwritten below.  (Per-step border zeroing instead of a once-only
        # pl.when keeps it correct if the parallel grid axis is split across
        # TensorCores.)
        zrow = jnp.zeros((b_tile, 1, wo + 2, cp), jnp.bfloat16)
        zcol = jnp.zeros((b_tile, ho, 1, cp), jnp.bfloat16)
        h1_ref[:, 0:1, :, :] = zrow
        h1_ref[:, ho + 1:ho + 2, :, :] = zrow
        h1_ref[:, 1:1 + ho, 0:1, :] = zcol
        h1_ref[:, 1:1 + ho, wo + 1:wo + 2, :] = zcol
        h1_ref[:, 1:1 + ho, 1:1 + wo, :] = h1.reshape(b_tile, ho, wo, cp)

        def h1_tap(t):
            kh, kw = taps[t]
            return h1_ref[:, kh:kh + ho, kw:kw + wo, :].reshape(m, cp)

        # ---- conv2 as 5 K=2*cp matmuls; shortcut folded into pair 4 ---------
        # Shortcut operand = center tap of x (== x subsampled by `stride`),
        # zero-padded to cp channels; its weights (1x1 conv + BN, or an exact
        # identity) occupy rows [cp : cp+cin) of the pair-4 weight slab, i.e.
        # the otherwise-idle half of that MXU pass.
        x_center = jnp.concatenate(
            [x_taps[4], jnp.zeros((b_tile, ho, wo, cp - cin), jnp.bfloat16)],
            axis=-1).reshape(m, cp)

        for p in range(_N_PAIRS):
            if p < 4:
                pair = jnp.concatenate([h1_tap(2 * p), h1_tap(2 * p + 1)],
                                       axis=-1)                 # (m, 2*cp)
            else:
                pair = jnp.concatenate([h1_tap(8), x_center], axis=-1)
            contrib = jnp.dot(pair, w2_ref[p],
                              preferred_element_type=jnp.float32)
            if p == 0:
                acc_ref[...] = bo_ref[...] + contrib            # biases fused
            else:
                acc_ref[...] += contrib

        y = jnp.maximum(acc_ref[...], 0.0)                      # post-ReLU
        o_ref[...] = y.reshape(b_tile, ho, wo, cp).astype(o_ref.dtype)

    return kernel


# ---------------------------------------------------------------------------
# Wrapper glue: BN folding, space-to-depth phases, batch tiling, pallas_call.
# ---------------------------------------------------------------------------
def _fold_bn(gamma, beta, mean, var):
    scale = gamma / jnp.sqrt(var + _BN_EPS)
    return scale, beta - mean * scale


def _phase_decompose(x_nhwc, stride, hph, wph):
    """Space-to-depth view of the zero-padded input.

    Phase (ph, pw) element (i, j) == x_pad[stride*i + ph, stride*j + pw].
    Total bytes == input bytes (no HBM im2col inflation)."""
    n, h, w, c = x_nhwc.shape
    pad_b = stride * hph - h - 1
    pad_r = stride * wph - w - 1
    xp = jnp.pad(x_nhwc, ((0, 0), (1, pad_b), (1, pad_r), (0, 0)))
    return [xp[:, ph::stride, pw::stride, :]
            for ph in range(stride) for pw in range(stride)]


def _pick_b_tile(n, n_phase, hph, wph, cin, ho, wo, cp,
                 m_cap=2048, budget_bytes=20 * 2 ** 20):
    """Largest batch tile (divisor of n, m <= m_cap) whose VMEM estimate fits."""
    best = 1
    for cand in range(1, min(n, 16) + 1):
        if n % cand:
            continue
        m = cand * ho * wo
        if m > m_cap:
            break
        est = (2 * n_phase * cand * hph * wph * cin * 2    # dbl-buffered phases
               + 2 * cand * ho * wo * cp * 2               # dbl-buffered output
               + cand * (ho + 2) * (wo + 2) * cp * 2       # h1 scratch (bf16)
               + m * cp * 4                                # f32 accumulator
               + 2 * m * 2 * cp * 2                        # pair-patch temps
               + (9 * cin + _N_PAIRS * 2 * cp + 1) * cp * 2 + 2 * cp * 4)
        if est <= budget_bytes:
            best = cand
    return best


def block_forward_nhwc(x_nhwc, params, stride):
    """Fused Block forward.  x: (N,H,W,Cin) NHWC; returns bf16 (N,Ho,Wo,Cout).

    Chained blocks should call this entry point and stay NHWC / bf16, so no
    per-block NCHW or f32 HBM round-trip is needed."""
    x = x_nhwc.astype(jnp.bfloat16)
    n, h, w, cin = x.shape
    cout = params["w1"].shape[0]
    has_sc = not (stride == 1 and cin == cout)

    ho = (h + 2 - 3) // stride + 1
    wo = (w + 2 - 3) // stride + 1
    cp = _round_up(cout, _LANES)
    hph = ho + (2 // stride)            # per-phase tap-window extent
    wph = wo + (2 // stride)

    phases = _phase_decompose(x, stride, hph, wph)
    n_phase = len(phases)
    b_tile = _pick_b_tile(n, n_phase, hph, wph, cin, ho, wo, cp)
    m = b_tile * ho * wo
    steps = n // b_tile

    # ---- fold BN scales into weights; build MXU-shaped operands -------------
    s1, b1 = _fold_bn(*params["bn1"])
    w1m = jnp.transpose(params["w1"], (2, 3, 1, 0)) * s1         # (3,3,cin,cout)
    w1m = jnp.pad(w1m, ((0, 0), (0, 0), (0, 0), (0, cp - cout)))
    w1m = w1m.reshape(9 * cin, cp).astype(jnp.bfloat16)
    b1p = jnp.pad(b1, (0, cp - cout)).reshape(1, cp).astype(jnp.float32)

    s2, b2 = _fold_bn(*params["bn2"])
    w2m = jnp.transpose(params["w2"], (2, 3, 1, 0)) * s2         # (3,3,cout,cout)
    w2m = jnp.pad(w2m, ((0, 0), (0, 0), (0, cp - cout), (0, cp - cout)))
    w2m = w2m.reshape(9, cp, cp)                                 # f32 per-tap

    # Shortcut weights for the second half of the last tap pair.
    if has_sc:
        ss, bs = _fold_bn(*params["bns"])
        wsc = params["ws"][:, :, 0, 0].T * ss                    # (cin, cout)
        bsp = jnp.pad(bs, (0, cp - cout))
    else:
        wsc = jnp.eye(cin, cout, dtype=jnp.float32)              # exact residual
        bsp = jnp.zeros((cp,), jnp.float32)
    wsc = jnp.pad(wsc, ((0, 0), (0, cp - cout)))                 # (cin, cp)
    slab4 = jnp.zeros((cp, cp), jnp.float32).at[:cin, :].set(wsc)

    pair_slabs = [jnp.concatenate([w2m[2 * p], w2m[2 * p + 1]], axis=0)
                  for p in range(4)]
    pair_slabs.append(jnp.concatenate([w2m[8], slab4], axis=0))
    w2p = jnp.stack(pair_slabs).astype(jnp.bfloat16)             # (5, 2cp, cp)

    bop = (jnp.pad(b2, (0, cp - cout)) + bsp).reshape(1, cp).astype(jnp.float32)

    kernel = _make_block_kernel(stride, ho, wo, cin, cp, b_tile, n_phase)

    # Advisory cost of the work the kernel actually issues.
    flops = steps * 2 * m * cp * (9 * cin + _N_PAIRS * 2 * cp)
    bytes_accessed = (sum(p.size for p in phases) * 2
                      + (w1m.size + w2p.size) * 2
                      + (b1p.size + bop.size) * 4
                      + n * ho * wo * cp * 2)

    phase_spec = pl.BlockSpec((b_tile, hph, wph, cin), lambda i: (i, 0, 0, 0))
    out = pl.pallas_call(
        kernel,
        out_shape=jax.ShapeDtypeStruct((n, ho, wo, cp), jnp.bfloat16),
        grid_spec=pltpu.PrefetchScalarGridSpec(
            num_scalar_prefetch=0,
            grid=(steps,),
            in_specs=[phase_spec] * n_phase + [
                pl.BlockSpec((9 * cin, cp), lambda i: (0, 0)),          # w1
                pl.BlockSpec((1, cp), lambda i: (0, 0)),                # bn1 bias
                pl.BlockSpec((_N_PAIRS, 2 * cp, cp), lambda i: (0, 0, 0)),  # w2 pairs (+shortcut)
                pl.BlockSpec((1, cp), lambda i: (0, 0)),                # out bias
            ],
            out_specs=pl.BlockSpec((b_tile, ho, wo, cp),
                                   lambda i: (i, 0, 0, 0)),
            scratch_shapes=[
                pltpu.VMEM((b_tile, ho + 2, wo + 2, cp), jnp.bfloat16),  # h1+halo
                pltpu.VMEM((m, cp), jnp.float32),                        # conv2 acc
            ],
        ),
        compiler_params=pltpu.CompilerParams(
            dimension_semantics=("parallel",),
            vmem_limit_bytes=48 * 1024 * 1024),
        cost_estimate=pl.CostEstimate(flops=flops, transcendentals=0,
                                      bytes_accessed=bytes_accessed),
    )(*phases, w1m, b1p, w2p, bop)

    return out[..., :cout]                       # bf16 NHWC, real channels


def block_forward(x_nchw, params, stride):
    # NCHW / f32 adapter for parity with the PyTorch module & the reference;
    # real pipelines should chain block_forward_nhwc directly (bf16 NHWC).
    y = block_forward_nhwc(jnp.transpose(x_nchw, (0, 2, 3, 1)), params, stride)
    return jnp.transpose(y, (0, 3, 1, 2)).astype(jnp.float32)


# ---------------------------------------------------------------------------
# Parameter init (matches the PyTorch module's shapes)
# ---------------------------------------------------------------------------
def init_block_params(key, inp, outp, stride):
    ks = jax.random.split(key, 6)

    def conv_w(k, cout, cin, ksz):
        fan_in = cin * ksz * ksz
        bound = 1.0 / (fan_in ** 0.5)
        return jax.random.uniform(k, (cout, cin, ksz, ksz), jnp.float32,
                                  -bound, bound)

    def bn_p(k, c):
        k1, k2, k3, k4 = jax.random.split(k, 4)
        gamma = 1.0 + 0.1 * jax.random.normal(k1, (c,), jnp.float32)
        beta = 0.1 * jax.random.normal(k2, (c,), jnp.float32)
        mean = 0.1 * jax.random.normal(k3, (c,), jnp.float32)
        var = jnp.abs(jax.random.normal(k4, (c,), jnp.float32)) + 0.5
        return gamma, beta, mean, var

    params = {
        "w1": conv_w(ks[0], outp, inp, 3),
        "bn1": bn_p(ks[1], outp),
        "w2": conv_w(ks[2], outp, outp, 3),
        "bn2": bn_p(ks[3], outp),
    }
    if not (stride == 1 and inp == outp):
        params["ws"] = conv_w(ks[4], outp, inp, 1)
        params["bns"] = bn_p(ks[5], outp)
    return params


# ---------------------------------------------------------------------------
# Pure-JAX reference (lax.conv, f32) for correctness checking
# ---------------------------------------------------------------------------
def block_reference(x_nchw, params, stride):
    x = jnp.transpose(x_nchw, (0, 2, 3, 1)).astype(jnp.float32)

    def conv(z, w, s, pad):
        return jax.lax.conv_general_dilated(
            z, jnp.transpose(w, (2, 3, 1, 0)),
            window_strides=(s, s), padding=[(pad, pad), (pad, pad)],
            dimension_numbers=("NHWC", "HWIO", "NHWC"))

    def bn(z, p):
        g, b, m, v = p
        return (z - m) / jnp.sqrt(v + _BN_EPS) * g + b

    h = jax.nn.relu(bn(conv(x, params["w1"], stride, 1), params["bn1"]))
    h = bn(conv(h, params["w2"], 1, 1), params["bn2"])
    if stride == 1 and x.shape[-1] == params["w1"].shape[0]:
        res = x
    else:
        res = bn(conv(x, params["ws"], stride, 0), params["bns"])
    return jnp.transpose(jax.nn.relu(h + res), (0, 3, 1, 2))


if __name__ == "__main__":
    key = jax.random.PRNGKey(0)
    k_x1, k_x2, k_p1, k_p2 = jax.random.split(key, 4)

    fwd = jax.jit(block_forward, static_argnames=("stride",))

    # Case 1: downsampling block (stride=2, 4 -> 8 channels, shortcut conv).
    x1 = jax.random.normal(k_x1, (2, 4, 16, 16), jnp.float32)
    params1 = init_block_params(k_p1, inp=4, outp=8, stride=2)
    y1 = jax.block_until_ready(fwd(x1, params1, stride=2))
    r1 = block_reference(x1, params1, stride=2)
    assert y1.shape == (2, 8, 8, 8), y1.shape
    # bf16 matmul inputs / bf16 output (f32 accumulation) -> loosened tolerances.
    assert float(jnp.max(jnp.abs(y1 - r1))) < 1e-1, float(jnp.max(jnp.abs(y1 - r1)))
    assert float(jnp.mean(jnp.abs(y1 - r1))) < 1e-2, float(jnp.mean(jnp.abs(y1 - r1)))

    # Case 2: identity-residual block (stride=1, 8 -> 8 channels).
    x2 = jax.random.normal(k_x2, (2, 8, 16, 16), jnp.float32)
    params2 = init_block_params(k_p2, inp=8, outp=8, stride=1)
    y2 = jax.block_until_ready(fwd(x2, params2, stride=1))
    r2 = block_reference(x2, params2, stride=1)
    assert y2.shape == (2, 8, 16, 16), y2.shape
    assert float(jnp.max(jnp.abs(y2 - r2))) < 1e-1, float(jnp.max(jnp.abs(y2 - r2)))
    assert float(jnp.mean(jnp.abs(y2 - r2))) < 1e-2, float(jnp.mean(jnp.abs(y2 - r2)))

    print("KERNEL_OK")
</pallas_src>

<mosaic_0001>
module attributes {stable_mosaic.version = 11 : i64} {
  func.func @kernel(%arg0: i32, %arg1: memref<2x9x9x4xbf16, #tpu.memory_space<vmem>>, %arg2: memref<2x9x9x4xbf16, #tpu.memory_space<vmem>>, %arg3: memref<2x9x9x4xbf16, #tpu.memory_space<vmem>>, %arg4: memref<2x9x9x4xbf16, #tpu.memory_space<vmem>>, %arg5: memref<36x128xbf16, #tpu.memory_space<vmem>>, %arg6: memref<1x128xf32, #tpu.memory_space<vmem>>, %arg7: memref<5x256x128xbf16, #tpu.memory_space<vmem>>, %arg8: memref<1x128xf32, #tpu.memory_space<vmem>>, %arg9: memref<2x8x8x128xbf16, #tpu.memory_space<vmem>>, %arg10: memref<2x10x10x128xbf16, #tpu.memory_space<vmem>>, %arg11: memref<128x128xf32, #tpu.memory_space<vmem>>) attributes {dimension_semantics = [#tpu.dimension_semantics<parallel>], iteration_bounds = array<i64: 1>, scalar_prefetch = 0 : i64, scratch_operands = 2 : i64, tpu.core_type = #tpu.core_type<tc>, window_params = [{transform_indices = @transform_0, window_bounds = array<i64: 2, 9, 9, 4>}, {transform_indices = @transform_1, window_bounds = array<i64: 2, 9, 9, 4>}, {transform_indices = @transform_2, window_bounds = array<i64: 2, 9, 9, 4>}, {transform_indices = @transform_3, window_bounds = array<i64: 2, 9, 9, 4>}, {pipeline_mode = #tpu.pipeline_mode<synchronous>, transform_indices = @transform_4, window_bounds = array<i64: 36, 128>}, {pipeline_mode = #tpu.pipeline_mode<synchronous>, transform_indices = @transform_5, window_bounds = array<i64: 1, 128>}, {pipeline_mode = #tpu.pipeline_mode<synchronous>, transform_indices = @transform_6, window_bounds = array<i64: 5, 256, 128>}, {pipeline_mode = #tpu.pipeline_mode<synchronous>, transform_indices = @transform_7, window_bounds = array<i64: 1, 128>}, {transform_indices = @transform_8, window_bounds = array<i64: 2, 8, 8, 128>}]} {
    %c0 = arith.constant 0 : index
    %c0_0 = arith.constant 0 : index
    %c0_1 = arith.constant 0 : index
    %c0_2 = arith.constant 0 : index
    %0 = vector.load %arg1[%c0, %c0_0, %c0_1, %c0_2] : memref<2x9x9x4xbf16, #tpu.memory_space<vmem>>, vector<2x8x8x4xbf16>
    %c0_3 = arith.constant 0 : index
    %c0_4 = arith.constant 0 : index
    %c0_5 = arith.constant 0 : index
    %c0_6 = arith.constant 0 : index
    %1 = vector.load %arg2[%c0_3, %c0_4, %c0_5, %c0_6] : memref<2x9x9x4xbf16, #tpu.memory_space<vmem>>, vector<2x8x8x4xbf16>
    %c0_7 = arith.constant 0 : index
    %c0_8 = arith.constant 0 : index
    %c1 = arith.constant 1 : index
    %c0_9 = arith.constant 0 : index
    %2 = vector.load %arg1[%c0_7, %c0_8, %c1, %c0_9] : memref<2x9x9x4xbf16, #tpu.memory_space<vmem>>, vector<2x8x8x4xbf16>
    %c0_10 = arith.constant 0 : index
    %c0_11 = arith.constant 0 : index
    %c0_12 = arith.constant 0 : index
    %c0_13 = arith.constant 0 : index
    %3 = vector.load %arg3[%c0_10, %c0_11, %c0_12, %c0_13] : memref<2x9x9x4xbf16, #tpu.memory_space<vmem>>, vector<2x8x8x4xbf16>
    %c0_14 = arith.constant 0 : index
    %c0_15 = arith.constant 0 : index
    %c0_16 = arith.constant 0 : index
    %c0_17 = arith.constant 0 : index
    %4 = vector.load %arg4[%c0_14, %c0_15, %c0_16, %c0_17] : memref<2x9x9x4xbf16, #tpu.memory_space<vmem>>, vector<2x8x8x4xbf16>
    %c0_18 = arith.constant 0 : index
    %c0_19 = arith.constant 0 : index
    %c1_20 = arith.constant 1 : index
    %c0_21 = arith.constant 0 : index
    %5 = vector.load %arg3[%c0_18, %c0_19, %c1_20, %c0_21] : memref<2x9x9x4xbf16, #tpu.memory_space<vmem>>, vector<2x8x8x4xbf16>
    %c0_22 = arith.constant 0 : index
    %c1_23 = arith.constant 1 : index
    %c0_24 = arith.constant 0 : index
    %c0_25 = arith.constant 0 : index
    %6 = vector.load %arg1[%c0_22, %c1_23, %c0_24, %c0_25] : memref<2x9x9x4xbf16, #tpu.memory_space<vmem>>, vector<2x8x8x4xbf16>
    %c0_26 = arith.constant 0 : index
    %c1_27 = arith.constant 1 : index
    %c0_28 = arith.constant 0 : index
    %c0_29 = arith.constant 0 : index
    %7 = vector.load %arg2[%c0_26, %c1_27, %c0_28, %c0_29] : memref<2x9x9x4xbf16, #tpu.memory_space<vmem>>, vector<2x8x8x4xbf16>
    %c0_30 = arith.constant 0 : index
    %c1_31 = arith.constant 1 : index
    %c1_32 = arith.constant 1 : index
    %c0_33 = arith.constant 0 : index
    %8 = vector.load %arg1[%c0_30, %c1_31, %c1_32, %c0_33] : memref<2x9x9x4xbf16, #tpu.memory_space<vmem>>, vector<2x8x8x4xbf16>
    %9 = tpu.concatenate %0, %1, %2, %3, %4, %5, %6, %7, %8 in 3 : vector<2x8x8x4xbf16>, vector<2x8x8x4xbf16>, vector<2x8x8x4xbf16>, vector<2x8x8x4xbf16>, vector<2x8x8x4xbf16>, vector<2x8x8x4xbf16>, vector<2x8x8x4xbf16>, vector<2x8x8x4xbf16>, vector<2x8x8x4xbf16> -> vector<2x8x8x36xbf16>
    %10 = vector.shape_cast %9 : vector<2x8x8x36xbf16> to vector<128x36xbf16>
    %c0_34 = arith.constant 0 : index
    %c0_35 = arith.constant 0 : index
    %11 = vector.load %arg5[%c0_34, %c0_35] : memref<36x128xbf16, #tpu.memory_space<vmem>>, vector<36x128xbf16>
    %cst = arith.constant dense<0.000000e+00> : vector<128x128xf32>
    %12 = tpu.matmul %10, %11, %cst {dimension_numbers = #tpu.dot_dimension_numbers<[1], [0], [0], [1], [0, 0, 1, 1], [], []>} : vector<128x36xbf16>, vector<36x128xbf16>, vector<128x128xf32> -> vector<128x128xf32>
    %c0_36 = arith.constant 0 : index
    %c0_37 = arith.constant 0 : index
    %13 = vector.load %arg6[%c0_36, %c0_37] : memref<1x128xf32, #tpu.memory_space<vmem>>, vector<1x128xf32>
    %14 = vector.broadcast %13 : vector<1x128xf32> to vector<128x128xf32>
    %15 = arith.addf %12, %14 : vector<128x128xf32>
    %cst_38 = arith.constant 0.000000e+00 : f32
    %16 = vector.broadcast %cst_38 : f32 to vector<128x128xf32>
    %17 = arith.maximumf %15, %16 : vector<128x128xf32>
    %18 = arith.truncf %17 : vector<128x128xf32> to vector<128x128xbf16>
    %cst_39 = arith.constant 0.000000e+00 : bf16
    %19 = vector.broadcast %cst_39 : bf16 to vector<2x1x10x128xbf16>
    %cst_40 = arith.constant 0.000000e+00 : bf16
    %20 = vector.broadcast %cst_40 : bf16 to vector<2x8x1x128xbf16>
    %c0_41 = arith.constant 0 : index
    %c0_42 = arith.constant 0 : index
    %c0_43 = arith.constant 0 : index
    %c0_44 = arith.constant 0 : index
    %21 = vector.load %arg10[%c0_41, %c0_42, %c0_43, %c0_44] : memref<2x10x10x128xbf16, #tpu.memory_space<vmem>>, vector<2x1x10x128xbf16>
    tpu.vector_store %arg10[%c0_41, %c0_42, %c0_43, %c0_44], %19 {strides = array<i32>} : memref<2x10x10x128xbf16, #tpu.memory_space<vmem>>, vector<2x1x10x128xbf16>,
    %c0_45 = arith.constant 0 : index
    %c9 = arith.constant 9 : index
    %c0_46 = arith.constant 0 : index
    %c0_47 = arith.constant 0 : index
    %22 = vector.load %arg10[%c0_45, %c9, %c0_46, %c0_47] : memref<2x10x10x128xbf16, #tpu.memory_space<vmem>>, vector<2x1x10x128xbf16>
    tpu.vector_store %arg10[%c0_45, %c9, %c0_46, %c0_47], %19 {strides = array<i32>} : memref<2x10x10x128xbf16, #tpu.memory_space<vmem>>, vector<2x1x10x128xbf16>,
    %c0_48 = arith.constant 0 : index
    %c1_49 = arith.constant 1 : index
    %c0_50 = arith.constant 0 : index
    %c0_51 = arith.constant 0 : index
    %23 = vector.load %arg10[%c0_48, %c1_49, %c0_50, %c0_51] : memref<2x10x10x128xbf16, #tpu.memory_space<vmem>>, vector<2x8x1x128xbf16>
    tpu.vector_store %arg10[%c0_48, %c1_49, %c0_50, %c0_51], %20 {strides = array<i32>} : memref<2x10x10x128xbf16, #tpu.memory_space<vmem>>, vector<2x8x1x128xbf16>,
    %c0_52 = arith.constant 0 : index
    %c1_53 = arith.constant 1 : index
    %c9_54 = arith.constant 9 : index
    %c0_55 = arith.constant 0 : index
    %24 = vector.load %arg10[%c0_52, %c1_53, %c9_54, %c0_55] : memref<2x10x10x128xbf16, #tpu.memory_space<vmem>>, vector<2x8x1x128xbf16>
    tpu.vector_store %arg10[%c0_52, %c1_53, %c9_54, %c0_55], %20 {strides = array<i32>} : memref<2x10x10x128xbf16, #tpu.memory_space<vmem>>, vector<2x8x1x128xbf16>,
    %25 = vector.shape_cast %18 : vector<128x128xbf16> to vector<2x8x8x128xbf16>
    %c0_56 = arith.constant 0 : index
    %c1_57 = arith.constant 1 : index
    %c1_58 = arith.constant 1 : index
    %c0_59 = arith.constant 0 : index
    %26 = vector.load %arg10[%c0_56, %c1_57, %c1_58, %c0_59] : memref<2x10x10x128xbf16, #tpu.memory_space<vmem>>, vector<2x8x8x128xbf16>
    tpu.vector_store %arg10[%c0_56, %c1_57, %c1_58, %c0_59], %25 {strides = array<i32>} : memref<2x10x10x128xbf16, #tpu.memory_space<vmem>>, vector<2x8x8x128xbf16>,
    %cst_60 = arith.constant 0.000000e+00 : bf16
    %27 = vector.broadcast %cst_60 : bf16 to vector<2x8x8x124xbf16>
    %28 = tpu.concatenate %4, %27 in 3 : vector<2x8x8x4xbf16>, vector<2x8x8x124xbf16> -> vector<2x8x8x128xbf16>
    %29 = vector.shape_cast %28 : vector<2x8x8x128xbf16> to vector<128x128xbf16>
    %c0_61 = arith.constant 0 : index
    %c0_62 = arith.constant 0 : index
    %c0_63 = arith.constant 0 : index
    %c0_64 = arith.constant 0 : index
    %30 = vector.load %arg10[%c0_61, %c0_62, %c0_63, %c0_64] : memref<2x10x10x128xbf16, #tpu.memory_space<vmem>>, vector<2x8x8x128xbf16>
    %31 = vector.shape_cast %30 : vector<2x8x8x128xbf16> to vector<128x128xbf16>
    %c0_65 = arith.constant 0 : index
    %c0_66 = arith.constant 0 : index
    %c1_67 = arith.constant 1 : index
    %c0_68 = arith.constant 0 : index
    %32 = vector.load %arg10[%c0_65, %c0_66, %c1_67, %c0_68] : memref<2x10x10x128xbf16, #tpu.memory_space<vmem>>, vector<2x8x8x128xbf16>
    %33 = vector.shape_cast %32 : vector<2x8x8x128xbf16> to vector<128x128xbf16>
    %34 = tpu.concatenate %31, %33 in 1 : vector<128x128xbf16>, vector<128x128xbf16> -> vector<128x256xbf16>
    %c0_69 = arith.constant 0 : index
    %c0_70 = arith.constant 0 : index
    %c0_71 = arith.constant 0 : index
    %35 = vector.load %arg7[%c0_69, %c0_70, %c0_71] : memref<5x256x128xbf16, #tpu.memory_space<vmem>>, vector<1x256x128xbf16>
    %36 = vector.shape_cast %35 : vector<1x256x128xbf16> to vector<256x128xbf16>
    %cst_72 = arith.constant dense<0.000000e+00> : vector<128x128xf32>
    %37 = tpu.matmul %34, %36, %cst_72 {dimension_numbers = #tpu.dot_dimension_numbers<[1], [0], [0], [1], [0, 0, 1, 1], [], []>} : vector<128x256xbf16>, vector<256x128xbf16>, vector<128x128xf32> -> vector<128x128xf32>
    %c0_73 = arith.constant 0 : index
    %c0_74 = arith.constant 0 : index
    %38 = vector.load %arg8[%c0_73, %c0_74] : memref<1x128xf32, #tpu.memory_space<vmem>>, vector<1x128xf32>
    %39 = vector.broadcast %38 : vector<1x128xf32> to vector<128x128xf32>
    %40 = arith.addf %39, %37 : vector<128x128xf32>
    %c0_75 = arith.constant 0 : index
    %c0_76 = arith.constant 0 : index
    %41 = vector.load %arg11[%c0_75, %c0_76] : memref<128x128xf32, #tpu.memory_space<vmem>>, vector<128x128xf32>
    tpu.vector_store %arg11[%c0_75, %c0_76], %40 {strides = array<i32>} : memref<128x128xf32, #tpu.memory_space<vmem>>, vector<128x128xf32>,
    %c0_77 = arith.constant 0 : index
    %c0_78 = arith.constant 0 : index
    %c2 = arith.constant 2 : index
    %c0_79 = arith.constant 0 : index
    %42 = vector.load %arg10[%c0_77, %c0_78, %c2, %c0_79] : memref<2x10x10x128xbf16, #tpu.memory_space<vmem>>, vector<2x8x8x128xbf16>
    %43 = vector.shape_cast %42 : vector<2x8x8x128xbf16> to vector<128x128xbf16>
    %c0_80 = arith.constant 0 : index
    %c1_81 = arith.constant 1 : index
    %c0_82 = arith.constant 0 : index
    %c0_83 = arith.constant 0 : index
    %44 = vector.load %arg10[%c0_80, %c1_81, %c0_82, %c0_83] : memref<2x10x10x128xbf16, #tpu.memory_space<vmem>>, vector<2x8x8x128xbf16>
    %45 = vector.shape_cast %44 : vector<2x8x8x128xbf16> to vector<128x128xbf16>
    %46 = tpu.concatenate %43, %45 in 1 : vector<128x128xbf16>, vector<128x128xbf16> -> vector<128x256xbf16>
    %c1_84 = arith.constant 1 : index
    %c0_85 = arith.constant 0 : index
    %c0_86 = arith.constant 0 : index
    %47 = vector.load %arg7[%c1_84, %c0_85, %c0_86] : memref<5x256x128xbf16, #tpu.memory_space<vmem>>, vector<1x256x128xbf16>
    %48 = vector.shape_cast %47 : vector<1x256x128xbf16> to vector<256x128xbf16>
    %cst_87 = arith.constant dense<0.000000e+00> : vector<128x128xf32>
    %49 = tpu.matmul %46, %48, %cst_87 {dimension_numbers = #tpu.dot_dimension_numbers<[1], [0], [0], [1], [0, 0, 1, 1], [], []>} : vector<128x256xbf16>, vector<256x128xbf16>, vector<128x128xf32> -> vector<128x128xf32>
    %c0_88 = arith.constant 0 : index
    %c0_89 = arith.constant 0 : index
    %50 = vector.load %arg11[%c0_88, %c0_89] : memref<128x128xf32, #tpu.memory_space<vmem>>, vector<128x128xf32>
    %51 = arith.addf %50, %49 : vector<128x128xf32>
    %c0_90 = arith.constant 0 : index
    %c0_91 = arith.constant 0 : index
    %52 = vector.load %arg11[%c0_90, %c0_91] : memref<128x128xf32, #tpu.memory_space<vmem>>, vector<128x128xf32>
    tpu.vector_store %arg11[%c0_90, %c0_91], %51 {strides = array<i32>} : memref<128x128xf32, #tpu.memory_space<vmem>>, vector<128x128xf32>,
    %c0_92 = arith.constant 0 : index
    %c1_93 = arith.constant 1 : index
    %c1_94 = arith.constant 1 : index
    %c0_95 = arith.constant 0 : index
    %53 = vector.load %arg10[%c0_92, %c1_93, %c1_94, %c0_95] : memref<2x10x10x128xbf16, #tpu.memory_space<vmem>>, vector<2x8x8x128xbf16>
    %54 = vector.shape_cast %53 : vector<2x8x8x128xbf16> to vector<128x128xbf16>
    %c0_96 = arith.constant 0 : index
    %c1_97 = arith.constant 1 : index
    %c2_98 = arith.constant 2 : index
    %c0_99 = arith.constant 0 : index
    %55 = vector.load %arg10[%c0_96, %c1_97, %c2_98, %c0_99] : memref<2x10x10x128xbf16, #tpu.memory_space<vmem>>, vector<2x8x8x128xbf16>
    %56 = vector.shape_cast %55 : vector<2x8x8x128xbf16> to vector<128x128xbf16>
    %57 = tpu.concatenate %54, %56 in 1 : vector<128x128xbf16>, vector<128x128xbf16> -> vector<128x256xbf16>
    %c2_100 = arith.constant 2 : index
    %c0_101 = arith.constant 0 : index
    %c0_102 = arith.constant 0 : index
    %58 = vector.load %arg7[%c2_100, %c0_101, %c0_102] : memref<5x256x128xbf16, #tpu.memory_space<vmem>>, vector<1x256x128xbf16>
    %59 = vector.shape_cast %58 : vector<1x256x128xbf16> to vector<256x128xbf16>
    %cst_103 = arith.constant dense<0.000000e+00> : vector<128x128xf32>
    %60 = tpu.matmul %57, %59, %cst_103 {dimension_numbers = #tpu.dot_dimension_numbers<[1], [0], [0], [1], [0, 0, 1, 1], [], []>} : vector<128x256xbf16>, vector<256x128xbf16>, vector<128x128xf32> -> vector<128x128xf32>
    %c0_104 = arith.constant 0 : index
    %c0_105 = arith.constant 0 : index
    %61 = vector.load %arg11[%c0_104, %c0_105] : memref<128x128xf32, #tpu.memory_space<vmem>>, vector<128x128xf32>
    %62 = arith.addf %61, %60 : vector<128x128xf32>
    %c0_106 = arith.constant 0 : index
    %c0_107 = arith.constant 0 : index
    %63 = vector.load %arg11[%c0_106, %c0_107] : memref<128x128xf32, #tpu.memory_space<vmem>>, vector<128x128xf32>
    tpu.vector_store %arg11[%c0_106, %c0_107], %62 {strides = array<i32>} : memref<128x128xf32, #tpu.memory_space<vmem>>, vector<128x128xf32>,
    %c0_108 = arith.constant 0 : index
    %c2_109 = arith.constant 2 : index
    %c0_110 = arith.constant 0 : index
    %c0_111 = arith.constant 0 : index
    %64 = vector.load %arg10[%c0_108, %c2_109, %c0_110, %c0_111] : memref<2x10x10x128xbf16, #tpu.memory_space<vmem>>, vector<2x8x8x128xbf16>
    %65 = vector.shape_cast %64 : vector<2x8x8x128xbf16> to vector<128x128xbf16>
    %c0_112 = arith.constant 0 : index
    %c2_113 = arith.constant 2 : index
    %c1_114 = arith.constant 1 : index
    %c0_115 = arith.constant 0 : index
    %66 = vector.load %arg10[%c0_112, %c2_113, %c1_114, %c0_115] : memref<2x10x10x128xbf16, #tpu.memory_space<vmem>>, vector<2x8x8x128xbf16>
    %67 = vector.shape_cast %66 : vector<2x8x8x128xbf16> to vector<128x128xbf16>
    %68 = tpu.concatenate %65, %67 in 1 : vector<128x128xbf16>, vector<128x128xbf16> -> vector<128x256xbf16>
    %c3 = arith.constant 3 : index
    %c0_116 = arith.constant 0 : index
    %c0_117 = arith.constant 0 : index
    %69 = vector.load %arg7[%c3, %c0_116, %c0_117] : memref<5x256x128xbf16, #tpu.memory_space<vmem>>, vector<1x256x128xbf16>
    %70 = vector.shape_cast %69 : vector<1x256x128xbf16> to vector<256x128xbf16>
    %cst_118 = arith.constant dense<0.000000e+00> : vector<128x128xf32>
    %71 = tpu.matmul %68, %70, %cst_118 {dimension_numbers = #tpu.dot_dimension_numbers<[1], [0], [0], [1], [0, 0, 1, 1], [], []>} : vector<128x256xbf16>, vector<256x128xbf16>, vector<128x128xf32> -> vector<128x128xf32>
    %c0_119 = arith.constant 0 : index
    %c0_120 = arith.constant 0 : index
    %72 = vector.load %arg11[%c0_119, %c0_120] : memref<128x128xf32, #tpu.memory_space<vmem>>, vector<128x128xf32>
    %73 = arith.addf %72, %71 : vector<128x128xf32>
    %c0_121 = arith.constant 0 : index
    %c0_122 = arith.constant 0 : index
    %74 = vector.load %arg11[%c0_121, %c0_122] : memref<128x128xf32, #tpu.memory_space<vmem>>, vector<128x128xf32>
    tpu.vector_store %arg11[%c0_121, %c0_122], %73 {strides = array<i32>} : memref<128x128xf32, #tpu.memory_space<vmem>>, vector<128x128xf32>,
    %c0_123 = arith.constant 0 : index
    %c2_124 = arith.constant 2 : index
    %c2_125 = arith.constant 2 : index
    %c0_126 = arith.constant 0 : index
    %75 = vector.load %arg10[%c0_123, %c2_124, %c2_125, %c0_126] : memref<2x10x10x128xbf16, #tpu.memory_space<vmem>>, vector<2x8x8x128xbf16>
    %76 = vector.shape_cast %75 : vector<2x8x8x128xbf16> to vector<128x128xbf16>
    %77 = tpu.concatenate %76, %29 in 1 : vector<128x128xbf16>, vector<128x128xbf16> -> vector<128x256xbf16>
    %c4 = arith.constant 4 : index
    %c0_127 = arith.constant 0 : index
    %c0_128 = arith.constant 0 : index
    %78 = vector.load %arg7[%c4, %c0_127, %c0_128] : memref<5x256x128xbf16, #tpu.memory_space<vmem>>, vector<1x256x128xbf16>
    %79 = vector.shape_cast %78 : vector<1x256x128xbf16> to vector<256x128xbf16>
    %cst_129 = arith.constant dense<0.000000e+00> : vector<128x128xf32>
    %80 = tpu.matmul %77, %79, %cst_129 {dimension_numbers = #tpu.dot_dimension_numbers<[1], [0], [0], [1], [0, 0, 1, 1], [], []>} : vector<128x256xbf16>, vector<256x128xbf16>, vector<128x128xf32> -> vector<128x128xf32>
    %c0_130 = arith.constant 0 : index
    %c0_131 = arith.constant 0 : index
    %81 = vector.load %arg11[%c0_130, %c0_131] : memref<128x128xf32, #tpu.memory_space<vmem>>, vector<128x128xf32>
    %82 = arith.addf %81, %80 : vector<128x128xf32>
    %c0_132 = arith.constant 0 : index
    %c0_133 = arith.constant 0 : index
    %83 = vector.load %arg11[%c0_132, %c0_133] : memref<128x128xf32, #tpu.memory_space<vmem>>, vector<128x128xf32>
    tpu.vector_store %arg11[%c0_132, %c0_133], %82 {strides = array<i32>} : memref<128x128xf32, #tpu.memory_space<vmem>>, vector<128x128xf32>,
    %c0_134 = arith.constant 0 : index
    %c0_135 = arith.constant 0 : index
    %84 = vector.load %arg11[%c0_134, %c0_135] : memref<128x128xf32, #tpu.memory_space<vmem>>, vector<128x128xf32>
    %cst_136 = arith.constant 0.000000e+00 : f32
    %85 = vector.broadcast %cst_136 : f32 to vector<128x128xf32>
    %86 = arith.maximumf %84, %85 : vector<128x128xf32>
    %87 = vector.shape_cast %86 : vector<128x128xf32> to vector<2x8x8x128xf32>
    %88 = arith.truncf %87 : vector<2x8x8x128xf32> to vector<2x8x8x128xbf16>
    %c0_137 = arith.constant 0 : index
    %c0_138 = arith.constant 0 : index
    %c0_139 = arith.constant 0 : index
    %c0_140 = arith.constant 0 : index
    %89 = vector.load %arg9[%c0_137, %c0_138, %c0_139, %c0_140] : memref<2x8x8x128xbf16, #tpu.memory_space<vmem>>, vector<2x8x8x128xbf16>
    tpu.vector_store %arg9[%c0_137, %c0_138, %c0_139, %c0_140], %88 {strides = array<i32>} : memref<2x8x8x128xbf16, #tpu.memory_space<vmem>>, vector<2x8x8x128xbf16>,
    return
  }
  func.func @transform_0(%arg0: i32) -> (i32, i32, i32, i32) {
    %c0_i32 = arith.constant 0 : i32
    %c0_i32_0 = arith.constant 0 : i32
    %c0_i32_1 = arith.constant 0 : i32
    %c0_i32_2 = arith.constant 0 : i32
    return %arg0, %c0_i32, %c0_i32_0, %c0_i32_1 : i32, i32, i32, i32
  }
  func.func @transform_1(%arg0: i32) -> (i32, i32, i32, i32) {
    %c0_i32 = arith.constant 0 : i32
    %c0_i32_0 = arith.constant 0 : i32
    %c0_i32_1 = arith.constant 0 : i32
    %c0_i32_2 = arith.constant 0 : i32
    return %arg0, %c0_i32, %c0_i32_0, %c0_i32_1 : i32, i32, i32, i32
  }
  func.func @transform_2(%arg0: i32) -> (i32, i32, i32, i32) {
    %c0_i32 = arith.constant 0 : i32
    %c0_i32_0 = arith.constant 0 : i32
    %c0_i32_1 = arith.constant 0 : i32
    %c0_i32_2 = arith.constant 0 : i32
    return %arg0, %c0_i32, %c0_i32_0, %c0_i32_1 : i32, i32, i32, i32
  }
  func.func @transform_3(%arg0: i32) -> (i32, i32, i32, i32) {
    %c0_i32 = arith.constant 0 : i32
    %c0_i32_0 = arith.constant 0 : i32
    %c0_i32_1 = arith.constant 0 : i32
    %c0_i32_2 = arith.constant 0 : i32
    return %arg0, %c0_i32, %c0_i32_0, %c0_i32_1 : i32, i32, i32, i32
  }
  func.func @transform_4(%arg0: i32) -> (i32, i32) {
    %c0_i32 = arith.constant 0 : i32
    %c0_i32_0 = arith.constant 0 : i32
    %c0_i32_1 = arith.constant 0 : i32
    return %c0_i32, %c0_i32_0 : i32, i32
  }
  func.func @transform_5(%arg0: i32) -> (i32, i32) {
    %c0_i32 = arith.constant 0 : i32
    %c0_i32_0 = arith.constant 0 : i32
    %c0_i32_1 = arith.constant 0 : i32
    return %c0_i32, %c0_i32_0 : i32, i32
  }
  func.func @transform_6(%arg0: i32) -> (i32, i32, i32) {
    %c0_i32 = arith.constant 0 : i32
    %c0_i32_0 = arith.constant 0 : i32
    %c0_i32_1 = arith.constant 0 : i32
    %c0_i32_2 = arith.constant 0 : i32
    return %c0_i32, %c0_i32_0, %c0_i32_1 : i32, i32, i32
  }
  func.func @transform_7(%arg0: i32) -> (i32, i32) {
    %c0_i32 = arith.constant 0 : i32
    %c0_i32_0 = arith.constant 0 : i32
    %c0_i32_1 = arith.constant 0 : i32
    return %c0_i32, %c0_i32_0 : i32, i32
  }
  func.func @transform_8(%arg0: i32) -> (i32, i32, i32, i32) {
    %c0_i32 = arith.constant 0 : i32
    %c0_i32_0 = arith.constant 0 : i32
    %c0_i32_1 = arith.constant 0 : i32
    %c0_i32_2 = arith.constant 0 : i32
    return %arg0, %c0_i32, %c0_i32_0, %c0_i32_1 : i32, i32, i32, i32
  }
}

</mosaic_0001>

<bundles_post_ra>
// kernel: block_forward.1
= control target key start
LH: loop header
LB: loop body
LE: loop exit
PB: predicated region body
PF: predicated region fallthrough
CT: control target
= control target key end

     0   :  { %vm1184_vm0 = vcmask 31744   ;;  %s5945_s21 = smov 4   ;;  %s5946_s30 = smov 8   ;;  %vm1553_vm1 = vcmask 1041408   ;;  %vm1233_vm2 = vcmask 64512   ;;  %vm1266_vm3 = vcmask 97280   ;;  %s7975_s1 = inlined_call_operand.vmem [shape: bf16[2,9,9,4], index: 1, kind: input, shape index: {}]   ;;  %s7976_s0 = inlined_call_operand.vmem [shape: bf16[2,9,9,4], index: 0, kind: input, shape index: {}]   ;;  %s7977_s3 = inlined_call_operand.vmem [shape: bf16[2,9,9,4], index: 3, kind: input, shape index: {}]   ;;  %s7978_s2 = inlined_call_operand.vmem [shape: bf16[2,9,9,4], index: 2, kind: input, shape index: {}]   ;;  %s7979_s4 = inlined_call_operand.vmem [shape: bf16[36,128], index: 4, kind: input, shape index: {}]   ;;  %s7980_s5 = inlined_call_operand.vmem [shape: f32[1,128], index: 5, kind: input, shape index: {}]   ;;  %s7981_s6 = inlined_call_operand.vmem [shape: bf16[5,256,128], index: 6, kind: input, shape index: {}]   ;;  %s7982_s7 = inlined_call_operand.vmem [shape: f32[1,128], index: 7, kind: input, shape index: {}]   ;;  %s7983_s8 = inlined_call_operand.vmem [shape: bf16[2,8,8,128], index: 8, kind: output, shape index: {}]  }
   0x1   :  { %v46_v0 = vld [vmem:[%s7975_s1] sm:$0xf]  ;;  %v5733_v2 = vld [vmem:[%s7976_s0] sm:$0x10]  ;;  %v47_v5 = vld [vmem:[%s7975_s1 + $0x8] sm:$0xf] }
   0x2   :  { %v5063_v1 = vld [vmem:[%s7976_s0] sm:$0xf]  ;;  %v192_v3 = vunpack.c.l.b16 %v46_v0  ;;  %v5067_v6 = vld [vmem:[%s7976_s0 + $0x8] sm:$0xf]  ;;  %v5734_v7 = vld [vmem:[%s7976_s0 + $0x8] sm:$0x10]  ;;  %v193_v13 = vunpack.c.l.b16 %v47_v5 }
   0x3   :  { %v5064_v4 = vor.u32 %v5733_v2, %v5063_v1  ;;  %v5068_v8 = vor.u32 %v5734_v7, %v5067_v6  ;;  %v94_v12 = vld [vmem:[%s7977_s3] sm:$0xf]  ;;  %v95_v19 = vld [vmem:[%s7977_s3 + $0x8] sm:$0xf]  ;;  %v110_v20 = vld [vmem:[%s7978_s2 + $0x4] sm:$0x1] }
   0x4   :  { %v208_v9 = vpack.c.b16 %v192_v3, %v192_v3  ;;  %v2009_v15 = vsel %vm1184_vm0, %v94_v12, 0  ;;  %v78_v16 = vld [vmem:[%s7978_s2] sm:$0xf]  ;;  %v2011_v21 = vsel %vm1184_vm0, %v95_v19, 0  ;;  %v79_v22 = vld [vmem:[%s7978_s2 + $0x8] sm:$0xf]  ;;  %v209_v27 = vpack.c.b16 %v193_v13, %v193_v13 }
   0x5   :  { %v337_v10 = vshrl.u32 %v5064_v4, 16  ;;  %v339_v11 = vshll.u32 %v5064_v4, 16  ;;  %v346_v14 = vshll.u32 %v5068_v8, 16  ;;  %v4638_v18 = vunpack.c.l.b16 %v2009_v15  ;;  %v111_v23 = vld [vmem:[%s7978_s2 + $0xc] sm:$0x1]  ;;  %s5947_s9 = smov 12  }
   0x6   :  { %224 = vrot.lane.b32.xlu0 %v208_v9, %s5945_s21  ;;  %v4639_v25 = vunpack.c.l.b16 %v2011_v21  ;;  %v496_v26 = vunpack.c.l.b16 %v78_v16  ;;  %v344_v28 = vshrl.u32 %v5068_v8, 16  ;;  %v656_v30 = vunpack.c.l.b16 %v110_v20  ;;  %v5045_v46 = vld [vmem:[%s7976_s0 + $0xc] sm:$0x1]  ;;  %s5948_s12 = smov 16   ;;  %v5013_v50 = vld [vmem:[%s7976_s0 + $0x8] sm:$0xf] }
   0x7   :  { %v341_v17 = vrot.slane %v339_v11, 1  ;;  %v348_v29 = vrot.slane %v346_v14, 1  ;;  %v497_v32 = vunpack.c.l.b16 %v79_v22  ;;  %v657_v33 = vunpack.c.l.b16 %v111_v23  ;;  %v5014_v51 = vld [vmem:[%s7976_s0 + $0x10] sm:$0xf]  ;;  %v5046_v52 = vld [vmem:[%s7976_s0 + $0x14] sm:$0x1] }
   0x8   :  { %v6039_v31 = vpack.c.b16 %v4639_v25, %v4638_v18  ;;  %v512_v34 = vpack.c.b16 %v496_v26, %v496_v26  ;;  %v672_v35 = vpack.c.b16 %v656_v30, %v496_v26  ;;  %v576_v37 = vunpack.c.l.b16 %v94_v12  ;;  %v5029_v59 = vld [vmem:[%s7975_s1 + $0x8] sm:$0xf]  ;;  %s5949_s22 = smov 20   ;;  %v5030_v0 = vld [vmem:[%s7975_s1 + $0x10] sm:$0xf]  ;;  %s5950_s25 = smov 24  }
   0x9   :  { %v342_v24 = vor.u32 %v341_v17, %v337_v10  ;;  %v349_v36 = vor.u32 %v348_v29, %v344_v28  ;;  %v673_v38 = vpack.c.b16 %v657_v33, %v497_v32  ;;  %v513_v39 = vpack.c.b16 %v497_v32, %v497_v32  ;;  %v5071_v6 = vld [vmem:[%s7976_s0 + $0x10] sm:$0xf]  ;;  %v5735_v7 = vld [vmem:[%s7976_s0 + $0x10] sm:$0x10]  ;;  %s5951_s10 = smov 28   ;;  %s5952_s20 = smov 32  }
   0xa   :  { %528 = vrot.lane.b32.xlu2 %v512_v34, %s5947_s9  ;;  %v691_v40 = vshll.u32 %v672_v35, 16  ;;  %v592_v41 = vpack.c.b16 %v576_v37, %v576_v37  ;;  %v577_v42 = vunpack.c.l.b16 %v95_v19  ;;  %v689_v44 = vshrl.u32 %v672_v35, 16  ;;  %v48_v14 = vld [vmem:[%s7975_s1 + $0x10] sm:$0xf]  ;;  %v5075_v15 = vld [vmem:[%s7976_s0 + $0x18] sm:$0xf] }
   0xb   :  { %448 = vrot.lane.b32.xlu1 %v342_v24, %s5946_s30  ;;  %v698_v43 = vshll.u32 %v673_v38, 16  ;;  %v696_v48 = vshrl.u32 %v673_v38, 16  ;;  %v1008_v54 = vunpack.c.l.b16 %v5045_v46  ;;  %v848_v56 = vunpack.c.l.b16 %v5013_v50  ;;  %v5736_v16 = vld [vmem:[%s7976_s0 + $0x18] sm:$0x10]  ;;  %v49_v18 = vld [vmem:[%s7975_s1 + $0x18] sm:$0xf] }
   0xc   :  { %v693_v45 = vrot.slane %v691_v40, 1  ;;  %v593_v47 = vpack.c.b16 %v577_v42, %v577_v42  ;;  %v849_v57 = vunpack.c.l.b16 %v5014_v51  ;;  %v1009_v58 = vunpack.c.l.b16 %v5046_v52  ;;  %v80_v28 = vld [vmem:[%s7978_s2 + $0x10] sm:$0xf]  ;;  %v112_v29 = vld [vmem:[%s7978_s2 + $0x14] sm:$0x1] }
   0xd   :  { %v700_v49 = vrot.slane %v698_v43, 1  ;;  %v1024_v60 = vpack.c.b16 %v1008_v54, %v848_v56  ;;  %v864_v61 = vpack.c.b16 %v848_v56, %v848_v56  ;;  %v928_v62 = vunpack.c.l.b16 %v5029_v59  ;;  %v81_v37 = vld [vmem:[%s7978_s2 + $0x18] sm:$0xf]  ;;  %v113_v38 = vld [vmem:[%s7978_s2 + $0x1c] sm:$0x1] }
   0xe   :  { %226 = vrot.lane.b32.xlu0 %v209_v27, %s5945_s21  ;;  %v694_v53 = vor.u32 %v693_v45, %v689_v44  ;;  %v1025_v63 = vpack.c.b16 %v1009_v58, %v849_v57  ;;  %v865_v1 = vpack.c.b16 %v849_v57, %v849_v57  ;;  %v929_v4 = vunpack.c.l.b16 %v5030_v0  ;;  %v96_v43 = vld [vmem:[%s7977_s3 + $0x10] sm:$0xf]  ;;  %v97_v46 = vld [vmem:[%s7977_s3 + $0x18] sm:$0xf]  ;;  %v5047_v56 = vld [vmem:[%s7976_s0 + $0x1c] sm:$0x1] }
   0xf   :  { %v701_v55 = vor.u32 %v700_v49, %v696_v48  ;;  %v1043_v2 = vshll.u32 %v1024_v60, 16  ;;  %v944_v3 = vpack.c.b16 %v928_v62, %v928_v62  ;;  %v1041_v8 = vshrl.u32 %v1024_v60, 16  ;;  %v5048_v0 = vld [vmem:[%s7976_s0 + $0x24] sm:$0x1] }
  0x10   :  { %v1050_v5 = vshll.u32 %v1025_v63, 16  ;;  %v945_v10 = vpack.c.b16 %v929_v4, %v929_v4  ;;  %v1048_v11 = vshrl.u32 %v1025_v63, 16  ;;  %v5072_v13 = vor.u32 %v5735_v7, %v5071_v6  ;;  %v5016_v63 = vld [vmem:[%s7976_s0 + $0x20] sm:$0xf] }
  0x11   :  { %v1045_v9 = vrot.slane %v1043_v2, 1  ;;  %v194_v20 = vunpack.c.l.b16 %v48_v14  ;;  %v5076_v22 = vor.u32 %v5736_v16, %v5075_v15  ;;  %v195_v23 = vunpack.c.l.b16 %v49_v18  ;;  %v5032_v7 = vld [vmem:[%s7975_s1 + $0x20] sm:$0xf]  ;;  %v5737_v18 = vld [vmem:[%s7976_s0 + $0x20] sm:$0x10] }
  0x12   :  { %530 = vrot.lane.b32.xlu2 %v513_v39, %s5947_s9  ;;  %v1052_v12 = vrot.slane %v1050_v5, 1  ;;  %v353_v21 = vshll.u32 %v5072_v13, 16  ;;  %v351_v24 = vshrl.u32 %v5072_v13, 16  ;;  %v498_v32 = vunpack.c.l.b16 %v80_v28  ;;  %v5031_v5 = vld [vmem:[%s7975_s1 + $0x18] sm:$0xf] }
  0x13   :  { %450 = vrot.lane.b32.xlu1 %v349_v36, %s5946_s30  ;;  %v1046_v17 = vor.u32 %v1045_v9, %v1041_v8  ;;  %v210_v25 = vpack.c.b16 %v194_v20, %v194_v20  ;;  %v360_v27 = vshll.u32 %v5076_v22, 16  ;;  %v211_v30 = vpack.c.b16 %v195_v23, %v195_v23  ;;  %v50_v20 = vld [vmem:[%s7975_s1 + $0x20] sm:$0xf] }
  0x14   :  { %v1053_v19 = vor.u32 %v1052_v12, %v1048_v11  ;;  %v355_v26 = vrot.slane %v353_v21, 1  ;;  %v658_v33 = vunpack.c.l.b16 %v112_v29  ;;  %v358_v35 = vshrl.u32 %v5076_v22, 16  ;;  %v5083_v21 = vld [vmem:[%s7976_s0 + $0x28] sm:$0xf]  ;;  %v5738_v22 = vld [vmem:[%s7976_s0 + $0x28] sm:$0x10] }
  0x15   :  { %v362_v36 = vrot.slane %v360_v27, 1  ;;  %v659_v42 = vunpack.c.l.b16 %v113_v38  ;;  %v514_v44 = vpack.c.b16 %v498_v32, %v498_v32  ;;  %v578_v48 = vunpack.c.l.b16 %v96_v43  ;;  %v51_v27 = vld [vmem:[%s7975_s1 + $0x28] sm:$0xf]  ;;  %v115_v43 = vld [vmem:[%s7978_s2 + $0x2c] sm:$0x1] }
  0x16   :  { %608 = vrot.lane.b32.xlu0 %v592_v41, %s5948_s12  ;;  %v356_v34 = vor.u32 %v355_v26, %v351_v24  ;;  %v674_v39 = vpack.c.b16 %v658_v33, %v498_v32  ;;  %v499_v41 = vunpack.c.l.b16 %v81_v37  ;;  %v579_v50 = vunpack.c.l.b16 %v97_v46 }
  0x17   :  { %v363_v40 = vor.u32 %v362_v36, %v358_v35  ;;  %v1010_v62 = vunpack.c.l.b16 %v5047_v56  ;;  %v851_v2 = vunpack.c.l.b16 %v5016_v63  ;;  %v1011_v4 = vunpack.c.l.b16 %v5048_v0 }
  0x18   :  { %v705_v45 = vshll.u32 %v674_v39, 16  ;;  %v675_v49 = vpack.c.b16 %v659_v42, %v499_v41  ;;  %v703_v51 = vshrl.u32 %v674_v39, 16  ;;  %v595_v57 = vpack.c.b16 %v579_v50, %v579_v50  ;;  %v82_v39 = vld [vmem:[%s7978_s2 + $0x20] sm:$0xf] }
  0x19   :  { %v867_v8 = vpack.c.b16 %v851_v2, %v851_v2  ;;  %v930_v9 = vunpack.c.l.b16 %v5031_v5  ;;  %v1027_v11 = vpack.c.b16 %v1011_v4, %v851_v2  ;;  %v931_v12 = vunpack.c.l.b16 %v5032_v7  ;;  %v98_v50 = vld [vmem:[%s7977_s3 + $0x20] sm:$0xf]  ;;  %v5017_v2 = vld [vmem:[%s7976_s0 + $0x28] sm:$0xf] }
  0x1a   :  { %800 = vrot.lane.b32.xlu2 %v694_v53, %s5949_s22  ;;  %v707_v52 = vrot.slane %v705_v45, 1  ;;  %v594_v53 = vpack.c.b16 %v578_v48, %v578_v48  ;;  %v712_v54 = vshll.u32 %v675_v49, 16  ;;  %v710_v59 = vshrl.u32 %v675_v49, 16 }
  0x1b   :  { %610 = vrot.lane.b32.xlu1 %v593_v47, %s5948_s12  ;;  %v515_v47 = vpack.c.b16 %v499_v41, %v499_v41  ;;  %v946_v13 = vpack.c.b16 %v930_v9, %v930_v9  ;;  %v1064_v16 = vshll.u32 %v1027_v11, 16  ;;  %v1062_v24 = vshrl.u32 %v1027_v11, 16  ;;  %v5018_v11 = vld [vmem:[%s7976_s0 + $0x30] sm:$0xf] }
  0x1c   :  { %v708_v58 = vor.u32 %v707_v52, %v703_v51  ;;  %v714_v60 = vrot.slane %v712_v54, 1  ;;  %v196_v28 = vunpack.c.l.b16 %v50_v20  ;;  %v5084_v29 = vor.u32 %v5738_v22, %v5083_v21  ;;  %v99_v54 = vld [vmem:[%s7977_s3 + $0x28] sm:$0xf]  ;;  %v1468_v21 = vld [vmem:[%s7979_s4 + $0x10] sm:$0x3] }
  0x1d   :  { %v197_v32 = vunpack.c.l.b16 %v51_v27  ;;  %v500_v45 = vunpack.c.l.b16 %v82_v39  ;;  %v661_v49 = vunpack.c.l.b16 %v115_v43  ;;  %v5091_v39 = vld [vmem:[%s7976_s0 + $0x38] sm:$0xf]  ;;  %vm1299_vm4 = vcmask 130048  }
  0x1e   :  { %802 = vrot.lane.b32.xlu0 %v701_v55, %s5949_s22  ;;  %v5015_v55 = vld [vmem:[%s7976_s0 + $0x18] sm:$0xf]  ;;  %v374_v35 = vshll.u32 %v5084_v29, 16  ;;  %v372_v41 = vshrl.u32 %v5084_v29, 16  ;;  %vm1332_vm5 = vcmask 162816   ;;  %vm1365_vm6 = vcmask 195584  }
  0x1f   :  { %v213_v36 = vpack.c.b16 %v197_v32, %v197_v32  ;;  %v516_v51 = vpack.c.b16 %v500_v45, %v500_v45  ;;  %v5087_v32 = vld [vmem:[%s7976_s0 + $0x30] sm:$0xf]  ;;  %vm1398_vm7 = vcmask 228352   ;;  %vm1431_vm8 = vcmask 261120  }
  0x20   :  { %v376_v42 = vrot.slane %v374_v35, 1  ;;  %vm1528_vm9 = vcmask 293888   ;;  %vm1648_vm10 = vcmask 1040384   ;;  %vm1649_vm11 = vsmask.f32 256 }
  0x21   :  { %vm1699_vm12 = vsmask.f32 7938  ;;  %vm6620_vm13 = vmand %vm1648_vm10, %vm1649_vm11  ;;  %vm1909_vm15 = vcmask 1043456   ;;  %vm2706_vm11 = vcmask 1046532  }
  0x22   :  { %882 = vrot.lane.b32.xlu2 %v865_v1, %s5950_s25  ;;  %v715_v1 = vor.u32 %v714_v60, %v710_v59  ;;  %v377_v48 = vor.u32 %v376_v42, %v372_v41  ;;  %vm6631_vm14 = vmand %vm1648_vm10, %vm1699_vm12  ;;  %vm2705_vm10 = vcmask 1042432  }
  0x23   :  { %880 = vrot.lane.b32.xlu1 %v864_v61, %s5950_s25  ;;  %v850_v61 = vunpack.c.l.b16 %v5015_v55  ;;  %v580_v55 = vunpack.c.l.b16 %v98_v50  ;;  %v53_v50 = vld [vmem:[%s7975_s1 + $0x38] sm:$0xf] }
  0x25   :  { %v866_v6 = vpack.c.b16 %v850_v61, %v850_v61 }
  0x26   :  { %960 = vrot.lane.b32.xlu0 %v944_v3, %s5951_s10  ;;  %v1026_v3 = vpack.c.b16 %v1010_v62, %v850_v61  ;;  %v596_v61 = vpack.c.b16 %v580_v55, %v580_v55 }
  0x28   :  { %v1055_v14 = vshrl.u32 %v1026_v3, 16 }
  0x2a   :  { %1152 = vrot.lane.b32.xlu2 %v1046_v17, %s5952_s20  ;;  %v5079_v17 = vld [vmem:[%s7976_s0 + $0x20] sm:$0xf] }
  0x2b   :  { %962 = vrot.lane.b32.xlu1 %v945_v10, %s5951_s10  ;;  %v1057_v10 = vshll.u32 %v1026_v3, 16  ;;  %v5080_v26 = vor.u32 %v5737_v18, %v5079_v17  ;;  %v5049_v3 = vld [vmem:[%s7976_s0 + $0x2c] sm:$0x1]  ;;  %v5034_v18 = vld [vmem:[%s7975_s1 + $0x30] sm:$0xf] }
  0x2d   :  { %v1059_v15 = vrot.slane %v1057_v10, 1  ;;  %v367_v33 = vshll.u32 %v5080_v26, 16  ;;  %v365_v37 = vshrl.u32 %v5080_v26, 16  ;;  %v1012_v10 = vunpack.c.l.b16 %v5049_v3  ;;  %v84_v3 = vld [vmem:[%s7978_s2 + $0x30] sm:$0xf] }
  0x2e   :  { %1154 = vrot.lane.b32.xlu0 %v1053_v19, %s5952_s20  ;;  %v947_v19 = vpack.c.b16 %v931_v12, %v931_v12  ;;  %v1522_v26 = vunpack.c.l.b16 %v1468_v21 }
  0x2f   :  { %v1060_v23 = vor.u32 %v1059_v15, %v1055_v14  ;;  %v369_v38 = vrot.slane %v367_v33, 1  ;;  %v5033_v14 = vld [vmem:[%s7975_s1 + $0x28] sm:$0xf]  ;;  %v5739_v33 = vld [vmem:[%s7976_s0 + $0x30] sm:$0x10] }
  0x32   :  { %230 = vrot.lane.b32.xlu2 %v211_v30, %s5945_s21 }
  0x33   :  { %228 = vrot.lane.b32.xlu1 %v210_v25, %s5945_s21  ;;  %v1066_v25 = vrot.slane %v1064_v16, 1  ;;  %v853_v16 = vunpack.c.l.b16 %v5018_v11  ;;  %v502_v11 = vunpack.c.l.b16 %v84_v3 }
  0x35   :  { %v1067_v30 = vor.u32 %v1066_v25, %v1062_v24  ;;  %v869_v22 = vpack.c.b16 %v853_v16, %v853_v16 }
  0x36   :  { %452 = vrot.lane.b32.xlu0 %v356_v34, %s5946_s30  ;;  %v212_v34 = vpack.c.b16 %v196_v28, %v196_v28 }
  0x3a   :  { %532 = vrot.lane.b32.xlu2 %v514_v44, %s5947_s9  ;;  %v370_v44 = vor.u32 %v369_v38, %v365_v37  ;;  %v52_v38 = vld [vmem:[%s7975_s1 + $0x30] sm:$0xf] }
  0x3b   :  { %454 = vrot.lane.b32.xlu1 %v363_v40, %s5946_s30  ;;  %v114_v40 = vld [vmem:[%s7978_s2 + $0x24] sm:$0x1] }
  0x3c   :  { %v660_v46 = vunpack.c.l.b16 %v114_v40  ;;  %v5740_v40 = vld [vmem:[%s7976_s0 + $0x38] sm:$0x10] }
  0x3e   :  { %534 = vrot.lane.b32.xlu0 %v515_v47, %s5947_s9  ;;  %v83_v47 = vld [vmem:[%s7978_s2 + $0x28] sm:$0xf] }
  0x3f   :  { %v501_v52 = vunpack.c.l.b16 %v83_v47  ;;  %v198_v47 = vunpack.c.l.b16 %v52_v38  ;;  %v5051_v38 = vld [vmem:[%s7976_s0 + $0x3c] sm:$0x1] }
  0x41   :  { %v677_v56 = vpack.c.b16 %v661_v49, %v501_v52  ;;  %v214_v55 = vpack.c.b16 %v198_v47, %v198_v47 }
  0x42   :  { %614 = vrot.lane.b32.xlu2 %v595_v57, %s5948_s12  ;;  %v517_v57 = vpack.c.b16 %v501_v52, %v501_v52 }
  0x43   :  { %612 = vrot.lane.b32.xlu1 %v594_v53, %s5948_s12  ;;  %v676_v53 = vpack.c.b16 %v660_v46, %v500_v45  ;;  %v726_v62 = vshll.u32 %v677_v56, 16  ;;  %v724_v4 = vshrl.u32 %v677_v56, 16  ;;  %v5750_v45 = vld [vmem:[%s7979_s4 + $0x8] sm:$0xff]  ;;  %v199_v56 = vunpack.c.l.b16 %v53_v50 }
  0x45   :  { %v719_v59 = vshll.u32 %v676_v53, 16  ;;  %v717_v0 = vshrl.u32 %v676_v53, 16  ;;  %v728_v5 = vrot.slane %v726_v62, 1  ;;  %v116_v62 = vld [vmem:[%s7978_s2 + $0x34] sm:$0x1] }
  0x46   :  { %804 = vrot.lane.b32.xlu0 %v708_v58, %s5949_s22  ;;  %v581_v58 = vunpack.c.l.b16 %v99_v54  ;;  %v5749_v54 = vld [vmem:[%s7979_s4] sm:$0xff] }
  0x47   :  { %v729_v12 = vor.u32 %v728_v5, %v724_v4  ;;  %v85_v4 = vld [vmem:[%s7978_s2 + $0x38] sm:$0xf]  ;;  %v117_v5 = vld [vmem:[%s7978_s2 + $0x3c] sm:$0x1] }
  0x48   :  { %v597_v63 = vpack.c.b16 %v581_v58, %v581_v58 }
  0x4a   :  { %884 = vrot.lane.b32.xlu2 %v866_v6, %s5950_s25  ;;  %v5050_v6 = vld [vmem:[%s7976_s0 + $0x34] sm:$0x1] }
  0x4b   :  { %806 = vrot.lane.b32.xlu1 %v715_v1, %s5949_s22  ;;  %v721_v1 = vrot.slane %v719_v59, 1 }
  0x4d   :  { %v722_v7 = vor.u32 %v721_v1, %v717_v0 }
  0x4e   :  { %886 = vrot.lane.b32.xlu0 %v867_v8, %s5950_s25  ;;  %v852_v8 = vunpack.c.l.b16 %v5017_v2 }
  0x50   :  { %v868_v15 = vpack.c.b16 %v852_v8, %v852_v8  ;;  %v1028_v17 = vpack.c.b16 %v1012_v10, %v852_v8  ;;  %v662_v8 = vunpack.c.l.b16 %v116_v62 }
  0x52   :  { %966 = vrot.lane.b32.xlu2 %v947_v19, %s5951_s10  ;;  %v932_v19 = vunpack.c.l.b16 %v5033_v14  ;;  %v1071_v24 = vshll.u32 %v1028_v17, 16  ;;  %v1069_v35 = vshrl.u32 %v1028_v17, 16  ;;  %v100_v14 = vld [vmem:[%s7977_s3 + $0x30] sm:$0xf]  ;;  %v30_v17 = vld [vmem:[%s7976_s0] sm:$0xf] }
  0x53   :  { %964 = vrot.lane.b32.xlu1 %v946_v13, %s5951_s10  ;;  %v1013_v13 = vunpack.c.l.b16 %v5050_v6 }
  0x54   :  { %v948_v28 = vpack.c.b16 %v932_v19, %v932_v19  ;;  %v582_v19 = vunpack.c.l.b16 %v100_v14 }
  0x55   :  { %v1029_v20 = vpack.c.b16 %v1013_v13, %v853_v16  ;;  %v663_v13 = vunpack.c.l.b16 %v117_v5  ;;  %v678_v16 = vpack.c.b16 %v662_v8, %v502_v11 }
  0x56   :  { %1156 = vrot.lane.b32.xlu0 %v1060_v23, %s5952_s20  ;;  %v933_v23 = vunpack.c.l.b16 %v5034_v18  ;;  %v518_v18 = vpack.c.b16 %v502_v11, %v502_v11 }
  0x57   :  { %v1078_v29 = vshll.u32 %v1029_v20, 16  ;;  %v1076_v42 = vshrl.u32 %v1029_v20, 16 }
  0x59   :  { %v1080_v43 = vrot.slane %v1078_v29, 1  ;;  %v31_v29 = vld [vmem:[%s7976_s0 + $0x8] sm:$0xf] }
  0x5a   :  { %232 = vrot.lane.b32.xlu2 %v212_v34, %s5945_s21  ;;  %v949_v34 = vpack.c.b16 %v933_v23, %v933_v23 }
  0x5b   :  { %1158 = vrot.lane.b32.xlu1 %v1067_v30, %s5952_s20  ;;  %v1525_v30 = vpack.c.b16 %v1522_v26, %v1522_v26  ;;  %v1081_v52 = vor.u32 %v1080_v43, %v1076_v42 }
  0x5d   :  { %v1555_v37 = vsel %vm1553_vm1, %v1525_v30, 0  ;;  %v598_v30 = vpack.c.b16 %v582_v19, %v582_v19  ;;  %vm6778_vm1 = vmand %vm1909_vm15, %vm1699_vm12  ;;  %vm2072_vm15 = vsmask.f32 3328 }
  0x5e   :  { %234 = vrot.lane.b32.xlu0 %v213_v36, %s5945_s21  ;;  %v1073_v36 = vrot.slane %v1071_v24, 1  ;;  %1562 = vmatpush.bf16.msra.mxu0 %v1555_v37  ;;  %vm6916_vm12 = vmor %vm2705_vm10, %vm2706_vm11  ;;  %vm2073_vm10 = vsmask.f32 7440 }
  0x5f   :  { %vm7007_vm11 = vmor %vm2072_vm15, %vm2073_vm10 }
  0x60   :  { %v1074_v46 = vor.u32 %v1073_v36, %v1069_v35  ;;  %v731_v36 = vshrl.u32 %v678_v16, 16 }
  0x62   :  { %458 = vrot.lane.b32.xlu2 %v377_v48, %s5946_s30  ;;  %v5092_v48 = vor.u32 %v5740_v40, %v5091_v39  ;;  %1563 = vmatpush.bf16.msra.mxu0 %v5750_v45  ;;  %v5052_v45 = vld [vmem:[%s7976_s0 + $0x44] sm:$0x1] }
  0x63   :  { %456 = vrot.lane.b32.xlu1 %v370_v44, %s5946_s30  ;;  %v5088_v44 = vor.u32 %v5739_v33, %v5087_v32 }
  0x64   :  { %v6184_v60 = vpop.permute.xlu2 %528  ;;  %v386_v0 = vshrl.u32 %v5092_v48, 16 }
  0x65   :  { %v381_v53 = vshll.u32 %v5088_v44, 16  ;;  %v379_v59 = vshrl.u32 %v5088_v44, 16  ;;  %v5020_v44 = vld [vmem:[%s7976_s0 + $0x40] sm:$0xf] }
  0x66   :  { %536 = vrot.lane.b32.xlu0 %v516_v51, %s5947_s9  ;;  %1564 = vmatpush.bf16.msra.mxu0 %v5749_v54 }
  0x6a   :  { %616 = vrot.lane.b32.xlu2 %v596_v61, %s5948_s12  ;;  %v383_v61 = vrot.slane %v381_v53, 1  ;;  %v1015_v53 = vunpack.c.l.b16 %v5052_v45 }
  0x6b   :  { %538 = vrot.lane.b32.xlu1 %v517_v57, %s5947_s9  ;;  %v388_v57 = vshll.u32 %v5092_v48, 16 }
  0x6c   :  { %v6198_v9 = vpop.permute.xlu2 %530 }
  0x6d   :  { %v390_v1 = vrot.slane %v388_v57, 1 }
  0x6e   :  { %618 = vrot.lane.b32.xlu0 %v597_v63, %s5948_s12  ;;  %v215_v63 = vpack.c.b16 %v199_v56, %v199_v56 }
  0x6f   :  { %v391_v10 = vor.u32 %v390_v1, %v386_v0 }
  0x72   :  { %810 = vrot.lane.b32.xlu2 %v729_v12, %s5949_s22  ;;  %v503_v12 = vunpack.c.l.b16 %v85_v4 }
  0x73   :  { %808 = vrot.lane.b32.xlu1 %v722_v7, %s5949_s22  ;;  %v384_v7 = vor.u32 %v383_v61, %v379_v59  ;;  %v5035_v61 = vld [vmem:[%s7975_s1 + $0x38] sm:$0xf] }
  0x74   :  { %v6215_v25 = vpop.permute.xlu2 %800  ;;  %v679_v20 = vpack.c.b16 %v663_v13, %v503_v12  ;;  %v519_v26 = vpack.c.b16 %v503_v12, %v503_v12  ;;  %v934_v3 = vunpack.c.l.b16 %v5035_v61 }
  0x76   :  { %888 = vrot.lane.b32.xlu0 %v868_v15, %s5950_s25  ;;  %v740_v33 = vshll.u32 %v679_v20, 16 }
  0x78   :  { %v6217_v27 = vpop.permute.xlu0 %224  ;;  %v742_v42 = vrot.slane %v740_v33, 1  ;;  %v5099_v33 = vld [vmem:[%s7976_s0 + $0x50] sm:$0xf] }
  0x79   :  { %v1187_v23 = vsel %vm1184_vm0, %v30_v17, %v6217_v27 }
  0x7a   :  { %968 = vrot.lane.b32.xlu2 %v948_v28, %s5951_s10  ;;  %v733_v28 = vshll.u32 %v678_v16, 16 }
  0x7b   :  { %890 = vrot.lane.b32.xlu1 %v869_v22, %s5950_s25  ;;  %v101_v22 = vld [vmem:[%s7977_s3 + $0x38] sm:$0xf] }
  0x7c   :  { %v6242_v49 = vpop.permute.xlu2 %882  ;;  %v583_v32 = vunpack.c.l.b16 %v101_v22  ;;  %v735_v37 = vrot.slane %v733_v28, 1 }
  0x7d   :  { %v6235_v41 = vpop.permute.xlu1 %448 }
  0x7e   :  { %970 = vrot.lane.b32.xlu0 %v949_v34, %s5951_s10  ;;  %v1235_v34 = vsel %vm1233_vm2, %v1187_v23, %v6235_v41  ;;  %v599_v40 = vpack.c.b16 %v583_v32, %v583_v32  ;;  %v738_v41 = vshrl.u32 %v679_v20, 16  ;;  %v736_v50 = vor.u32 %v735_v37, %v731_v36  ;;  %v54_v32 = vld [vmem:[%s7975_s1 + $0x48] sm:$0xf]  ;;  %v55_v37 = vld [vmem:[%s7975_s1 + $0x50] sm:$0xf] }
  0x7f   :  { %v1268_v39 = vsel %vm1266_vm3, %v1235_v34, %v6184_v60  ;;  %v5019_v60 = vld [vmem:[%s7976_s0 + $0x38] sm:$0xf]  ;;  %v5742_v34 = vld [vmem:[%s7976_s0 + $0x50] sm:$0x10] }
  0x80   :  { %v227_v51 = vpop.permute.xlu0 %226  ;;  %v743_v56 = vor.u32 %v742_v42, %v738_v41  ;;  %v854_v57 = vunpack.c.l.b16 %v5019_v60  ;;  %v201_v42 = vunpack.c.l.b16 %v55_v37 }
  0x81   :  { %v1190_v35 = vsel %vm1184_vm0, %v31_v29, %v227_v51  ;;  %v1014_v51 = vunpack.c.l.b16 %v5051_v38 }
  0x82   :  { %1162 = vrot.lane.b32.xlu2 %v1081_v52, %s5952_s20  ;;  %v855_v52 = vunpack.c.l.b16 %v5020_v44  ;;  %v870_v1 = vpack.c.b16 %v854_v57, %v854_v57 }
  0x83   :  { %1160 = vrot.lane.b32.xlu1 %v1074_v46, %s5952_s20 }
  0x84   :  { %v6256_v2 = vpop.permute.xlu2 %1152  ;;  %v1031_v0 = vpack.c.b16 %v1015_v53, %v855_v52  ;;  %v871_v11 = vpack.c.b16 %v855_v52, %v855_v52  ;;  %v217_v52 = vpack.c.b16 %v201_v42, %v201_v42 }
  0x85   :  { %v451_v58 = vpop.permute.xlu1 %450 }
  0x86   :  { %236 = vrot.lane.b32.xlu0 %v214_v55, %s5945_s21  ;;  %v1237_v46 = vsel %vm1233_vm2, %v1190_v35, %v451_v58  ;;  %v1092_v14 = vshll.u32 %v1031_v0, 16  ;;  %v1090_v28 = vshrl.u32 %v1031_v0, 16 }
  0x87   :  { %v1270_v55 = vsel %vm1266_vm3, %v1237_v46, %v6198_v9  ;;  %v1030_v9 = vpack.c.b16 %v1014_v51, %v854_v57 }
  0x88   :  { %v609_v6 = vpop.permute.xlu0 %608  ;;  %v1094_v29 = vrot.slane %v1092_v14, 1  ;;  %v33_v14 = vld [vmem:[%s7976_s0 + $0x18] sm:$0xf] }
  0x89   :  { %v1301_v47 = vsel %vm1299_vm4, %v1268_v39, %v609_v6  ;;  %v1085_v12 = vshll.u32 %v1030_v9, 16  ;;  %v1083_v22 = vshrl.u32 %v1030_v9, 16  ;;  %v200_v39 = vunpack.c.l.b16 %v54_v32 }
  0x8a   :  { %460 = vrot.lane.b32.xlu2 %v384_v7, %s5946_s30  ;;  %v1334_v54 = vsel %vm1332_vm5, %v1301_v47, %v6215_v25  ;;  %v5036_v7 = vld [vmem:[%s7975_s1 + $0x40] sm:$0xf]  ;;  %v1095_v38 = vor.u32 %v1094_v29, %v1090_v28 }
  0x8b   :  { %238 = vrot.lane.b32.xlu1 %v215_v63, %s5945_s21  ;;  %v935_v17 = vunpack.c.l.b16 %v5036_v7  ;;  %v1087_v23 = vrot.slane %v1085_v12, 1  ;;  %v216_v46 = vpack.c.b16 %v200_v39, %v200_v39  ;;  %v103_v7 = vld [vmem:[%s7977_s3 + $0x50] sm:$0xf] }
  0x8c   :  { %v6276_v21 = vpop.permute.xlu2 %230 }
  0x8d   :  { %v611_v15 = vpop.permute.xlu1 %610 }
  0x8e   :  { %462 = vrot.lane.b32.xlu0 %v391_v10, %s5946_s30  ;;  %v1303_v58 = vsel %vm1299_vm4, %v1270_v55, %v611_v15 }
  0x90   :  { %v803_v24 = vpop.permute.xlu0 %802 }
  0x91   :  { %v1336_v62 = vsel %vm1332_vm5, %v1303_v58, %v803_v24  ;;  %v119_v58 = vld [vmem:[%s7978_s2 + $0x54] sm:$0x1] }
  0x92   :  { %542 = vrot.lane.b32.xlu2 %v519_v26, %s5947_s9  ;;  %v1369_v5 = vsel %vm1365_vm6, %v1336_v62, %v6242_v49  ;;  %v950_v49 = vpack.c.b16 %v934_v3, %v934_v3  ;;  %v951_v26 = vpack.c.b16 %v935_v17, %v935_v17  ;;  %v665_v62 = vunpack.c.l.b16 %v119_v58 }
  0x93   :  { %540 = vrot.lane.b32.xlu1 %v518_v18, %s5947_s9  ;;  %v5741_v18 = vld [vmem:[%s7976_s0 + $0x48] sm:$0x10] }
  0x94   :  { %v6297_v43 = vpop.permute.xlu2 %532 }
  0x95   :  { %v881_v27 = vpop.permute.xlu1 %880 }
  0x96   :  { %620 = vrot.lane.b32.xlu0 %v598_v30, %s5948_s12  ;;  %v1367_v59 = vsel %vm1365_vm6, %v1334_v54, %v881_v27  ;;  %v1088_v27 = vor.u32 %v1087_v23, %v1083_v22  ;;  %v5053_v22 = vld [vmem:[%s7976_s0 + $0x54] sm:$0x1]  ;;  %v1196_v23 = vsel %vm1184_vm0, %v33_v14, %v6276_v21  ;;  %v5022_v21 = vld [vmem:[%s7976_s0 + $0x58] sm:$0xf] }
  0x97   :  { %v56_v14 = vld [vmem:[%s7975_s1 + $0x58] sm:$0xf] }
  0x98   :  { %v961_v48 = vpop.permute.xlu0 %960 }
  0x99   :  { %v1400_v63 = vsel %vm1398_vm7, %v1367_v59, %v961_v48  ;;  %v86_v48 = vld [vmem:[%s7978_s2 + $0x48] sm:$0xf]  ;;  %v87_v59 = vld [vmem:[%s7978_s2 + $0x50] sm:$0xf] }
  0x9a   :  { %812 = vrot.lane.b32.xlu2 %v736_v50, %s5949_s22  ;;  %v1433_v6 = vsel %vm1431_vm8, %v1400_v63, %v6256_v2  ;;  %v5095_v2 = vld [vmem:[%s7976_s0 + $0x48] sm:$0xf]  ;;  %v118_v50 = vld [vmem:[%s7978_s2 + $0x4c] sm:$0x1] }
  0x9b   :  { %622 = vrot.lane.b32.xlu1 %v599_v40, %s5948_s12  ;;  %v1489_v15 = vunpack.c.l.b16 %v1433_v6  ;;  %v5096_v24 = vor.u32 %v5741_v18, %v5095_v2  ;;  %v5100_v40 = vor.u32 %v5742_v34, %v5099_v33  ;;  %v664_v57 = vunpack.c.l.b16 %v118_v50 }
  0x9c   :  { %v6324_v4 = vpop.permute.xlu2 %614 }
  0x9d   :  { %v963_v25 = vpop.permute.xlu1 %962  ;;  %v395_v36 = vshll.u32 %v5096_v24, 16  ;;  %v393_v44 = vshrl.u32 %v5096_v24, 16  ;;  %v402_v47 = vshll.u32 %v5100_v40, 16  ;;  %v400_v54 = vshrl.u32 %v5100_v40, 16 }
  0x9e   :  { %814 = vrot.lane.b32.xlu0 %v743_v56, %s5949_s22  ;;  %v1402_v8 = vsel %vm1398_vm7, %v1369_v5, %v963_v25  ;;  %v504_v56 = vunpack.c.l.b16 %v86_v48  ;;  %v505_v25 = vunpack.c.l.b16 %v87_v59 }
  0x9f   :  { %v397_v45 = vrot.slane %v395_v36, 1  ;;  %v404_v55 = vrot.slane %v402_v47, 1  ;;  %v1016_v36 = vunpack.c.l.b16 %v5053_v22  ;;  %v57_v22 = vld [vmem:[%s7975_s1 + $0x60] sm:$0xf] }
  0xa0   :  { %v1155_v10 = vpop.permute.xlu0 %1154  ;;  %v680_v9 = vpack.c.b16 %v664_v57, %v504_v56  ;;  %v520_v5 = vpack.c.b16 %v504_v56, %v504_v56  ;;  %v681_v6 = vpack.c.b16 %v665_v62, %v505_v25  ;;  %v5038_v56 = vld [vmem:[%s7975_s1 + $0x58] sm:$0xf] }
  0xa1   :  { %v1435_v13 = vsel %vm1431_vm8, %v1402_v8, %v1155_v10  ;;  %v398_v53 = vor.u32 %v397_v45, %v393_v44  ;;  %v405_v63 = vor.u32 %v404_v55, %v400_v54  ;;  %v521_v8 = vpack.c.b16 %v505_v25, %v505_v25  ;;  %v5037_v45 = vld [vmem:[%s7975_s1 + $0x50] sm:$0xf] }
  0xa2   :  { %v1490_v16 = vunpack.c.l.b16 %v1435_v13  ;;  %894 = vrot.lane.b32.xlu2 %v871_v11, %s5950_s25  ;;  %v747_v11 = vshll.u32 %v680_v9, 16  ;;  %v585_v13 = vunpack.c.l.b16 %v103_v7  ;;  %v745_v17 = vshrl.u32 %v680_v9, 16 }
  0xa3   :  { %892 = vrot.lane.b32.xlu1 %v870_v1, %s5950_s25  ;;  %v102_v1 = vld [vmem:[%s7977_s3 + $0x48] sm:$0xf]  ;;  %v752_v32 = vshrl.u32 %v681_v6, 16  ;;  %v857_v44 = vunpack.c.l.b16 %v5022_v21  ;;  %v936_v55 = vunpack.c.l.b16 %v5037_v45 }
  0xa4   :  { %v1505_v20 = vpack.c.b16 %v1490_v16, %v1489_v15  ;;  %v6347_v30 = vpop.permute.xlu2 %884  ;;  %v584_v10 = vunpack.c.l.b16 %v102_v1  ;;  %v32_v15 = vld [vmem:[%s7976_s0 + $0x10] sm:$0xf]  ;;  %v754_v16 = vshll.u32 %v681_v6, 16  ;;  %v749_v2 = vrot.slane %v747_v11, 1 }
  0xa5   :  { %v6342_v19 = vpop.permute.xlu1 %228  ;;  %v601_v28 = vpack.c.b16 %v585_v13, %v585_v13  ;;  %v873_v58 = vpack.c.b16 %v857_v44, %v857_v44  ;;  %v952_v9 = vpack.c.b16 %v936_v55, %v936_v55 }
  0xa6   :  { %972 = vrot.lane.b32.xlu0 %v950_v49, %s5951_s10  ;;  %5133 = vmatmul.msk.bf16.vlgmr.msra.gmra.mxu0 %vm1528_vm9, %v1505_v20  ;;  %v600_v49 = vpack.c.b16 %v584_v10, %v584_v10  ;;  %v5021_v20 = vld [vmem:[%s7976_s0 + $0x50] sm:$0xf]  ;;  %v1193_v24 = vsel %vm1184_vm0, %v32_v15, %v6342_v19  ;;  %v756_v33 = vrot.slane %v754_v16, 1  ;;  %v750_v34 = vor.u32 %v749_v2, %v745_v17  ;;  %v5054_v19 = vld [vmem:[%s7976_s0 + $0x5c] sm:$0x1] }
  0xa7   :  { %v5743_v10 = vld [vmem:[%s7976_s0 + $0x58] sm:$0x10]  ;;  %v5107_v15 = vld [vmem:[%s7976_s0 + $0x60] sm:$0xf]  ;;  %v5744_v16 = vld [vmem:[%s7976_s0 + $0x60] sm:$0x10] }
  0xa8   :  { %v6358_v35 = vpop.permute.xlu0 %452  ;;  %v757_v42 = vor.u32 %v756_v33, %v752_v32 }
  0xa9   :  { %v1239_v29 = vsel %vm1233_vm2, %v1193_v24, %v6358_v35  ;;  %v202_v24 = vunpack.c.l.b16 %v56_v14 }
  0xaa   :  { %1164 = vrot.lane.b32.xlu2 %v1088_v27, %s5952_s20  ;;  %v856_v27 = vunpack.c.l.b16 %v5021_v20  ;;  %v1272_v35 = vsel %vm1266_vm3, %v1239_v29, %v6297_v43  ;;  %v1017_v43 = vunpack.c.l.b16 %v5054_v19  ;;  %v203_v29 = vunpack.c.l.b16 %v57_v22 }
  0xab   :  { %974 = vrot.lane.b32.xlu1 %v951_v26, %s5951_s10 }
  0xac   :  { %v6368_v60 = vpop.permute.xlu2 %966  ;;  %v1033_v59 = vpack.c.b16 %v1017_v43, %v857_v44 }
  0xad   :  { %v6364_v41 = vpop.permute.xlu1 %454 }
  0xae   :  { %1166 = vrot.lane.b32.xlu0 %v1095_v38, %s5952_s20  ;;  %v1241_v37 = vsel %vm1233_vm2, %v1196_v23, %v6364_v41  ;;  %v1106_v7 = vshll.u32 %v1033_v59, 16  ;;  %v1104_v17 = vshrl.u32 %v1033_v59, 16 }
  0xb0   :  { %v535_v51 = vpop.permute.xlu0 %534  ;;  %v1108_v2 = vrot.slane %v1106_v7, 1 }
  0xb1   :  { %v1274_v38 = vsel %vm1266_vm3, %v1241_v37, %v535_v51  ;;  %v219_v37 = vpack.c.b16 %v203_v29, %v203_v29 }
  0xb2   :  { %242 = vrot.lane.b32.xlu2 %v217_v52, %s5945_s21  ;;  %v1307_v48 = vsel %vm1299_vm4, %v1274_v38, %v6324_v4  ;;  %v872_v52 = vpack.c.b16 %v856_v27, %v856_v27  ;;  %v120_v38 = vld [vmem:[%s7978_s2 + $0x5c] sm:$0x1] }
  0xb3   :  { %240 = vrot.lane.b32.xlu1 %v216_v46, %s5945_s21  ;;  %v1032_v46 = vpack.c.b16 %v1016_v36, %v856_v27  ;;  %v218_v27 = vpack.c.b16 %v202_v24, %v202_v24  ;;  %v666_v43 = vunpack.c.l.b16 %v120_v38  ;;  %v5024_v24 = vld [vmem:[%s7976_s0 + $0x68] sm:$0xf] }
  0xb4   :  { %v6385_v0 = vpop.permute.xlu2 %232  ;;  %v859_v38 = vunpack.c.l.b16 %v5024_v24 }
  0xb5   :  { %v613_v61 = vpop.permute.xlu1 %612  ;;  %v1099_v4 = vshll.u32 %v1032_v46, 16  ;;  %v1097_v1 = vshrl.u32 %v1032_v46, 16 }
  0xb6   :  { %464 = vrot.lane.b32.xlu0 %v398_v53, %s5946_s30  ;;  %v1305_v40 = vsel %vm1299_vm4, %v1272_v35, %v613_v61  ;;  %v88_v35 = vld [vmem:[%s7978_s2 + $0x58] sm:$0xf] }
  0xb7   :  { %v1101_v6 = vrot.slane %v1099_v4, 1  ;;  %v506_v45 = vunpack.c.l.b16 %v88_v35 }
  0xb8   :  { %v805_v3 = vpop.permute.xlu0 %804 }
  0xb9   :  { %v1338_v41 = vsel %vm1332_vm5, %v1305_v40, %v805_v3 }
  0xba   :  { %544 = vrot.lane.b32.xlu2 %v520_v5, %s5947_s9  ;;  %v1371_v53 = vsel %vm1365_vm6, %v1338_v41, %v6347_v30  ;;  %v121_v41 = vld [vmem:[%s7978_s2 + $0x64] sm:$0x1] }
  0xbb   :  { %466 = vrot.lane.b32.xlu1 %v405_v63, %s5946_s30  ;;  %v937_v63 = vunpack.c.l.b16 %v5038_v56  ;;  %v682_v56 = vpack.c.b16 %v666_v43, %v506_v45 }
  0xbc   :  { %v6402_v18 = vpop.permute.xlu2 %458 }
  0xbd   :  { %v807_v12 = vpop.permute.xlu1 %806  ;;  %v953_v13 = vpack.c.b16 %v937_v63, %v937_v63 }
  0xbe   :  { %546 = vrot.lane.b32.xlu0 %v521_v8, %s5947_s9  ;;  %v1340_v50 = vsel %vm1332_vm5, %v1307_v48, %v807_v12  ;;  %v89_v48 = vld [vmem:[%s7978_s2 + $0x60] sm:$0xf] }
  0xbf   :  { %v507_v55 = vunpack.c.l.b16 %v89_v48 }
  0xc0   :  { %v887_v26 = vpop.permute.xlu0 %886 }
  0xc1   :  { %v1373_v54 = vsel %vm1365_vm6, %v1340_v50, %v887_v26  ;;  %v5108_v26 = vor.u32 %v5744_v16, %v5107_v15 }
  0xc2   :  { %626 = vrot.lane.b32.xlu2 %v601_v28, %s5948_s12  ;;  %v1406_v62 = vsel %vm1398_vm7, %v1373_v54, %v6368_v60  ;;  %v5103_v60 = vld [vmem:[%s7976_s0 + $0x58] sm:$0xf]  ;;  %v1109_v28 = vor.u32 %v1108_v2, %v1104_v17  ;;  %v522_v54 = vpack.c.b16 %v506_v45, %v506_v45 }
  0xc3   :  { %624 = vrot.lane.b32.xlu1 %v600_v49, %s5948_s12  ;;  %v1102_v49 = vor.u32 %v1101_v6, %v1097_v1  ;;  %v5104_v20 = vor.u32 %v5743_v10, %v5103_v60  ;;  %v416_v36 = vshll.u32 %v5108_v26, 16  ;;  %v414_v40 = vshrl.u32 %v5108_v26, 16 }
  0xc4   :  { %v6435_v47 = vpop.permute.xlu2 %616 }
  0xc5   :  { %v965_v39 = vpop.permute.xlu1 %964  ;;  %v409_v32 = vshll.u32 %v5104_v20, 16  ;;  %v407_v21 = vshrl.u32 %v5104_v20, 16  ;;  %v5056_v20 = vld [vmem:[%s7976_s0 + $0x6c] sm:$0x1] }
  0xc6   :  { %816 = vrot.lane.b32.xlu0 %v750_v34, %s5949_s22  ;;  %v1404_v57 = vsel %vm1398_vm7, %v1371_v53, %v965_v39  ;;  %v104_v53 = vld [vmem:[%s7977_s3 + $0x58] sm:$0xf] }
  0xc7   :  { %v411_v19 = vrot.slane %v409_v32, 1  ;;  %v586_v59 = vunpack.c.l.b16 %v104_v53 }
  0xc8   :  { %v1157_v51 = vpop.permute.xlu0 %1156 }
  0xc9   :  { %v1437_v61 = vsel %vm1431_vm8, %v1404_v57, %v1157_v51  ;;  %v412_v44 = vor.u32 %v411_v19, %v407_v21  ;;  %v105_v57 = vld [vmem:[%s7977_s3 + $0x60] sm:$0xf]  ;;  %v602_v6 = vpack.c.b16 %v586_v59, %v586_v59  ;;  %v1019_v21 = vunpack.c.l.b16 %v5056_v20 }
  0xca   :  { %896 = vrot.lane.b32.xlu2 %v872_v52, %s5950_s25  ;;  %v1491_v3 = vunpack.c.l.b16 %v1437_v61  ;;  %v667_v52 = vunpack.c.l.b16 %v121_v41  ;;  %v587_v63 = vunpack.c.l.b16 %v105_v57 }
  0xcb   :  { %818 = vrot.lane.b32.xlu1 %v757_v42, %s5949_s22  ;;  %v418_v42 = vrot.slane %v416_v36, 1  ;;  %v1035_v43 = vpack.c.b16 %v1019_v21, %v859_v38  ;;  %v1701_v21 = vld [vmem:[#allocation2 + $0xc] sm:$0x1] }
  0xcc   :  { %v6454_v8 = vpop.permute.xlu2 %810  ;;  %v683_v61 = vpack.c.b16 %v667_v52, %v507_v55  ;;  %v603_v10 = vpack.c.b16 %v587_v63, %v587_v63  ;;  %v58_v63 = vld [vmem:[%s7975_s1 + $0x68] sm:$0xf] }
  0xcd   :  { %v1159_v30 = vpop.permute.xlu1 %1158  ;;  %v419_v51 = vor.u32 %v418_v42, %v414_v40  ;;  %v5040_v42 = vld [vmem:[%s7975_s1 + $0x68] sm:$0xf]  ;;  %v1120_v57 = vshll.u32 %v1035_v43, 16 }
  0xce   :  { %v1439_v25 = vsel %vm1431_vm8, %v1406_v62, %v1159_v30  ;;  %898 = vrot.lane.b32.xlu0 %v873_v58, %s5950_s25  ;;  %v35_v58 = vld [vmem:[%s7976_s0 + $0x28] sm:$0xf]  ;;  %v34_v62 = vld [vmem:[%s7976_s0 + $0x20] sm:$0xf]  ;;  %v523_v30 = vpack.c.b16 %v507_v55, %v507_v55  ;;  %v768_v7 = vshll.u32 %v683_v61, 16  ;;  %v766_v17 = vshrl.u32 %v683_v61, 16 }
  0xcf   :  { %v1492_v5 = vunpack.c.l.b16 %v1439_v25  ;;  %v761_v25 = vshll.u32 %v682_v56, 16 }
  0xd0   :  { %v6462_v11 = vpop.permute.xlu0 %234  ;;  %v770_v2 = vrot.slane %v768_v7, 1 }
  0xd1   :  { %v1506_v12 = vpack.c.b16 %v1492_v5, %v1491_v3  ;;  %v1202_v1 = vsel %vm1184_vm0, %v35_v58, %v6462_v11  ;;  %v1199_v3 = vsel %vm1184_vm0, %v34_v62, %v6385_v0  ;;  %v5023_v11 = vld [vmem:[%s7976_s0 + $0x60] sm:$0xf]  ;;  %v5055_v0 = vld [vmem:[%s7976_s0 + $0x64] sm:$0x1]  ;;  %v5111_v58 = vld [vmem:[%s7976_s0 + $0x68] sm:$0xf] }
  0xd2   :  { %978 = vrot.lane.b32.xlu2 %v953_v13, %s5951_s10  ;;  %v1245_v60 = vsel %vm1233_vm2, %v1202_v1, %v6402_v18  ;;  %v763_v13 = vrot.slane %v761_v25, 1  ;;  %v5115_v25 = vld [vmem:[%s7976_s0 + $0x70] sm:$0xf]  ;;  %v5746_v1 = vld [vmem:[%s7976_s0 + $0x70] sm:$0x10] }
  0xd3   :  { %976 = vrot.lane.b32.xlu1 %v952_v9, %s5951_s10  ;;  %5134 = vmatmul.msk.bf16.gmra.mxu0 %vm1528_vm9, %v1506_v12  ;;  %v759_v12 = vshrl.u32 %v682_v56, 16 }
  0xd4   :  { %v6480_v33 = vpop.permute.xlu2 %968 }
  0xd5   :  { %v457_v23 = vpop.permute.xlu1 %456  ;;  %v764_v22 = vor.u32 %v763_v13, %v759_v12  ;;  %v5116_v12 = vor.u32 %v5746_v1, %v5115_v25 }
  0xd6   :  { %1168 = vrot.lane.b32.xlu0 %v1102_v49, %s5952_s20  ;;  %v1243_v14 = vsel %vm1233_vm2, %v1199_v3, %v457_v23  ;;  %v858_v23 = vunpack.c.l.b16 %v5023_v11 }
  0xd8   :  { %v537_v34 = vpop.permute.xlu0 %536 }
  0xd9   :  { %v1276_v16 = vsel %vm1266_vm3, %v1243_v14, %v537_v34  ;;  %v5765_v14 = vld [vmem:[%s7981_s6 + $0x30] sm:$0xff] }
  0xda   :  { %244 = vrot.lane.b32.xlu2 %v218_v27, %s5945_s21  ;;  %v1309_v29 = vsel %vm1299_vm4, %v1276_v16, %v6435_v47  ;;  %v874_v47 = vpack.c.b16 %v858_v23, %v858_v23 }
  0xdb   :  { %1170 = vrot.lane.b32.xlu1 %v1109_v28, %s5952_s20  ;;  %v1018_v28 = vunpack.c.l.b16 %v5055_v0 }
  0xdc   :  { %v6494_v46 = vpop.permute.xlu2 %1162 }
  0xdd   :  { %v539_v39 = vpop.permute.xlu1 %538 }
  0xde   :  { %246 = vrot.lane.b32.xlu0 %v219_v37, %s5945_s21  ;;  %v1278_v15 = vsel %vm1266_vm3, %v1245_v60, %v539_v39  ;;  %v771_v37 = vor.u32 %v770_v2, %v766_v17  ;;  %v5039_v39 = vld [vmem:[%s7975_s1 + $0x60] sm:$0xf]  ;;  %v430_v17 = vshll.u32 %v5116_v12, 16  ;;  %v5764_v2 = vld [vmem:[%s7981_s6 + $0x28] sm:$0xff] }
  0xdf   :  { %v938_v45 = vunpack.c.l.b16 %v5039_v39  ;;  %v5763_v39 = vld [vmem:[%s7981_s6 + $0x20] sm:$0xff] }
  0xe0   :  { %v619_v50 = vpop.permute.xlu0 %618 }
  0xe1   :  { %v1311_v18 = vsel %vm1299_vm4, %v1278_v15, %v619_v50  ;;  %v875_v50 = vpack.c.b16 %v859_v38, %v859_v38  ;;  %v59_v15 = vld [vmem:[%s7975_s1 + $0x70] sm:$0xf] }
  0xe2   :  { %470 = vrot.lane.b32.xlu2 %v419_v51, %s5946_s30  ;;  %v1344_v32 = vsel %vm1332_vm5, %v1311_v18, %v6454_v8  ;;  %v1034_v8 = vpack.c.b16 %v1018_v28, %v858_v23  ;;  %v123_v23 = vld [vmem:[%s7978_s2 + $0x74] sm:$0x1] }
  0xe3   :  { %468 = vrot.lane.b32.xlu1 %v412_v44, %s5946_s30 }
  0xe4   :  { %v6514_v9 = vpop.permute.xlu2 %460  ;;  %v1113_v53 = vshll.u32 %v1034_v8, 16  ;;  %v1111_v61 = vshrl.u32 %v1034_v8, 16 }
  0xe5   :  { %v809_v4 = vpop.permute.xlu1 %808 }
  0xe6   :  { %548 = vrot.lane.b32.xlu0 %v522_v54, %s5947_s9  ;;  %v1342_v34 = vsel %vm1332_vm5, %v1309_v29, %v809_v4  ;;  %v5745_v4 = vld [vmem:[%s7976_s0 + $0x68] sm:$0x10]  ;;  %v1115_v62 = vrot.slane %v1113_v53, 1 }
  0xe7   :  { %v5112_v7 = vor.u32 %v5745_v4, %v5111_v58  ;;  %v36_v58 = vld [vmem:[%s7976_s0 + $0x30] sm:$0xf] }
  0xe8   :  { %v889_v5 = vpop.permute.xlu0 %888  ;;  %v1116_v60 = vor.u32 %v1115_v62, %v1111_v61  ;;  %v107_v4 = vld [vmem:[%s7977_s3 + $0x70] sm:$0xf] }
  0xe9   :  { %v1375_v19 = vsel %vm1365_vm6, %v1342_v34, %v889_v5  ;;  %v1118_v5 = vshrl.u32 %v1035_v43, 16  ;;  %v423_v16 = vshll.u32 %v5112_v7, 16  ;;  %v421_v24 = vshrl.u32 %v5112_v7, 16 }
  0xea   :  { %628 = vrot.lane.b32.xlu2 %v602_v6, %s5948_s12  ;;  %v1408_v41 = vsel %vm1398_vm7, %v1375_v19, %v6480_v33  ;;  %v954_v33 = vpack.c.b16 %v938_v45, %v938_v45  ;;  %v1122_v6 = vrot.slane %v1120_v57, 1  ;;  %v432_v34 = vrot.slane %v430_v17, 1  ;;  %v90_v19 = vld [vmem:[%s7978_s2 + $0x68] sm:$0xf] }
  0xeb   :  { %550 = vrot.lane.b32.xlu1 %v523_v30, %s5947_s9  ;;  %v5766_v30 = vld [vmem:[%s7981_s6 + $0x38] sm:$0xff]  ;;  %v425_v28 = vrot.slane %v423_v16, 1  ;;  %v508_v43 = vunpack.c.l.b16 %v90_v19  ;;  %v5953_v16 = vmov 0  }
  0xec   :  { %v6541_v26 = vpop.permute.xlu2 %542  ;;  %2507 = vmatpush.bf16.msra.mxu1 %v5766_v30  ;;  %5902 = vmatpush.bf16.msra.mxu3 %v5766_v30  ;;  %v1123_v0 = vor.u32 %v1122_v6, %v1118_v5  ;;  %v5761_v6 = vld [vmem:[%s7981_s6 + $0x10] sm:$0xff]  ;;  %1638 = vst [vmem:[#allocation2] sm:$0xf] %v5953_v16 }
  0xed   :  { %v891_v49 = vpop.permute.xlu1 %890  ;;  %v426_v8 = vor.u32 %v425_v28, %v421_v24  ;;  %1639 = vst [vmem:[#allocation2 + $0x4] sm:$0x1] %v5953_v16 }
  0xee   :  { %630 = vrot.lane.b32.xlu0 %v603_v10, %s5948_s12  ;;  %v1377_v27 = vsel %vm1365_vm6, %v1344_v32, %v891_v49  ;;  %v204_v10 = vunpack.c.l.b16 %v58_v63  ;;  %v205_v49 = vunpack.c.l.b16 %v59_v15  ;;  %v428_v32 = vshrl.u32 %v5116_v12, 16  ;;  %v1704_v63 = vld [vmem:[#allocation2 + $0x14] sm:$0x1]  ;;  %v37_v12 = vld [vmem:[%s7976_s0 + $0x38] sm:$0xf] }
  0xef   :  { %v1705_v5 = vsel %vm6631_vm14, 0, %v1704_v63  ;;  %1640 = vst [vmem:[#allocation2 + $0x50] sm:$0xf] %v5953_v16 }
  0xf0   :  { %v971_v36 = vpop.permute.xlu0 %970  ;;  %2508 = vmatpush.bf16.msra.mxu1 %v5765_v14  ;;  %5903 = vmatpush.bf16.msra.mxu3 %v5765_v14  ;;  %v220_v18 = vpack.c.b16 %v204_v10, %v204_v10  ;;  %v221_v29 = vpack.c.b16 %v205_v49, %v205_v49  ;;  %v433_v45 = vor.u32 %v432_v34, %v428_v32  ;;  %v589_v10 = vunpack.c.l.b16 %v107_v4  ;;  %v5760_v14 = vld [vmem:[%s7981_s6 + $0x8] sm:$0xff]  ;;  %v5058_v32 = vld [vmem:[%s7976_s0 + $0x7c] sm:$0x1]  ;;  %v5759_v34 = vld [vmem:[%s7981_s6] sm:$0xff] }
  0xf1   :  { %v1410_v35 = vsel %vm1398_vm7, %v1377_v27, %v971_v36  ;;  %1706 = vst [vmem:[#allocation2 + $0x14] sm:$0x1] %v1705_v5  ;;  %v6740_v4 = vld [vmem:[%s7980_s5] ss:$0 sm:$0xff]  ;;  %v5119_v5 = vld [vmem:[%s7976_s0 + $0x78] sm:$0xf] }
  0xf2   :  { %v1443_v40 = vsel %vm1431_vm8, %v1410_v35, %v6494_v46  ;;  %822 = vrot.lane.b32.xlu2 %v771_v37, %s5949_s22  ;;  %v939_v46 = vunpack.c.l.b16 %v5040_v42  ;;  %v1651_v37 = vld [vmem:[#allocation2 + $0x8] sm:$0x1]  ;;  %v605_v24 = vpack.c.b16 %v589_v10, %v589_v10  ;;  %1641 = vst [vmem:[#allocation2 + $0x54] sm:$0x1] %v5953_v16 }
  0xf3   :  { %820 = vrot.lane.b32.xlu1 %v764_v22, %s5949_s22  ;;  %v1494_v51 = vunpack.c.l.b16 %v1443_v40  ;;  %v91_v22 = vld [vmem:[%s7978_s2 + $0x70] sm:$0xf]  ;;  %v1652_v35 = vsel %vm6620_vm13, 0, %v1651_v37  ;;  %v1702_v40 = vsel %vm6631_vm14, 0, %v1701_v21  ;;  %1643 = vst [vmem:[#allocation2 + $0x48] sm:$0xf] %v5953_v16 }
  0xf4   :  { %v6565_v54 = vpop.permute.xlu2 %812  ;;  %v955_v59 = vpack.c.b16 %v939_v46, %v939_v46  ;;  %2509 = vmatpush.bf16.msra.mxu1 %v5764_v2  ;;  %5904 = vmatpush.bf16.msra.mxu3 %v5764_v2  ;;  %1653 = vst [vmem:[#allocation2 + $0x8] sm:$0x1] %v1652_v35  ;;  %v509_v42 = vunpack.c.l.b16 %v91_v22  ;;  %v5057_v2 = vld [vmem:[%s7976_s0 + $0x74] sm:$0x1] }
  0xf5   :  { %v1161_v44 = vpop.permute.xlu1 %1160  ;;  %1703 = vst [vmem:[#allocation2 + $0xc] sm:$0x1] %v1702_v40  ;;  %v1020_v19 = vunpack.c.l.b16 %v5057_v2  ;;  %v5123_v2 = vld [vmem:[%s7976_s0 + $0x80] sm:$0xf] }
  0xf6   :  { %v1441_v48 = vsel %vm1431_vm8, %v1408_v41, %v1161_v44  ;;  %900 = vrot.lane.b32.xlu0 %v874_v47, %s5950_s25  ;;  %v669_v41 = vunpack.c.l.b16 %v123_v23  ;;  %v122_v44 = vld [vmem:[%s7978_s2 + $0x6c] sm:$0x1]  ;;  %v525_v62 = vpack.c.b16 %v509_v42, %v509_v42  ;;  %1644 = vst [vmem:[#allocation2 + $0x4c] sm:$0x1] %v5953_v16 }
  0xf7   :  { %v1493_v52 = vunpack.c.l.b16 %v1441_v48  ;;  %v668_v48 = vunpack.c.l.b16 %v122_v44  ;;  %1645 = vst [vmem:[#allocation2 + $0x98] sm:$0xf] %v5953_v16 }
  0xf8   :  { %v6567_v55 = vpop.permute.xlu0 %236  ;;  %2510 = vmatpush.bf16.msra.mxu1 %v5763_v39  ;;  %5905 = vmatpush.bf16.msra.mxu3 %v5763_v39  ;;  %v685_v53 = vpack.c.b16 %v669_v41, %v509_v42  ;;  %v1021_v42 = vunpack.c.l.b16 %v5058_v32  ;;  %1646 = vst [vmem:[#allocation2 + $0x9c] sm:$0x1] %v5953_v16 }
  0xf9   :  { %v1507_v56 = vpack.c.b16 %v1494_v51, %v1493_v52  ;;  %v5762_v51 = vld [vmem:[%s7981_s6 + $0x18] sm:$0xff]  ;;  %v684_v46 = vpack.c.b16 %v668_v48, %v508_v43  ;;  %v1205_v7 = vsel %vm1184_vm0, %v36_v58, %v6567_v55 }
  0xfa   :  { %980 = vrot.lane.b32.xlu2 %v954_v33, %s5951_s10  ;;  %v782_v1 = vshll.u32 %v685_v53, 16  ;;  %v780_v49 = vshrl.u32 %v685_v53, 16 }
  0xfb   :  { %902 = vrot.lane.b32.xlu1 %v875_v50, %s5950_s25  ;;  %5135 = vmatmul.msk.bf16.gmra.mxu0 %vm1528_vm9, %v1507_v56  ;;  %v106_v50 = vld [vmem:[%s7977_s3 + $0x68] sm:$0xf]  ;;  %v524_v56 = vpack.c.b16 %v508_v43, %v508_v43  ;;  %v775_v25 = vshll.u32 %v684_v46, 16 }
  0xfc   :  { %v6593_v13 = vpop.permute.xlu2 %894  ;;  %2511 = vmatpush.bf16.msra.mxu1 %v5762_v51  ;;  %5906 = vmatpush.bf16.msra.mxu3 %v5762_v51  ;;  %v588_v33 = vunpack.c.l.b16 %v106_v50  ;;  %v784_v17 = vrot.slane %v782_v1, 1 }
  0xfd   :  { %v6589_v3 = vpop.permute.xlu1 %238  ;;  %v777_v55 = vrot.slane %v775_v25, 1 }
  0xfe   :  { %982 = vrot.lane.b32.xlu0 %v955_v59, %s5951_s10  ;;  %v1654_v59 = vld [vmem:[#allocation2 + $0x10] sm:$0x1]  ;;  %v1208_v22 = vsel %vm1184_vm0, %v37_v12, %v6589_v3  ;;  %v785_v35 = vor.u32 %v784_v17, %v780_v49 }
  0xff   :  { %v1655_v30 = vsel %vm6620_vm13, 0, %v1654_v59 }
 0x100   :  { %v6601_v11 = vpop.permute.xlu0 %462  ;;  %1656 = vst [vmem:[#allocation2 + $0x10] sm:$0x1] %v1655_v30  ;;  %2512 = vmatpush.bf16.msra.mxu1 %v5761_v6  ;;  %5907 = vmatpush.bf16.msra.mxu3 %v5761_v6  ;;  %v5747_v6 = vld [vmem:[%s7976_s0 + $0x78] sm:$0x10] }
 0x101   :  { %v1249_v3 = vsel %vm1233_vm2, %v1208_v22, %v6601_v11  ;;  %v5120_v49 = vor.u32 %v5747_v6, %v5119_v5  ;;  %v5748_v22 = vld [vmem:[%s7976_s0 + $0x80] sm:$0x10]  ;;  %v1657_v5 = vld [vmem:[#allocation2 + $0x18] sm:$0x1]  ;;  %v1707_v6 = vld [vmem:[#allocation2 + $0x1c] sm:$0x1] }
 0x102   :  { %1174 = vrot.lane.b32.xlu2 %v1123_v0, %s5952_s20  ;;  %v773_v0 = vshrl.u32 %v684_v46, 16  ;;  %v1282_v39 = vsel %vm1266_vm3, %v1249_v3, %v6541_v26  ;;  %v5124_v3 = vor.u32 %v5748_v22, %v5123_v2  ;;  %v5143_v22 = vld [vmem:[#allocation2] sm:$0xf] }
 0x103   :  { %1172 = vrot.lane.b32.xlu1 %v1116_v60, %s5952_s20  ;;  %v604_v60 = vpack.c.b16 %v588_v33, %v588_v33 }
 0x104   :  { %v6617_v27 = vpop.permute.xlu2 %1164  ;;  %2513 = vmatpush.bf16.msra.mxu1 %v5760_v14  ;;  %5908 = vmatpush.bf16.msra.mxu3 %v5760_v14  ;;  %v778_v21 = vor.u32 %v777_v55, %v773_v0  ;;  %v60_v0 = vld [vmem:[%s7975_s1 + $0x78] sm:$0xf] }
 0x105   :  { %v6607_v20 = vpop.permute.xlu1 %540 }
 0x106   :  { %248 = vrot.lane.b32.xlu0 %v220_v18, %s5945_s21  ;;  %v1247_v18 = vsel %vm1233_vm2, %v1205_v7, %v6514_v9  ;;  %v5025_v9 = vld [vmem:[%s7976_s0 + $0x70] sm:$0xf] }
 0x107   :  { %v1280_v23 = vsel %vm1266_vm3, %v1247_v18, %v6607_v20  ;;  %v860_v11 = vunpack.c.l.b16 %v5025_v9 }
 0x108   :  { %v6638_v47 = vpop.permute.xlu0 %620  ;;  %2514 = vmatpush.bf16.msra.mxu1 %v5759_v34  ;;  %5909 = vmatpush.bf16.msra.mxu3 %v5759_v34 }
 0x109   :  { %v1313_v20 = vsel %vm1299_vm4, %v1280_v23, %v6638_v47  ;;  %v1036_v43 = vpack.c.b16 %v1020_v19, %v860_v11  ;;  %v876_v50 = vpack.c.b16 %v860_v11, %v860_v11 }
 0x10a   :  { %472 = vrot.lane.b32.xlu2 %v426_v8, %s5946_s30  ;;  %v1346_v47 = vsel %vm1332_vm5, %v1313_v20, %v6565_v54  ;;  %v5041_v8 = vld [vmem:[%s7975_s1 + $0x70] sm:$0xf]  ;;  %v61_v20 = vld [vmem:[%s7975_s1 + $0x80] sm:$0xf] }
 0x10b   :  { %250 = vrot.lane.b32.xlu1 %v221_v29, %s5945_s21  ;;  %v5026_v29 = vld [vmem:[%s7976_s0 + $0x78] sm:$0xf]  ;;  %v940_v48 = vunpack.c.l.b16 %v5041_v8  ;;  %v1125_v12 = vshrl.u32 %v1036_v43, 16 }
 0x10c   :  { %v6656_v57 = vpop.permute.xlu2 %242  ;;  %v861_v40 = vunpack.c.l.b16 %v5026_v29  ;;  %v206_v29 = vunpack.c.l.b16 %v60_v0  ;;  %v1917_v0 = vld [vmem:[#allocation2 + $0x10] sm:$0xf] }
 0x10d   :  { %v6652_v52 = vpop.permute.xlu1 %622 }
 0x10e   :  { %474 = vrot.lane.b32.xlu0 %v433_v45, %s5946_s30  ;;  %v1315_v41 = vsel %vm1299_vm4, %v1282_v39, %v6652_v52  ;;  %v1037_v51 = vpack.c.b16 %v1021_v42, %v861_v40  ;;  %v877_v59 = vpack.c.b16 %v861_v40, %v861_v40  ;;  %v1911_v40 = vld [vmem:[#allocation2 + $0x8] sm:$0xf]  ;;  %v1914_v42 = vld [vmem:[#allocation2 + $0xc] sm:$0x1] }
 0x110   :  { %v6664_v61 = vpop.permute.xlu0 %814  ;;  %v1134_v25 = vshll.u32 %v1037_v51, 16 }
 0x111   :  { %v1348_v26 = vsel %vm1332_vm5, %v1315_v41, %v6664_v61  ;;  %v1127_v61 = vshll.u32 %v1036_v43, 16  ;;  %v222_v41 = vpack.c.b16 %v206_v29, %v206_v29 }
 0x112   :  { %554 = vrot.lane.b32.xlu2 %v525_v62, %s5947_s9  ;;  %v1381_v46 = vsel %vm1365_vm6, %v1348_v26, %v6593_v13  ;;  %v956_v13 = vpack.c.b16 %v940_v48, %v940_v48  ;;  %v1136_v18 = vrot.slane %v1134_v25, 1  ;;  %v444_v26 = vshll.u32 %v5124_v3, 16 }
 0x113   :  { %552 = vrot.lane.b32.xlu1 %v524_v56, %s5947_s9  ;;  %v5042_v56 = vld [vmem:[%s7975_s1 + $0x78] sm:$0xf]  ;;  %v1129_v14 = vrot.slane %v1127_v61, 1  ;;  %v442_v61 = vshrl.u32 %v5124_v3, 16 }
 0x114   :  { %v6696_v28 = vpop.permute.xlu2 %544  ;;  %v108_v3 = vld [vmem:[%s7977_s3 + $0x78] sm:$0xf] }
 0x115   :  { %v893_v15 = vpop.permute.xlu1 %892  ;;  %v1130_v9 = vor.u32 %v1129_v14, %v1125_v12  ;;  %v1658_v14 = vsel %vm6620_vm13, 0, %v1657_v5 }
 0x116   :  { %632 = vrot.lane.b32.xlu0 %v604_v60, %s5948_s12  ;;  %v1379_v44 = vsel %vm1365_vm6, %v1346_v47, %v893_v15  ;;  %v1132_v15 = vshrl.u32 %v1037_v51, 16  ;;  %v207_v47 = vunpack.c.l.b16 %v61_v20  ;;  %v92_v51 = vld [vmem:[%s7978_s2 + $0x78] sm:$0xf]  ;;  %1659 = vst [vmem:[#allocation2 + $0x18] sm:$0x1] %v1658_v14 }
 0x117   :  { %v5774_v20 = vld [vmem:[%s7981_s6 + $0x78] sm:$0xff] }
 0x118   :  { %v973_v37 = vpop.permute.xlu0 %972  ;;  %v1137_v34 = vor.u32 %v1136_v18, %v1132_v15  ;;  %v1708_v15 = vsel %vm6631_vm14, 0, %v1707_v6  ;;  %2556 = vmatpush.bf16.msrb.mxu1 %v5774_v20  ;;  %5910 = vmatpush.bf16.msra.mxu2 %v5774_v20 }
 0x119   :  { %v1412_v54 = vsel %vm1398_vm7, %v1379_v44, %v973_v37  ;;  %v437_v37 = vshll.u32 %v5120_v49, 16  ;;  %v435_v44 = vshrl.u32 %v5120_v49, 16  ;;  %1709 = vst [vmem:[#allocation2 + $0x1c] sm:$0x1] %v1708_v15 }
 0x11a   :  { %824 = vrot.lane.b32.xlu2 %v778_v21, %s5949_s22  ;;  %v1445_v53 = vsel %vm1431_vm8, %v1412_v54, %v6617_v27  ;;  %v941_v27 = vunpack.c.l.b16 %v5042_v56 }
 0x11b   :  { %634 = vrot.lane.b32.xlu1 %v605_v24, %s5948_s12  ;;  %v1495_v30 = vunpack.c.l.b16 %v1445_v53  ;;  %v439_v48 = vrot.slane %v437_v37, 1 }
 0x11c   :  { %v6727_v52 = vpop.permute.xlu2 %626  ;;  %v957_v16 = vpack.c.b16 %v941_v27, %v941_v27  ;;  %v510_v27 = vunpack.c.l.b16 %v92_v51 }
 0x11d   :  { %v975_v45 = vpop.permute.xlu1 %974 }
 0x11e   :  { %826 = vrot.lane.b32.xlu0 %v785_v35, %s5949_s22  ;;  %v1414_v33 = vsel %vm1398_vm7, %v1381_v46, %v975_v45  ;;  %v124_v46 = vld [vmem:[%s7978_s2 + $0x7c] sm:$0x1] }
 0x11f   :  { %v670_v25 = vunpack.c.l.b16 %v124_v46 }
 0x120   :  { %v1167_v58 = vpop.permute.xlu0 %1166 }
 0x121   :  { %v1447_v62 = vsel %vm1431_vm8, %v1414_v33, %v1167_v58 }
 0x122   :  { %v1496_v63 = vunpack.c.l.b16 %v1447_v62  ;;  %906 = vrot.lane.b32.xlu2 %v877_v59, %s5950_s25  ;;  %v223_v59 = vpack.c.b16 %v207_v47, %v207_v47  ;;  %v446_v62 = vrot.slane %v444_v26, 1  ;;  %v1710_v26 = vld [vmem:[#allocation2 + $0x24] sm:$0x1] }
 0x123   :  { %904 = vrot.lane.b32.xlu1 %v876_v50, %s5950_s25  ;;  %v1566_v1 = vpop.f32.mrf.mxu0 }
 0x124   :  { %v1567_v7 = vadd.f32 %v6740_v4, %v1566_v1  ;;  %v1508_v10 = vpack.c.b16 %v1496_v63, %v1495_v30  ;;  %v6759_v17 = vpop.permute.xlu2 %896  ;;  %v440_v30 = vor.u32 %v439_v48, %v435_v44  ;;  %v93_v63 = vld [vmem:[%s7978_s2 + $0x80] sm:$0xf]  ;;  %v125_v1 = vld [vmem:[%s7978_s2 + $0x84] sm:$0x1] }
 0x125   :  { %v6751_v60 = vpop.permute.xlu1 %240  ;;  %v511_v18 = vunpack.c.l.b16 %v93_v63  ;;  %v671_v29 = vunpack.c.l.b16 %v125_v1  ;;  %v1660_v44 = vld [vmem:[#allocation2 + $0x20] sm:$0x1] }
 0x126   :  { %v1606_v55 = vmax.f32 %v1567_v7, 0.0  ;;  %984 = vrot.lane.b32.xlu0 %v956_v13, %s5951_s10  ;;  %5136 = vmatmul.msk.bf16.gmra.mxu0 %vm1528_vm9, %v1508_v10  ;;  %v1661_v46 = vsel %vm6620_vm13, 0, %v1660_v44 }
 0x127   :  { %v527_v47 = vpack.c.b16 %v511_v18, %v511_v18  ;;  %1662 = vst [vmem:[#allocation2 + $0x20] sm:$0x1] %v1661_v46 }
 0x128   :  { %v1622_v23 = vpack.c.bf16 %v1606_v55, %v1606_v55  ;;  %v6767_v24 = vpop.permute.xlu0 %464  ;;  %v1920_v55 = vld [vmem:[#allocation2 + $0x14] sm:$0x1] }
 0x12a   :  { %v1750_v32 = vshrl.u32 %v1622_v23, 16  ;;  %v1753_v35 = vshll.u32 %v1622_v23, 16  ;;  %1176 = vrot.lane.b32.xlu2 %v1130_v9, %s5952_s20  ;;  %v686_v23 = vpack.c.b16 %v670_v25, %v510_v27 }
 0x12b   :  { %986 = vrot.lane.b32.xlu1 %v957_v16, %s5951_s10  ;;  %v1568_v21 = vpop.f32.mrf.mxu0  ;;  %v447_v16 = vor.u32 %v446_v62, %v442_v61 }
 0x12c   :  { %v1752_v19 = vrot.slane %v1750_v32, 7  ;;  %v1569_v11 = vadd.f32 %v6740_v4, %v1568_v21  ;;  %v6783_v50 = vpop.permute.xlu2 %978  ;;  %v787_v61 = vshrl.u32 %v686_v23, 16 }
 0x12d   :  { %v6774_v39 = vpop.permute.xlu1 %466 }
 0x12e   :  { %v1755_v54 = vor.u32 %v1753_v35, %v1752_v19  ;;  %v1756_v45 = vrot.slane %v1752_v19, 4  ;;  %v1607_v43 = vmax.f32 %v1569_v11, 0.0  ;;  %1178 = vrot.lane.b32.xlu0 %v1137_v34, %s5952_s20  ;;  %v526_v19 = vpack.c.b16 %v510_v27, %v510_v27  ;;  %v109_v11 = vld [vmem:[%s7977_s3 + $0x80] sm:$0xf]  ;;  %v5772_v27 = vld [vmem:[%s7981_s6 + $0x68] sm:$0xff] }
 0x12f   :  { %v591_v51 = vunpack.c.l.b16 %v109_v11 }
 0x130   :  { %v1912_v53 = vsel %vm6778_vm1, %v1755_v54, %v1911_v40  ;;  %v1915_v56 = vsel %vm6620_vm13, %v1756_v45, %v1914_v42  ;;  %v1623_v33 = vpack.c.bf16 %v1607_v43, %v1607_v43  ;;  %v6795_v58 = vpop.permute.xlu0 %546  ;;  %v590_v40 = vunpack.c.l.b16 %v108_v3  ;;  %v5773_v54 = vld [vmem:[%s7981_s6 + $0x70] sm:$0xff]  ;;  %v38_v43 = vld [vmem:[%s7976_s0 + $0x48] sm:$0xf] }
 0x131   :  { %1913 = vst [vmem:[#allocation2 + $0x8] sm:$0xf] %v1912_v53  ;;  %v789_v42 = vshll.u32 %v686_v23, 16  ;;  %v39_v45 = vld [vmem:[%s7976_s0 + $0x50] sm:$0xf]  ;;  %v1711_v53 = vsel %vm6631_vm14, 0, %v1710_v26  ;;  %2557 = vmatpush.bf16.msrb.mxu1 %v5773_v54  ;;  %5911 = vmatpush.bf16.msra.mxu2 %v5773_v54  ;;  %v1211_v25 = vsel %vm1184_vm0, %v38_v43, %v6751_v60 }
 0x132   :  { %1916 = vst [vmem:[#allocation2 + $0xc] sm:$0x1] %v1915_v56  ;;  %v1758_v13 = vshrl.u32 %v1623_v33, 16  ;;  %v1761_v10 = vshll.u32 %v1623_v33, 16  ;;  %254 = vrot.lane.b32.xlu2 %v223_v59, %s5945_s21  ;;  %v5027_v56 = vld [vmem:[%s7976_s0 + $0x80] sm:$0xf]  ;;  %v606_v59 = vpack.c.b16 %v590_v40, %v590_v40  ;;  %v1214_v63 = vsel %vm1184_vm0, %v39_v45, %v6656_v57 }
 0x133   :  { %252 = vrot.lane.b32.xlu1 %v222_v41, %s5945_s21  ;;  %v687_v41 = vpack.c.b16 %v671_v29, %v511_v18  ;;  %v5059_v33 = vld [vmem:[%s7976_s0 + $0x84] sm:$0x1]  ;;  %v791_v62 = vrot.slane %v789_v42, 1  ;;  %1712 = vst [vmem:[#allocation2 + $0x24] sm:$0x1] %v1711_v53  ;;  %v862_v5 = vunpack.c.l.b16 %v5027_v56 }
 0x134   :  { %v1760_v7 = vrot.slane %v1758_v13, 7  ;;  %v6812_v9 = vpop.permute.xlu2 %244  ;;  %v1022_v6 = vunpack.c.l.b16 %v5059_v33  ;;  %v5028_v60 = vld [vmem:[%s7976_s0 + $0x88] sm:$0xf] }
 0x135   :  { %v6804_v12 = vpop.permute.xlu1 %624  ;;  %v796_v13 = vshll.u32 %v687_v41, 16  ;;  %2558 = vmatpush.bf16.msrb.mxu1 %v5772_v27  ;;  %v792_v14 = vor.u32 %v791_v62, %v787_v61  ;;  %v794_v15 = vshrl.u32 %v687_v41, 16  ;;  %5912 = vmatpush.bf16.msra.mxu2 %v5772_v27  ;;  %v863_v29 = vunpack.c.l.b16 %v5028_v60  ;;  %v5044_v42 = vld [vmem:[%s7975_s1 + $0x88] sm:$0xf] }
 0x136   :  { %v1763_v49 = vor.u32 %v1761_v10, %v1760_v7  ;;  %v1764_v2 = vrot.slane %v1760_v7, 4  ;;  %476 = vrot.lane.b32.xlu0 %v440_v30, %s5946_s30  ;;  %v607_v7 = vpack.c.b16 %v591_v51, %v591_v51  ;;  %v1251_v10 = vsel %vm1233_vm2, %v1211_v25, %v6767_v24  ;;  %v5771_v24 = vld [vmem:[%s7981_s6 + $0x60] sm:$0xff]  ;;  %v5768_v27 = vld [vmem:[%s7981_s6 + $0x48] sm:$0xff] }
 0x137   :  { %v798_v57 = vrot.slane %v796_v13, 1  ;;  %v879_v54 = vpack.c.b16 %v863_v29, %v863_v29  ;;  %v943_v33 = vunpack.c.l.b16 %v5044_v42 }
 0x138   :  { %v1918_v32 = vsel %vm6778_vm1, %v1763_v49, %v1917_v0  ;;  %v1921_v34 = vsel %vm6620_vm13, %v1764_v2, %v1920_v55  ;;  %v6824_v37 = vpop.permute.xlu0 %816  ;;  %v5751_v21 = vld [vmem:[#allocation2 + $0x4] sm:$0xf0]  ;;  %v1253_v0 = vsel %vm1233_vm2, %v1214_v63, %v6774_v39  ;;  %v5060_v55 = vld [vmem:[%s7976_s0 + $0x8c] sm:$0x1]  ;;  %v5043_v39 = vld [vmem:[%s7975_s1 + $0x80] sm:$0xf]  ;;  %v6881_v2 = vpack.c.b16 %v1022_v6, %v862_v5 }
 0x139   :  { %1919 = vst [vmem:[#allocation2 + $0x10] sm:$0xf] %v1918_v32  ;;  %v5144_v35 = vor.u32 %v5751_v21, %v5143_v22  ;;  %v1286_v18 = vsel %vm1266_vm3, %v1253_v0, %v6795_v58  ;;  %2559 = vmatpush.bf16.msrb.mxu1 %v5771_v24  ;;  %v6886_v23 = vld [vmem:[#allocation2 + $0xc] sm:$0x1]  ;;  %v799_v58 = vor.u32 %v798_v57, %v794_v15  ;;  %v1023_v3 = vunpack.c.l.b16 %v5060_v55  ;;  %v3399_v11 = vld [vmem:[#allocation2 + $0x8] sm:$0xe] }
 0x13a   :  { %1922 = vst [vmem:[#allocation2 + $0x14] sm:$0x1] %v1921_v34  ;;  %556 = vrot.lane.b32.xlu2 %v526_v19, %s5947_s9  ;;  %5913 = vmatpush.bf16.msra.mxu2 %v5771_v24  ;;  %v1319_v20 = vsel %vm1299_vm4, %v1286_v18, %v6727_v52  ;;  %v942_v32 = vunpack.c.l.b16 %v5043_v39  ;;  %v1141_v19 = vshll.u32 %v6881_v2, 16  ;;  %v5381_v46 = vrot.slane %v3399_v11, 9  ;;  %v2041_v42 = vld [vmem:[#allocation2 + $0x8] sm:$0xf] }
 0x13b   :  { %478 = vrot.lane.b32.xlu1 %v447_v16, %s5946_s30  ;;  %2515 = vmatmul.bf16.vlgmr.msra.gmra.mxu1 %v5144_v35  ;;  %v1284_v16 = vsel %vm1266_vm3, %v1251_v10, %v6696_v28  ;;  %v878_v35 = vpack.c.b16 %v862_v5, %v862_v5  ;;  %v1039_v45 = vpack.c.b16 %v1023_v3, %v863_v29  ;;  %v1139_v13 = vshrl.u32 %v6881_v2, 16  ;;  %v5767_v2 = vld [vmem:[%s7981_s6 + $0x40] sm:$0xff] }
 0x13c   :  { %v6851_v30 = vpop.permute.xlu2 %470  ;;  %v1317_v22 = vsel %vm1299_vm4, %v1284_v16, %v6804_v12  ;;  %v5770_v12 = vld [vmem:[%s7981_s6 + $0x58] sm:$0xff]  ;;  %v958_v51 = vpack.c.b16 %v942_v32, %v942_v32  ;;  %v1143_v63 = vrot.slane %v1141_v19, 1  ;;  %v959_v60 = vpack.c.b16 %v943_v33, %v943_v33 }
 0x13d   :  { %v819_v48 = vpop.permute.xlu1 %818  ;;  %v1350_v28 = vsel %vm1332_vm5, %v1317_v22, %v6824_v37  ;;  %2560 = vmatpush.bf16.msrb.mxu1 %v5770_v12  ;;  %v1148_v5 = vshll.u32 %v1039_v45, 16  ;;  %v1923_v19 = vld [vmem:[#allocation2 + $0x18] sm:$0xf] }
 0x13e   :  { %558 = vrot.lane.b32.xlu0 %v527_v47, %s5947_s9  ;;  %v1352_v37 = vsel %vm1332_vm5, %v1319_v20, %v819_v48  ;;  %v3449_v47 = vrot.slane %v6886_v23, 5  ;;  %v1383_v52 = vsel %vm1365_vm6, %v1350_v28, %v6759_v17  ;;  %v5769_v17 = vld [vmem:[%s7981_s6 + $0x50] sm:$0xff]  ;;  %5914 = vmatpush.bf16.msra.mxu2 %v5770_v12  ;;  %v1144_v18 = vor.u32 %v1143_v63, %v1139_v13  ;;  %v5806_v20 = vld [vmem:[%s7981_s6 + $0x138] sm:$0xff]  ;;  %v5804_v63 = vld [vmem:[%s7981_s6 + $0x128] sm:$0xff] }
 0x13f   :  { %v1150_v39 = vrot.slane %v1148_v5, 1  ;;  %v2093_v13 = vshll.u32 %v2041_v42, 16  ;;  %v1932_v5 = vld [vmem:[#allocation2 + $0x24] sm:$0x1] }
 0x140   :  { %v899_v1 = vpop.permute.xlu0 %898  ;;  %v3400_v44 = vld [vmem:[#allocation2 + $0x10] sm:$0xe] }
 0x141   :  { %v1385_v40 = vsel %vm1365_vm6, %v1352_v37, %v899_v1  ;;  %v6907_v41 = vld [vmem:[#allocation2 + $0x14] sm:$0x1]  ;;  %2561 = vmatpush.bf16.msrb.mxu1 %v5769_v17 }
 0x142   :  { %638 = vrot.lane.b32.xlu2 %v607_v7, %s5948_s12  ;;  %v1418_v53 = vsel %vm1398_vm7, %v1385_v40, %v6783_v50  ;;  %v3453_v61 = vrot.slane %v6907_v41, 5  ;;  %v3450_v50 = vsel %vm6916_vm12, %v5381_v46, %v3449_v47  ;;  %5915 = vmatpush.bf16.msra.mxu2 %v5769_v17  ;;  %v2040_v40 = vld [vmem:[#allocation2] sm:$0xf] }
 0x143   :  { %636 = vrot.lane.b32.xlu1 %v606_v59, %s5948_s12  ;;  %v5382_v59 = vrot.slane %v3400_v44, 9  ;;  %v3543_v10 = vunpack.c.l.b16 %v3450_v50  ;;  %v2076_v33 = vshrl.u32 %v2040_v40, 16 }
 0x144   :  { %v6893_v34 = vpop.permute.xlu2 %628 }
 0x145   :  { %v977_v49 = vpop.permute.xlu1 %976  ;;  %v3454_v6 = vsel %vm6916_vm12, %v5382_v59, %v3453_v61  ;;  %2562 = vmatpush.bf16.msrb.mxu1 %v5768_v27  ;;  %v2079_v59 = vshll.u32 %v2040_v40, 16 }
 0x146   :  { %828 = vrot.lane.b32.xlu0 %v792_v14, %s5949_s22  ;;  %v1416_v26 = vsel %vm1398_vm7, %v1383_v52, %v977_v49  ;;  %v3544_v14 = vunpack.c.l.b16 %v3454_v6  ;;  %v1146_v49 = vshrl.u32 %v1039_v45, 16  ;;  %5916 = vmatpush.bf16.msra.mxu2 %v5768_v27  ;;  %v5805_v45 = vld [vmem:[%s7981_s6 + $0x130] sm:$0xff]  ;;  %v2056_v6 = vld [vmem:[#allocation2 + $0x4] sm:$0x1] }
 0x148   :  { %v1169_v21 = vpop.permute.xlu0 %1168  ;;  %v6940_v24 = vpack.c.b16 %v3544_v14, %v3543_v10  ;;  %v1151_v29 = vor.u32 %v1150_v39, %v1146_v49  ;;  %v2081_v10 = vrot.slane %v2079_v59, 5  ;;  %v41_v14 = vld [vmem:[%s7976_s0 + $0x60] sm:$0xf]  ;;  %v1666_v49 = vld [vmem:[#allocation2 + $0x30] sm:$0x1] }
 0x149   :  { %v1449_v48 = vsel %vm1431_vm8, %v1416_v26, %v1169_v21  ;;  %2563 = vmatpush.bf16.msrb.mxu1 %v5767_v2  ;;  %v1663_v26 = vld [vmem:[#allocation2 + $0x28] sm:$0x1]  ;;  %v1716_v39 = vld [vmem:[#allocation2 + $0x34] sm:$0x1] }
 0x14a   :  { %908 = vrot.lane.b32.xlu2 %v878_v35, %s5950_s25  ;;  %v1497_v25 = vunpack.c.l.b16 %v1449_v48  ;;  %5917 = vmatpush.bf16.msra.mxu2 %v5767_v2  ;;  %v1926_v35 = vld [vmem:[#allocation2 + $0x1c] sm:$0x1]  ;;  %v5803_v2 = vld [vmem:[%s7981_s6 + $0x120] sm:$0xff] }
 0x14b   :  { %830 = vrot.lane.b32.xlu1 %v799_v58, %s5949_s22 }
 0x14c   :  { %v6938_v55 = vpop.permute.xlu2 %822 }
 0x14d   :  { %v1171_v56 = vpop.permute.xlu1 %1170  ;;  %3704 = vmatpush.bf16.msra.mxu1 %v5806_v20 }
 0x14e   :  { %v1451_v62 = vsel %vm1431_vm8, %v1418_v53, %v1171_v56  ;;  %910 = vrot.lane.b32.xlu0 %v879_v54, %s5950_s25  ;;  %v1713_v54 = vld [vmem:[#allocation2 + $0x2c] sm:$0x1]  ;;  %v1664_v53 = vsel %vm6620_vm13, 0, %v1663_v26 }
 0x14f   :  { %v1498_v1 = vunpack.c.l.b16 %v1451_v62  ;;  %v1714_v56 = vsel %vm6631_vm14, 0, %v1713_v54  ;;  %v2090_v62 = vshrl.u32 %v2041_v42, 16  ;;  %1665 = vst [vmem:[#allocation2 + $0x28] sm:$0x1] %v1664_v53 }
 0x150   :  { %v1571_v7 = vpop.f32.mrf.mxu0  ;;  %v6936_v57 = vpop.permute.xlu0 %246  ;;  %1715 = vst [vmem:[#allocation2 + $0x2c] sm:$0x1] %v1714_v56 }
 0x151   :  { %v1572_v15 = vadd.f32 %v6740_v4, %v1571_v7  ;;  %v1509_v0 = vpack.c.b16 %v1498_v1, %v1497_v25  ;;  %3705 = vmatpush.bf16.msra.mxu1 %v5805_v45  ;;  %v1929_v1 = vld [vmem:[#allocation2 + $0x20] sm:$0xf]  ;;  %v2078_v7 = vrot.slane %v2076_v33, 4  ;;  %v1220_v40 = vsel %vm1184_vm0, %v41_v14, %v6936_v57  ;;  %v5802_v45 = vld [vmem:[%s7981_s6 + $0x118] sm:$0xff] }
 0x152   :  { %990 = vrot.lane.b32.xlu2 %v959_v60, %s5951_s10  ;;  %v2092_v60 = vrot.slane %v2090_v62, 4 }
 0x153   :  { %v1608_v16 = vmax.f32 %v1572_v15, 0.0  ;;  %988 = vrot.lane.b32.xlu1 %v958_v51, %s5951_s10  ;;  %5137 = vmatmul.msk.bf16.gmra.mxu0 %vm1528_vm9, %v1509_v0 }
 0x154   :  { %v6958_v44 = vpop.permute.xlu2 %980 }
 0x155   :  { %v1624_v22 = vpack.c.bf16 %v1608_v16, %v1608_v16  ;;  %v6947_v28 = vpop.permute.xlu1 %468  ;;  %3706 = vmatpush.bf16.msra.mxu1 %v5804_v63  ;;  %v2095_v16 = vrot.slane %v2093_v13, 5  ;;  %v2042_v13 = vld [vmem:[#allocation2 + $0x10] sm:$0xf] }
 0x156   :  { %1180 = vrot.lane.b32.xlu0 %v1144_v18, %s5952_s20  ;;  %v40_v18 = vld [vmem:[%s7976_s0 + $0x58] sm:$0xf] }
 0x157   :  { %v1766_v58 = vshrl.u32 %v1624_v22, 16  ;;  %v1769_v12 = vshll.u32 %v1624_v22, 16  ;;  %v1217_v42 = vsel %vm1184_vm0, %v40_v18, %v6812_v9 }
 0x158   :  { %v1573_v3 = vpop.f32.mrf.mxu0  ;;  %v6955_v21 = vpop.permute.xlu0 %548  ;;  %v1255_v53 = vsel %vm1233_vm2, %v1217_v42, %v6947_v28 }
 0x159   :  { %v1768_v32 = vrot.slane %v1766_v58, 7  ;;  %v1574_v37 = vadd.f32 %v6740_v4, %v1573_v3  ;;  %v5147_v3 = vld [vmem:[#allocation2 + $0x10] sm:$0xf]  ;;  %3707 = vmatpush.bf16.msra.mxu1 %v5803_v2  ;;  %v1288_v59 = vsel %vm1266_vm3, %v1255_v53, %v6955_v21 }
 0x15b   :  { %v1771_v11 = vor.u32 %v1769_v12, %v1768_v32  ;;  %v1772_v47 = vrot.slane %v1768_v32, 4  ;;  %v1609_v52 = vmax.f32 %v1574_v37, 0.0  ;;  %1182 = vrot.lane.b32.xlu1 %v1151_v29, %s5952_s20  ;;  %v1667_v32 = vsel %vm6620_vm13, 0, %v1666_v49 }
 0x15c   :  { %v1175_v37 = vpop.permute.xlu2 %1174  ;;  %1668 = vst [vmem:[#allocation2 + $0x30] sm:$0x1] %v1667_v32 }
 0x15d   :  { %v1924_v17 = vsel %vm6778_vm1, %v1771_v11, %v1923_v19  ;;  %v1927_v48 = vsel %vm6620_vm13, %v1772_v47, %v1926_v35  ;;  %v1625_v51 = vpack.c.bf16 %v1609_v52, %v1609_v52  ;;  %v6967_v46 = vpop.permute.xlu1 %550  ;;  %v2057_v19 = vld [vmem:[#allocation2 + $0xc] sm:$0x1]  ;;  %v1717_v35 = vsel %vm6631_vm14, 0, %v1716_v39  ;;  %3708 = vmatpush.bf16.msra.mxu1 %v5802_v45 }
 0x15e   :  { %1925 = vst [vmem:[#allocation2 + $0x18] sm:$0xf] %v1924_v17  ;;  %v2082_v11 = vor.u32 %v2081_v10, %v2078_v7  ;;  %v2085_v47 = vshll.u32 %v2056_v6, 16  ;;  %v2096_v52 = vor.u32 %v2095_v16, %v2092_v60  ;;  %v2099_v54 = vshll.u32 %v2057_v19, 16  ;;  %v5800_v7 = vld [vmem:[%s7981_s6 + $0x108] sm:$0xff] }
 0x15f   :  { %1928 = vst [vmem:[#allocation2 + $0x1c] sm:$0x1] %v1927_v48  ;;  %v1774_v61 = vshrl.u32 %v1625_v51, 16  ;;  %v1777_v50 = vshll.u32 %v1625_v51, 16  ;;  %v1257_v17 = vsel %vm1233_vm2, %v1220_v40, %v6851_v30  ;;  %v5801_v30 = vld [vmem:[%s7981_s6 + $0x110] sm:$0xff]  ;;  %v2107_v6 = vshll.u32 %v2042_v13, 16 }
 0x160   :  { %v631_v25 = vpop.permute.xlu0 %630  ;;  %1718 = vst [vmem:[#allocation2 + $0x34] sm:$0x1] %v1717_v35  ;;  %v2083_v48 = vrot.slane %v2082_v11, 4  ;;  %v2087_v51 = vrot.slane %v2085_v47, 5  ;;  %v2097_v57 = vrot.slane %v2096_v52, 4  ;;  %v1290_v9 = vsel %vm1266_vm3, %v1257_v17, %v6967_v46 }
 0x161   :  { %v1776_v27 = vrot.slane %v1774_v61, 7  ;;  %v1323_v61 = vsel %vm1299_vm4, %v1290_v9, %v631_v25  ;;  %v2101_v28 = vrot.slane %v2099_v54, 5  ;;  %3709 = vmatpush.bf16.msra.mxu1 %v5801_v30  ;;  %v2104_v25 = vshrl.u32 %v2042_v13, 16  ;;  %v2058_v35 = vld [vmem:[#allocation2 + $0x14] sm:$0x1] }
 0x162   :  { %v2088_v46 = vsel %vm7007_vm11, %v2083_v48, %v2087_v51  ;;  %v1356_v21 = vsel %vm1332_vm5, %v1323_v61, %v6938_v55  ;;  %v2109_v2 = vrot.slane %v2107_v6, 5  ;;  %v3143_v52 = vld [vmem:[#allocation2 + $0x8] sm:$0xf]  ;;  %v3145_v54 = vld [vmem:[#allocation2 + $0x10] sm:$0xf]  ;;  %v2113_v17 = vshll.u32 %v2058_v35, 16 }
 0x163   :  { %v1779_v15 = vor.u32 %v1777_v50, %v1776_v27  ;;  %v1780_v0 = vrot.slane %v1776_v27, 4  ;;  %v2102_v63 = vsel %vm7007_vm11, %v2097_v57, %v2101_v28  ;;  %v2347_v60 = vunpack.c.l.b16 %v2088_v46 }
 0x164   :  { %v2348_v16 = vunpack.c.l.b16 %v2102_v63  ;;  %v2106_v39 = vrot.slane %v2104_v25, 4  ;;  %v3176_v53 = vshrl.u32 %v3143_v52, 16  ;;  %v3179_v30 = vshll.u32 %v3143_v52, 16 }
 0x165   :  { %v1930_v22 = vsel %vm6778_vm1, %v1779_v15, %v1929_v1  ;;  %v1933_v58 = vsel %vm6620_vm13, %v1780_v0, %v1932_v5  ;;  %v821_v29 = vpop.permute.xlu1 %820  ;;  %v5752_v20 = vld [vmem:[#allocation2 + $0x14] sm:$0xf0]  ;;  %v1321_v1 = vsel %vm1299_vm4, %v1288_v59, %v6893_v34  ;;  %v7025_v5 = vpop.permute.xlu2 %472  ;;  %3710 = vmatpush.bf16.msra.mxu1 %v5800_v7  ;;  %v3190_v59 = vshrl.u32 %v3145_v54, 16 }
 0x166   :  { %1931 = vst [vmem:[#allocation2 + $0x20] sm:$0xf] %v1930_v22  ;;  %v5148_v12 = vor.u32 %v5752_v20, %v5147_v3  ;;  %v2043_v33 = vld [vmem:[#allocation2 + $0x18] sm:$0xf]  ;;  %v1354_v10 = vsel %vm1332_vm5, %v1321_v1, %v821_v29  ;;  %v5799_v22 = vld [vmem:[%s7981_s6 + $0x100] sm:$0xff]  ;;  %v2363_v20 = vpack.c.b16 %v2348_v16, %v2347_v60  ;;  %v2110_v47 = vor.u32 %v2109_v2, %v2106_v39 }
 0x167   :  { %1934 = vst [vmem:[#allocation2 + $0x24] sm:$0x1] %v1933_v58  ;;  %v2118_v27 = vshrl.u32 %v2043_v33, 16  ;;  %v2121_v50 = vshll.u32 %v2043_v33, 16  ;;  %v2059_v32 = vld [vmem:[#allocation2 + $0x1c] sm:$0x1] }
 0x168   :  { %2520 = vmatmul.bf16.gmra.mxu1 %v5148_v12  ;;  %v901_v26 = vpop.permute.xlu0 %900  ;;  %v7046_v48 = vld [vmem:[#allocation2 + $0x1c] sm:$0x1]  ;;  %v3401_v9 = vld [vmem:[#allocation2 + $0x18] sm:$0xe]  ;;  %v2111_v33 = vrot.slane %v2110_v47, 4  ;;  %v3193_v1 = vshll.u32 %v3145_v54, 16 }
 0x169   :  { %v1387_v0 = vsel %vm1365_vm6, %v1354_v10, %v901_v26  ;;  %v2120_v55 = vrot.slane %v2118_v27, 4  ;;  %v2123_v18 = vrot.slane %v2121_v50, 5  ;;  %3711 = vmatpush.bf16.msra.mxu1 %v5799_v22  ;;  %v3457_v63 = vrot.slane %v7046_v48, 5  ;;  %v1935_v2 = vld [vmem:[#allocation2 + $0x28] sm:$0xf] }
 0x16a   :  { %v1420_v58 = vsel %vm1398_vm7, %v1387_v0, %v6958_v44  ;;  %v2127_v44 = vshll.u32 %v2059_v32, 16  ;;  %v2115_v27 = vrot.slane %v2113_v17, 5  ;;  %v3185_v50 = vshll.u32 %v6886_v23, 16  ;;  %v1938_v22 = vld [vmem:[#allocation2 + $0x2c] sm:$0x1] }
 0x16b   :  { %v2124_v11 = vor.u32 %v2123_v18, %v2120_v55  ;;  %v3178_v7 = vrot.slane %v3176_v53, 4  ;;  %v3192_v60 = vrot.slane %v3190_v59, 4 }
 0x16c   :  { %v2129_v13 = vrot.slane %v2127_v44, 5  ;;  %v2116_v0 = vsel %vm7007_vm11, %v2111_v33, %v2115_v27 }
 0x16d   :  { %v903_v62 = vpop.permute.xlu1 %902  ;;  %v7044_v45 = vpop.permute.xlu2 %554  ;;  %v2125_v57 = vrot.slane %v2124_v11, 4  ;;  %v3402_v61 = vld [vmem:[#allocation2 + $0x20] sm:$0xe]  ;;  %v2349_v11 = vunpack.c.l.b16 %v2116_v0 }
 0x16e   :  { %v1389_v14 = vsel %vm1365_vm6, %v1356_v21, %v903_v62  ;;  %v7051_v46 = vld [vmem:[#allocation2 + $0x24] sm:$0x1]  ;;  %v5383_v21 = vrot.slane %v3401_v9, 9  ;;  %v2044_v10 = vld [vmem:[#allocation2 + $0x20] sm:$0xf] }
 0x16f   :  { %v2130_v6 = vsel %vm7007_vm11, %v2125_v57, %v2129_v13  ;;  %v3461_v16 = vrot.slane %v7051_v46, 5  ;;  %v2135_v35 = vshll.u32 %v2044_v10, 16  ;;  %v3149_v13 = vld [vmem:[#allocation2 + $0x20] sm:$0xf] }
 0x170   :  { %v983_v15 = vpop.permute.xlu0 %982  ;;  %v3458_v39 = vsel %vm6916_vm12, %v5383_v21, %v3457_v63  ;;  %v1669_v21 = vld [vmem:[#allocation2 + $0x38] sm:$0x1] }
 0x171   :  { %v1422_v34 = vsel %vm1398_vm7, %v1389_v14, %v983_v15  ;;  %v5384_v14 = vrot.slane %v3402_v61, 9  ;;  %v3545_v47 = vunpack.c.l.b16 %v3458_v39  ;;  %v3199_v61 = vshll.u32 %v6907_v41, 16 }
 0x172   :  { %v1455_v49 = vsel %vm1431_vm8, %v1422_v34, %v1175_v37  ;;  %v3181_v34 = vrot.slane %v3179_v30, 5  ;;  %v2137_v30 = vrot.slane %v2135_v35, 5 }
 0x173   :  { %v1500_v12 = vunpack.c.l.b16 %v1455_v49 }
 0x175   :  { %v1173_v29 = vpop.permute.xlu1 %1172 }
 0x176   :  { %v1453_v3 = vsel %vm1431_vm8, %v1420_v58, %v1173_v29  ;;  %v2350_v58 = vunpack.c.l.b16 %v2130_v6  ;;  %v3195_v29 = vrot.slane %v3193_v1, 5  ;;  %v1944_v6 = vld [vmem:[#allocation2 + $0x34] sm:$0x1] }
 0x177   :  { %v1499_v19 = vunpack.c.l.b16 %v1453_v3  ;;  %v2132_v3 = vshrl.u32 %v2044_v10, 16 }
 0x178   :  { %v1576_v37 = vpop.f32.mrf.mxu0  ;;  %2564 = vmatmul.bf16.vlgmr.msrb.gmra.mxu1 %v2363_v20  ;;  %v7042_v42 = vpop.permute.xlu0 %248  ;;  %v3462_v20 = vsel %vm6916_vm12, %v5384_v14, %v3461_v16  ;;  %v2364_v17 = vpack.c.b16 %v2350_v58, %v2349_v11  ;;  %v3196_v9 = vor.u32 %v3195_v29, %v3192_v60  ;;  %v3201_v60 = vrot.slane %v3199_v61, 5 }
 0x179   :  { %v1577_v40 = vadd.f32 %v6740_v4, %v1576_v37  ;;  %v1510_v26 = vpack.c.b16 %v1500_v12, %v1499_v19  ;;  %v7067_v37 = vpop.permute.xlu2 %824  ;;  %v3546_v52 = vunpack.c.l.b16 %v3462_v20  ;;  %v2134_v33 = vrot.slane %v2132_v3, 4 }
 0x17a   :  { %v3197_v0 = vrot.slane %v3196_v9, 4  ;;  %v3218_v58 = vshrl.u32 %v3149_v13, 16  ;;  %v3221_v29 = vshll.u32 %v3149_v13, 16 }
 0x17b   :  { %v1610_v51 = vmax.f32 %v1577_v40, 0.0  ;;  %5138 = vmatmul.msk.bf16.gmra.mxu0 %vm1528_vm9, %v1510_v26  ;;  %v7077_v57 = vpack.c.b16 %v3546_v52, %v3545_v47  ;;  %v2138_v41 = vor.u32 %v2137_v30, %v2134_v33 }
 0x17c   :  { %v3202_v35 = vsel %vm7007_vm11, %v3197_v0, %v3201_v60  ;;  %v3220_v61 = vrot.slane %v3218_v58, 4 }
 0x17d   :  { %v1626_v62 = vpack.c.bf16 %v1610_v51, %v1610_v51  ;;  %v7049_v28 = vpop.permute.xlu1 %250  ;;  %v7075_v51 = vrot.slane %v3185_v50, 5  ;;  %v1719_v50 = vld [vmem:[#allocation2 + $0x3c] sm:$0x1]  ;;  %v2139_v11 = vrot.slane %v2138_v41, 4  ;;  %v3512_v33 = vunpack.c.l.b16 %v3202_v35 }
 0x17e   :  { %v1720_v10 = vsel %vm6631_vm14, 0, %v1719_v50 }
 0x17f   :  { %v1782_v25 = vshrl.u32 %v1626_v62, 16  ;;  %v1785_v18 = vshll.u32 %v1626_v62, 16  ;;  %v2060_v62 = vld [vmem:[#allocation2 + $0x24] sm:$0x1]  ;;  %1721 = vst [vmem:[#allocation2 + $0x3c] sm:$0x1] %v1720_v10 }
 0x180   :  { %v1578_v15 = vpop.f32.mrf.mxu0  ;;  %v7061_v49 = vpop.permute.xlu0 %474  ;;  %v2141_v16 = vshll.u32 %v2060_v62, 16  ;;  %v3223_v62 = vrot.slane %v3221_v29, 5 }
 0x181   :  { %v1784_v55 = vrot.slane %v1782_v25, 7  ;;  %v1579_v23 = vadd.f32 %v6740_v4, %v1578_v15  ;;  %v3182_v4 = vor.u32 %v3181_v34, %v3178_v7  ;;  %v1941_v25 = vld [vmem:[#allocation2 + $0x30] sm:$0xf]  ;;  %v1670_v7 = vsel %vm6620_vm13, 0, %v1669_v21  ;;  %v5151_v34 = vld [vmem:[#allocation2 + $0x20] sm:$0xf]  ;;  %v7092_v20 = vpop.permute.xlu2 %906 }
 0x182   :  { %1671 = vst [vmem:[#allocation2 + $0x38] sm:$0x1] %v1670_v7  ;;  %v1672_v21 = vld [vmem:[#allocation2 + $0x40] sm:$0x1] }
 0x183   :  { %v1787_v32 = vor.u32 %v1785_v18, %v1784_v55  ;;  %v1788_v12 = vrot.slane %v1784_v55, 4  ;;  %v1611_v19 = vmax.f32 %v1579_v23, 0.0  ;;  %v3183_v59 = vrot.slane %v3182_v4, 4  ;;  %v3147_v55 = vld [vmem:[#allocation2 + $0x18] sm:$0xf] }
 0x184   :  { %v42_v4 = vld [vmem:[%s7976_s0 + $0x68] sm:$0xf]  ;;  %v3207_v9 = vshll.u32 %v3147_v55, 16 }
 0x185   :  { %v1936_v40 = vsel %vm6778_vm1, %v1787_v32, %v1935_v2  ;;  %v1939_v26 = vsel %vm6620_vm13, %v1788_v12, %v1938_v22  ;;  %v1627_v44 = vpack.c.bf16 %v1611_v19, %v1611_v19  ;;  %v7073_v54 = vpop.permute.xlu1 %552  ;;  %v3188_v47 = vsel %vm7007_vm11, %v3183_v59, %v7075_v51  ;;  %v1722_v51 = vld [vmem:[#allocation2 + $0x44] sm:$0x1]  ;;  %v43_v59 = vld [vmem:[%s7976_s0 + $0x70] sm:$0xf] }
 0x186   :  { %1937 = vst [vmem:[#allocation2 + $0x28] sm:$0xf] %v1936_v40  ;;  %v1223_v13 = vsel %vm1184_vm0, %v42_v4, %v7042_v42  ;;  %v1723_v7 = vsel %vm6631_vm14, 0, %v1722_v51  ;;  %v1226_v60 = vsel %vm1184_vm0, %v43_v59, %v7049_v28 }
 0x187   :  { %1940 = vst [vmem:[#allocation2 + $0x2c] sm:$0x1] %v1939_v26  ;;  %v1790_v53 = vshrl.u32 %v1627_v44, 16  ;;  %v1793_v27 = vshll.u32 %v1627_v44, 16 }
 0x188   :  { %2569 = vmatmul.bf16.gmra.mxu1 %v2364_v17  ;;  %v7080_v1 = vpop.permute.xlu0 %632  ;;  %v2143_v17 = vrot.slane %v2141_v16, 5  ;;  %1724 = vst [vmem:[#allocation2 + $0x44] sm:$0x1] %v1723_v7 }
 0x189   :  { %v1792_v63 = vrot.slane %v1790_v53, 7  ;;  %v3204_v53 = vshrl.u32 %v3147_v55, 16 }
 0x18b   :  { %v1795_v14 = vor.u32 %v1793_v27, %v1792_v63  ;;  %v1796_v15 = vrot.slane %v1792_v63, 4  ;;  %v3511_v63 = vunpack.c.l.b16 %v3188_v47  ;;  %v2144_v27 = vsel %vm7007_vm11, %v2139_v11, %v2143_v17 }
 0x18c   :  { %v3206_v42 = vrot.slane %v3204_v53, 4  ;;  %v2351_v55 = vunpack.c.l.b16 %v2144_v27 }
 0x18d   :  { %v1942_v18 = vsel %vm6778_vm1, %v1795_v14, %v1941_v25  ;;  %v1945_v23 = vsel %vm6620_vm13, %v1796_v15, %v1944_v6  ;;  %v7090_v39 = vpop.permute.xlu1 %634  ;;  %v5753_v2 = vld [vmem:[#allocation2 + $0x24] sm:$0xf0]  ;;  %v1673_v6 = vsel %vm6620_vm13, 0, %v1672_v21  ;;  %v3209_v14 = vrot.slane %v3207_v9, 5 }
 0x18e   :  { %v2045_v22 = vld [vmem:[#allocation2 + $0x28] sm:$0xf]  ;;  %1943 = vst [vmem:[#allocation2 + $0x30] sm:$0xf] %v1942_v18  ;;  %v5152_v3 = vor.u32 %v5753_v2, %v5151_v34  ;;  %v2061_v32 = vld [vmem:[#allocation2 + $0x2c] sm:$0x1]  ;;  %v1259_v15 = vsel %vm1233_vm2, %v1223_v13, %v7025_v5  ;;  %v3527_v0 = vpack.c.b16 %v3512_v33, %v3511_v63  ;;  %v3224_v34 = vor.u32 %v3223_v62, %v3220_v61  ;;  %v1177_v2 = vpop.permute.xlu2 %1176 }
 0x18f   :  { %v2146_v12 = vshrl.u32 %v2045_v22, 16  ;;  %v2149_v19 = vshll.u32 %v2045_v22, 16  ;;  %1946 = vst [vmem:[#allocation2 + $0x34] sm:$0x1] %v1945_v23  ;;  %v2155_v26 = vshll.u32 %v2061_v32, 16  ;;  %v1292_v16 = vsel %vm1266_vm3, %v1259_v15, %v7073_v54 }
 0x190   :  { %2525 = vmatmul.bf16.vlgmr.msra.gmra.mxu3 %v5152_v3  ;;  %v827_v44 = vpop.permute.xlu0 %826  ;;  %1674 = vst [vmem:[#allocation2 + $0x40] sm:$0x1] %v1673_v6  ;;  %v1261_v23 = vsel %vm1233_vm2, %v1226_v60, %v7061_v49  ;;  %v1325_v5 = vsel %vm1299_vm4, %v1292_v16, %v7080_v1  ;;  %v3210_v29 = vor.u32 %v3209_v14, %v3206_v42  ;;  %v3227_v3 = vshll.u32 %v7051_v46, 16  ;;  %v3151_v47 = vld [vmem:[#allocation2 + $0x28] sm:$0xf] }
 0x191   :  { %v2148_v52 = vrot.slane %v2146_v12, 4  ;;  %v2151_v40 = vrot.slane %v2149_v19, 5  ;;  %v2157_v25 = vrot.slane %v2155_v26, 5  ;;  %v1294_v28 = vsel %vm1266_vm3, %v1261_v23, %v7044_v45  ;;  %v3403_v61 = vld [vmem:[#allocation2 + $0x28] sm:$0xe] }
 0x192   :  { %v1358_v54 = vsel %vm1332_vm5, %v1325_v5, %v7067_v37  ;;  %v3213_v32 = vshll.u32 %v7046_v48, 16  ;;  %v3225_v49 = vrot.slane %v3224_v34, 4  ;;  %v1327_v1 = vsel %vm1299_vm4, %v1294_v28, %v7090_v39  ;;  %v7138_v48 = vld [vmem:[#allocation2 + $0x2c] sm:$0x1]  ;;  %v5797_v5 = vld [vmem:[%s7981_s6 + $0xf0] sm:$0xff] }
 0x193   :  { %v2152_v30 = vor.u32 %v2151_v40, %v2148_v52  ;;  %v1360_v35 = vsel %vm1332_vm5, %v1327_v1, %v827_v44  ;;  %v3211_v4 = vrot.slane %v3210_v29, 4  ;;  %v3229_v45 = vrot.slane %v3227_v3, 5 }
 0x194   :  { %v3215_v52 = vrot.slane %v3213_v32, 5  ;;  %v1393_v39 = vsel %vm1365_vm6, %v1360_v35, %v7092_v20  ;;  %v3232_v44 = vshrl.u32 %v3151_v47, 16  ;;  %v3235_v53 = vshll.u32 %v3151_v47, 16 }
 0x195   :  { %v2153_v50 = vrot.slane %v2152_v30, 4  ;;  %v905_v10 = vpop.permute.xlu1 %904  ;;  %v3153_v19 = vld [vmem:[#allocation2 + $0x30] sm:$0xf]  ;;  %v3230_v37 = vsel %vm7007_vm11, %v3225_v49, %v3229_v45  ;;  %v3465_v21 = vrot.slane %v7138_v48, 5  ;;  %v5385_v15 = vrot.slane %v3403_v61, 9 }
 0x196   :  { %v1391_v12 = vsel %vm1365_vm6, %v1358_v54, %v905_v10  ;;  %v3246_v40 = vshrl.u32 %v3153_v19, 16  ;;  %v3249_v26 = vshll.u32 %v3153_v19, 16  ;;  %v3216_v30 = vsel %vm7007_vm11, %v3211_v4, %v3215_v52  ;;  %v7147_v13 = vpop.permute.xlu2 %254  ;;  %v3404_v27 = vld [vmem:[#allocation2 + $0x30] sm:$0xe]  ;;  %v3154_v10 = vld [vmem:[#allocation2 + $0x34] sm:$0x1] }
 0x197   :  { %v2158_v41 = vsel %vm7007_vm11, %v2153_v50, %v2157_v25  ;;  %v3514_v63 = vunpack.c.l.b16 %v3230_v37  ;;  %v5798_v25 = vld [vmem:[%s7981_s6 + $0xf8] sm:$0xff]  ;;  %v3513_v7 = vunpack.c.l.b16 %v3216_v30  ;;  %v3234_v42 = vrot.slane %v3232_v44, 4  ;;  %v2046_v35 = vld [vmem:[#allocation2 + $0x30] sm:$0xf] }
 0x198   :  { %v2352_v18 = vunpack.c.l.b16 %v2158_v41  ;;  %3712 = vmatmul.bf16.vlgmr.msra.gmra.mxu1 %v3527_v0  ;;  %v985_v22 = vpop.permute.xlu0 %984  ;;  %v3248_v59 = vrot.slane %v3246_v40, 4  ;;  %v3251_v50 = vrot.slane %v3249_v26, 5  ;;  %v3237_v14 = vrot.slane %v3235_v53, 5  ;;  %v7156_v0 = vld [vmem:[%s7980_s5] ss:$0 sm:$0xff]  ;;  %3046 = vmatpush.bf16.msrb.mxu0 %v5798_v25 }
 0x199   :  { %v1424_v46 = vsel %vm1398_vm7, %v1391_v12, %v985_v22  ;;  %v5386_v16 = vrot.slane %v3404_v27, 9  ;;  %v3469_v22 = vrot.slane %v3154_v10, 5  ;;  %v3255_v28 = vshll.u32 %v3154_v10, 16  ;;  %v1947_v40 = vld [vmem:[#allocation2 + $0x38] sm:$0xf] }
 0x19a   :  { %v2365_v58 = vpack.c.b16 %v2352_v18, %v2351_v55  ;;  %v1457_v17 = vsel %vm1431_vm8, %v1424_v46, %v1177_v2  ;;  %v3528_v55 = vpack.c.b16 %v3514_v63, %v3513_v7  ;;  %v3252_v23 = vor.u32 %v3251_v50, %v3248_v59  ;;  %v5796_v46 = vld [vmem:[%s7981_s6 + $0xe8] sm:$0xff] }
 0x19b   :  { %v1501_v20 = vunpack.c.l.b16 %v1457_v17  ;;  %v3466_v2 = vsel %vm6916_vm12, %v5385_v15, %v3465_v21  ;;  %v3470_v54 = vsel %vm6916_vm12, %v5386_v16, %v3469_v22  ;;  %v3241_v32 = vshll.u32 %v7138_v48, 16  ;;  %v1950_v17 = vld [vmem:[#allocation2 + $0x3c] sm:$0x1]  ;;  %v5795_v16 = vld [vmem:[%s7981_s6 + $0xe0] sm:$0xff] }
 0x19c   :  { %2574 = vmatmul.bf16.vlgmr.msra.gmra.mxu2 %v2365_v58  ;;  %v3238_v58 = vor.u32 %v3237_v14, %v3234_v42  ;;  %3047 = vmatpush.bf16.msrb.mxu0 %v5797_v5  ;;  %v3547_v49 = vunpack.c.l.b16 %v3466_v2  ;;  %v3548_v1 = vunpack.c.l.b16 %v3470_v54  ;;  %v3253_v19 = vrot.slane %v3252_v23, 4  ;;  %v2062_v42 = vld [vmem:[#allocation2 + $0x34] sm:$0x1]  ;;  %v5155_v54 = vld [vmem:[#allocation2 + $0x30] sm:$0xf] }
 0x19d   :  { %v987_v11 = vpop.permute.xlu1 %986  ;;  %v3243_v44 = vrot.slane %v3241_v32, 5  ;;  %v2160_v53 = vshrl.u32 %v2046_v35, 16  ;;  %v2169_v32 = vshll.u32 %v2062_v42, 16 }
 0x19e   :  { %v1426_v9 = vsel %vm1398_vm7, %v1393_v39, %v987_v11  ;;  %v7175_v11 = vpop.permute.xlu2 %556  ;;  %v3239_v45 = vrot.slane %v3238_v58, 4  ;;  %v7177_v47 = vpack.c.b16 %v3548_v1, %v3547_v49  ;;  %v3257_v39 = vrot.slane %v3255_v28, 5 }
 0x19f   :  { %v2162_v25 = vrot.slane %v2160_v53, 4 }
 0x1a0   :  { %v1179_v33 = vpop.permute.xlu0 %1178  ;;  %3048 = vmatpush.bf16.msrb.mxu0 %v5796_v46 }
 0x1a1   :  { %v1459_v62 = vsel %vm1431_vm8, %v1426_v9, %v1179_v33  ;;  %v2163_v9 = vshll.u32 %v2046_v35, 16 }
 0x1a2   :  { %v1502_v51 = vunpack.c.l.b16 %v1459_v62  ;;  %v3258_v62 = vsel %vm7007_vm11, %v3253_v19, %v3257_v39 }
 0x1a3   :  { %v1581_v6 = vpop.f32.mrf.mxu0  ;;  %v3516_v59 = vunpack.c.l.b16 %v3258_v62  ;;  %v2171_v62 = vrot.slane %v2169_v32, 5 }
 0x1a4   :  { %v1582_v41 = vadd.f32 %v7156_v0, %v1581_v6  ;;  %v1511_v60 = vpack.c.b16 %v1502_v51, %v1501_v20  ;;  %v3244_v51 = vsel %vm7007_vm11, %v3239_v45, %v3243_v44  ;;  %v2165_v6 = vrot.slane %v2163_v9, 5  ;;  %3049 = vmatpush.bf16.msrb.mxu0 %v5795_v16 }
 0x1a5   :  { %v7159_v34 = vpop.permute.xlu1 %252  ;;  %v3515_v10 = vunpack.c.l.b16 %v3244_v51  ;;  %v5793_v51 = vld [vmem:[%s7981_s6 + $0xd0] sm:$0xff] }
 0x1a6   :  { %v1612_v18 = vmax.f32 %v1582_v41, 0.0  ;;  %5139 = vmatmul.msk.bf16.gmra.mxu0 %vm1528_vm9, %v1511_v60  ;;  %v1675_v41 = vld [vmem:[#allocation2 + $0x58] sm:$0x1]  ;;  %v1725_v60 = vld [vmem:[#allocation2 + $0x5c] sm:$0x1]  ;;  %v7197_v23 = vpop.permute.xlu2 %638  ;;  %v2166_v28 = vor.u32 %v2165_v6, %v2162_v25 }
 0x1a7   :  { %v3529_v5 = vpack.c.b16 %v3516_v59, %v3515_v10  ;;  %v1676_v2 = vsel %vm6620_vm13, 0, %v1675_v41  ;;  %v1726_v22 = vsel %vm6631_vm14, 0, %v1725_v60  ;;  %v1678_v6 = vld [vmem:[#allocation2 + $0x60] sm:$0x1] }
 0x1a8   :  { %3717 = vmatmul.bf16.gmra.mxu1 %v3528_v55  ;;  %v1628_v29 = vpack.c.bf16 %v1612_v18, %v1612_v18  ;;  %v7167_v3 = vpop.permute.xlu0 %476  ;;  %v1953_v55 = vld [vmem:[#allocation2 + $0x40] sm:$0xf]  ;;  %v1956_v18 = vld [vmem:[#allocation2 + $0x44] sm:$0x1]  ;;  %1677 = vst [vmem:[#allocation2 + $0x58] sm:$0x1] %v1676_v2 }
 0x1a9   :  { %1727 = vst [vmem:[#allocation2 + $0x5c] sm:$0x1] %v1726_v22  ;;  %v2167_v39 = vrot.slane %v2166_v28, 4  ;;  %v1679_v60 = vsel %vm6620_vm13, 0, %v1678_v6 }
 0x1aa   :  { %v1798_v12 = vshrl.u32 %v1628_v29, 16  ;;  %v1801_v37 = vshll.u32 %v1628_v29, 16  ;;  %1680 = vst [vmem:[#allocation2 + $0x60] sm:$0x1] %v1679_v60 }
 0x1ab   :  { %v1583_v4 = vpop.f32.mrf.mxu0  ;;  %v2172_v25 = vsel %vm7007_vm11, %v2167_v39, %v2171_v62 }
 0x1ac   :  { %v1800_v52 = vrot.slane %v1798_v12, 7  ;;  %v1584_v48 = vadd.f32 %v7156_v0, %v1583_v4  ;;  %v45_v4 = vld [vmem:[%s7976_s0 + $0x80] sm:$0xf]  ;;  %v2353_v2 = vunpack.c.l.b16 %v2172_v25 }
 0x1ad   :  { %v7180_v26 = vpop.permute.xlu1 %478  ;;  %v1232_v59 = vsel %vm1184_vm0, %v45_v4, %v7147_v13 }
 0x1ae   :  { %v1803_v33 = vor.u32 %v1801_v37, %v1800_v52  ;;  %v1804_v30 = vrot.slane %v1800_v52, 4  ;;  %v1613_v61 = vmax.f32 %v1584_v48, 0.0  ;;  %v44_v48 = vld [vmem:[%s7976_s0 + $0x78] sm:$0xf]  ;;  %v909_v10 = vpop.permute.xlu2 %908 }
 0x1b0   :  { %v1948_v63 = vsel %vm6778_vm1, %v1803_v33, %v1947_v40  ;;  %v1951_v27 = vsel %vm6620_vm13, %v1804_v30, %v1950_v17  ;;  %v1629_v21 = vpack.c.bf16 %v1613_v61, %v1613_v61  ;;  %v7188_v20 = vpop.permute.xlu0 %558  ;;  %v5794_v30 = vld [vmem:[%s7981_s6 + $0xd8] sm:$0xff] }
 0x1b1   :  { %1949 = vst [vmem:[#allocation2 + $0x38] sm:$0xf] %v1948_v63  ;;  %3050 = vmatpush.bf16.msrb.mxu0 %v5794_v30 }
 0x1b2   :  { %1952 = vst [vmem:[#allocation2 + $0x3c] sm:$0x1] %v1951_v27  ;;  %v1806_v50 = vshrl.u32 %v1629_v21, 16  ;;  %v1809_v7 = vshll.u32 %v1629_v21, 16 }
 0x1b4   :  { %v1808_v14 = vrot.slane %v1806_v50, 7  ;;  %v1229_v50 = vsel %vm1184_vm0, %v44_v48, %v7159_v34 }
 0x1b5   :  { %v7192_v15 = vpop.permute.xlu1 %636  ;;  %v1263_v13 = vsel %vm1233_vm2, %v1229_v50, %v7167_v3  ;;  %3051 = vmatpush.bf16.msrb.mxu0 %v5793_v51  ;;  %v1265_v3 = vsel %vm1233_vm2, %v1232_v59, %v7180_v26 }
 0x1b6   :  { %v1811_v58 = vor.u32 %v1809_v7, %v1808_v14  ;;  %v1812_v29 = vrot.slane %v1808_v14, 4  ;;  %v1728_v7 = vld [vmem:[#allocation2 + $0x64] sm:$0x1]  ;;  %v991_v30 = vpop.permute.xlu2 %990 }
 0x1b7   :  { %v1729_v16 = vsel %vm6631_vm14, 0, %v1728_v7 }
 0x1b8   :  { %3722 = vmatmul.bf16.gmra.mxu1 %v3529_v5  ;;  %v1954_v49 = vsel %vm6778_vm1, %v1811_v58, %v1953_v55  ;;  %v1957_v1 = vsel %vm6620_vm13, %v1812_v29, %v1956_v18  ;;  %v7207_v12 = vpop.permute.xlu0 %828  ;;  %v5754_v19 = vld [vmem:[#allocation2 + $0x34] sm:$0xf0]  ;;  %1730 = vst [vmem:[#allocation2 + $0x64] sm:$0x1] %v1729_v16  ;;  %v5792_v29 = vld [vmem:[%s7981_s6 + $0xc8] sm:$0xff]  ;;  %v7272_v16 = vpop.f32.mrf.mxu1 }
 0x1b9   :  { %v2047_v35 = vld [vmem:[#allocation2 + $0x38] sm:$0xf]  ;;  %1955 = vst [vmem:[#allocation2 + $0x40] sm:$0xf] %v1954_v49  ;;  %v5156_v45 = vor.u32 %v5754_v19, %v5155_v54  ;;  %v2063_v52 = vld [vmem:[#allocation2 + $0x3c] sm:$0x1]  ;;  %v1296_v49 = vsel %vm1266_vm3, %v1263_v13, %v7175_v11  ;;  %3052 = vmatpush.bf16.msrb.mxu0 %v5792_v29 }
 0x1ba   :  { %v3155_v46 = vld [vmem:[#allocation2 + $0x38] sm:$0xf]  ;;  %v2174_v37 = vshrl.u32 %v2047_v35, 16  ;;  %v2177_v40 = vshll.u32 %v2047_v35, 16  ;;  %1958 = vst [vmem:[#allocation2 + $0x44] sm:$0x1] %v1957_v1  ;;  %v1298_v1 = vsel %vm1266_vm3, %v1265_v3, %v7188_v20  ;;  %v1329_v26 = vsel %vm1299_vm4, %v1296_v49, %v7192_v15 }
 0x1bb   :  { %v3260_v17 = vshrl.u32 %v3155_v46, 16  ;;  %2530 = vmatmul.bf16.gmra.mxu3 %v5156_v45  ;;  %v2183_v9 = vshll.u32 %v2063_v52, 16  ;;  %v3263_v33 = vshll.u32 %v3155_v46, 16  ;;  %v7227_v41 = vld [vmem:[#allocation2 + $0x3c] sm:$0x1]  ;;  %v1362_v11 = vsel %vm1332_vm5, %v1329_v26, %v7207_v12 }
 0x1bc   :  { %v2176_v44 = vrot.slane %v2174_v37, 4  ;;  %v2179_v53 = vrot.slane %v2177_v40, 5  ;;  %v3269_v54 = vshll.u32 %v7227_v41, 16  ;;  %v5791_v37 = vld [vmem:[%s7981_s6 + $0xc0] sm:$0xff]  ;;  %v1331_v48 = vsel %vm1299_vm4, %v1298_v1, %v7197_v23  ;;  %v3405_v7 = vld [vmem:[#allocation2 + $0x38] sm:$0xe] }
 0x1bd   :  { %v831_v61 = vpop.permute.xlu1 %830  ;;  %v3262_v63 = vrot.slane %v3260_v17, 4  ;;  %v3265_v21 = vrot.slane %v3263_v33, 5  ;;  %v2185_v14 = vrot.slane %v2183_v9, 5  ;;  %v1395_v9 = vsel %vm1365_vm6, %v1362_v11, %v909_v10  ;;  %3053 = vmatpush.bf16.msrb.mxu0 %v5791_v37 }
 0x1be   :  { %v2180_v27 = vor.u32 %v2179_v53, %v2176_v44  ;;  %v3271_v20 = vrot.slane %v3269_v54, 5  ;;  %v1364_v39 = vsel %vm1332_vm5, %v1331_v48, %v831_v61  ;;  %v3473_v60 = vrot.slane %v7227_v41, 5 }
 0x1bf   :  { %v3266_v18 = vor.u32 %v3265_v21, %v3262_v63 }
 0x1c0   :  { %v2181_v42 = vrot.slane %v2180_v27, 4  ;;  %v911_v34 = vpop.permute.xlu0 %910  ;;  %v3157_v55 = vld [vmem:[#allocation2 + $0x40] sm:$0xf] }
 0x1c1   :  { %v7237_v22 = vld [vmem:[#allocation2 + $0x44] sm:$0x1]  ;;  %v3274_v58 = vshrl.u32 %v3157_v55, 16  ;;  %v3277_v32 = vshll.u32 %v3157_v55, 16  ;;  %v3267_v4 = vrot.slane %v3266_v18, 4  ;;  %v1397_v33 = vsel %vm1365_vm6, %v1364_v39, %v911_v34 }
 0x1c2   :  { %v2186_v5 = vsel %vm7007_vm11, %v2181_v42, %v2185_v14  ;;  %v3283_v52 = vshll.u32 %v7237_v22, 16  ;;  %v1430_v27 = vsel %vm1398_vm7, %v1397_v33, %v991_v30  ;;  %v3406_v10 = vld [vmem:[#allocation2 + $0x40] sm:$0xe]  ;;  %v5387_v34 = vrot.slane %v3405_v7, 9 }
 0x1c3   :  { %v2354_v28 = vunpack.c.l.b16 %v2186_v5  ;;  %v3276_v19 = vrot.slane %v3274_v58, 4  ;;  %v3279_v45 = vrot.slane %v3277_v32, 5  ;;  %v3272_v15 = vsel %vm7007_vm11, %v3267_v4, %v3271_v20  ;;  %v1962_v4 = vld [vmem:[#allocation2 + $0x5c] sm:$0x1]  ;;  %v7283_v20 = vpop.f32.mrf.mxu1 }
 0x1c4   :  { %v3285_v53 = vrot.slane %v3283_v52, 5  ;;  %v3517_v61 = vunpack.c.l.b16 %v3272_v15  ;;  %v5388_v55 = vrot.slane %v3406_v10, 9  ;;  %v3477_v18 = vrot.slane %v7237_v22, 5  ;;  %v1959_v22 = vld [vmem:[#allocation2 + $0x58] sm:$0xf] }
 0x1c5   :  { %v989_v35 = vpop.permute.xlu1 %988  ;;  %v2366_v46 = vpack.c.b16 %v2354_v28, %v2353_v2  ;;  %v3280_v40 = vor.u32 %v3279_v45, %v3276_v19  ;;  %v2048_v2 = vld [vmem:[#allocation2 + $0x50] sm:$0xf]  ;;  %v3474_v58 = vsel %vm6916_vm12, %v5387_v34, %v3473_v60  ;;  %v1681_v15 = vld [vmem:[#allocation2 + $0x68] sm:$0x1] }
 0x1c6   :  { %v1428_v12 = vsel %vm1398_vm7, %v1395_v9, %v989_v35  ;;  %v3478_v29 = vsel %vm6916_vm12, %v5388_v55, %v3477_v18  ;;  %v3549_v28 = vunpack.c.l.b16 %v3474_v58  ;;  %v2188_v32 = vshrl.u32 %v2048_v2, 16 }
 0x1c7   :  { %2579 = vmatmul.bf16.gmra.mxu2 %v2366_v46  ;;  %v3281_v44 = vrot.slane %v3280_v40, 4  ;;  %v3550_v41 = vunpack.c.l.b16 %v3478_v29  ;;  %v2191_v49 = vshll.u32 %v2048_v2, 16  ;;  %v1682_v9 = vsel %vm6620_vm13, 0, %v1681_v15 }
 0x1c8   :  { %v1181_v17 = vpop.permute.xlu0 %1180  ;;  %v2190_v37 = vrot.slane %v2188_v32, 4  ;;  %1683 = vst [vmem:[#allocation2 + $0x68] sm:$0x1] %v1682_v9  ;;  %v1684_v32 = vld [vmem:[#allocation2 + $0x70] sm:$0x1] }
 0x1c9   :  { %v3286_v62 = vsel %vm7007_vm11, %v3281_v44, %v3285_v53  ;;  %v1461_v23 = vsel %vm1431_vm8, %v1428_v12, %v1181_v17  ;;  %v7281_v46 = vpack.c.b16 %v3550_v41, %v3549_v28  ;;  %v2193_v11 = vrot.slane %v2191_v49, 5  ;;  %v2064_v17 = vld [vmem:[#allocation2 + $0x54] sm:$0x1]  ;;  %v1731_v44 = vld [vmem:[#allocation2 + $0x6c] sm:$0x1] }
 0x1ca   :  { %v3518_v63 = vunpack.c.l.b16 %v3286_v62  ;;  %v1503_v50 = vunpack.c.l.b16 %v1461_v23  ;;  %v5775_v53 = vld [vmem:[#allocation2 + $0xc] sm:$0xf0]  ;;  %v1732_v33 = vsel %vm6631_vm14, 0, %v1731_v44  ;;  %v5255_v12 = vld [vmem:[#allocation2 + $0x8] sm:$0xf]  ;;  %v2197_v23 = vshll.u32 %v2064_v17, 16 }
 0x1cb   :  { %v2194_v62 = vor.u32 %v2193_v11, %v2190_v37  ;;  %1733 = vst [vmem:[#allocation2 + $0x6c] sm:$0x1] %v1732_v33 }
 0x1cc   :  { %v3530_v59 = vpack.c.b16 %v3518_v63, %v3517_v61  ;;  %v2199_v7 = vrot.slane %v2197_v23, 5 }
 0x1cd   :  { %v1183_v21 = vpop.permute.xlu1 %1182 }
 0x1ce   :  { %v1463_v51 = vsel %vm1431_vm8, %v1430_v27, %v1183_v21  ;;  %3727 = vmatmul.bf16.gmra.mxu1 %v3530_v59  ;;  %v5256_v27 = vor.u32 %v5775_v53, %v5255_v12  ;;  %v1965_v21 = vld [vmem:[#allocation2 + $0x60] sm:$0xf] }
 0x1cf   :  { %v1504_v25 = vunpack.c.l.b16 %v1463_v51  ;;  %v1968_v51 = vld [vmem:[#allocation2 + $0x64] sm:$0x1] }
 0x1d0   :  { %v1586_v6 = vpop.f32.mrf.mxu0 }
 0x1d1   :  { %v1587_v42 = vadd.f32 %v7156_v0, %v1586_v6  ;;  %v1512_v14 = vpack.c.b16 %v1504_v25, %v1503_v50  ;;  %v5159_v25 = vld [vmem:[#allocation2 + $0x50] sm:$0xf]  ;;  %v2195_v6 = vrot.slane %v2194_v62, 4 }
 0x1d3   :  { %v1614_v13 = vmax.f32 %v1587_v42, 0.0  ;;  %5140 = vmatmul.msk.bf16.gmra.mxu0 %vm1528_vm9, %v1512_v14  ;;  %v2200_v49 = vsel %vm7007_vm11, %v2195_v6, %v2199_v7 }
 0x1d4   :  { %v2355_v11 = vunpack.c.l.b16 %v2200_v49 }
 0x1d5   :  { %v1630_v5 = vpack.c.bf16 %v1614_v13, %v1614_v13 }
 0x1d7   :  { %v1814_v3 = vshrl.u32 %v1630_v5, 16  ;;  %v1817_v19 = vshll.u32 %v1630_v5, 16 }
 0x1d8   :  { %v1588_v54 = vpop.f32.mrf.mxu0 }
 0x1d9   :  { %v1816_v1 = vrot.slane %v1814_v3, 7  ;;  %v1589_v35 = vadd.f32 %v7156_v0, %v1588_v54 }
 0x1db   :  { %v1819_v45 = vor.u32 %v1817_v19, %v1816_v1  ;;  %v1820_v52 = vrot.slane %v1816_v1, 4  ;;  %v1615_v26 = vmax.f32 %v1589_v35, 0.0  ;;  %v1685_v19 = vsel %vm6620_vm13, 0, %v1684_v32  ;;  %v1734_v35 = vld [vmem:[#allocation2 + $0x74] sm:$0x1] }
 0x1dc   :  { %1686 = vst [vmem:[#allocation2 + $0x70] sm:$0x1] %v1685_v19 }
 0x1dd   :  { %v1960_v40 = vsel %vm6778_vm1, %v1819_v45, %v1959_v22  ;;  %v1963_v48 = vsel %vm6620_vm13, %v1820_v52, %v1962_v4  ;;  %v1631_v39 = vpack.c.bf16 %v1615_v26, %v1615_v26  ;;  %v1735_v45 = vsel %vm6631_vm14, 0, %v1734_v35  ;;  %v5777_v35 = vld [vmem:[#allocation2 + $0x2c] sm:$0xf0] }
 0x1de   :  { %1961 = vst [vmem:[#allocation2 + $0x58] sm:$0xf] %v1960_v40  ;;  %v5776_v40 = vld [vmem:[#allocation2 + $0x1c] sm:$0xf0] }
 0x1df   :  { %1964 = vst [vmem:[#allocation2 + $0x5c] sm:$0x1] %v1963_v48  ;;  %v1822_v30 = vshrl.u32 %v1631_v39, 16  ;;  %v1825_v63 = vshll.u32 %v1631_v39, 16 }
 0x1e0   :  { %1736 = vst [vmem:[#allocation2 + $0x74] sm:$0x1] %v1735_v45 }
 0x1e1   :  { %v1824_v61 = vrot.slane %v1822_v30, 7  ;;  %v5259_v30 = vld [vmem:[#allocation2 + $0x18] sm:$0xf] }
 0x1e3   :  { %v1827_v59 = vor.u32 %v1825_v63, %v1824_v61  ;;  %v1828_v50 = vrot.slane %v1824_v61, 4  ;;  %3054 = vmatmul.bf16.vlgmr.msrb.gmra.mxu0 %v5256_v27  ;;  %v5260_v27 = vor.u32 %v5776_v40, %v5259_v30 }
 0x1e5   :  { %v1966_v10 = vsel %vm6778_vm1, %v1827_v59, %v1965_v21  ;;  %v1969_v42 = vsel %vm6620_vm13, %v1828_v50, %v1968_v51  ;;  %v7297_v14 = vpop.f32.mrf.mxu1  ;;  %v5755_v60 = vld [vmem:[#allocation2 + $0x54] sm:$0xf0] }
 0x1e6   :  { %v2049_v13 = vld [vmem:[#allocation2 + $0x58] sm:$0xf]  ;;  %1967 = vst [vmem:[#allocation2 + $0x60] sm:$0xf] %v1966_v10  ;;  %v5160_v55 = vor.u32 %v5755_v60, %v5159_v25  ;;  %v2065_v18 = vld [vmem:[#allocation2 + $0x5c] sm:$0x1] }
 0x1e7   :  { %v3159_v34 = vld [vmem:[#allocation2 + $0x58] sm:$0xf]  ;;  %v2202_v5 = vshrl.u32 %v2049_v13, 16  ;;  %v2205_v2 = vshll.u32 %v2049_v13, 16  ;;  %1970 = vst [vmem:[#allocation2 + $0x64] sm:$0x1] %v1969_v42 }
 0x1e8   :  { %v3288_v58 = vshrl.u32 %v3159_v34, 16  ;;  %2535 = vmatmul.bf16.gmra.mxu3 %v5160_v55  ;;  %v2211_v28 = vshll.u32 %v2065_v18, 16  ;;  %v3291_v54 = vshll.u32 %v3159_v34, 16  ;;  %v3160_v22 = vld [vmem:[#allocation2 + $0x5c] sm:$0x1] }
 0x1e9   :  { %v2204_v29 = vrot.slane %v2202_v5, 4  ;;  %v2207_v3 = vrot.slane %v2205_v2, 5  ;;  %v3297_v44 = vshll.u32 %v3160_v22, 16  ;;  %v3407_v59 = vld [vmem:[#allocation2 + $0x58] sm:$0xe]  ;;  %v3481_v10 = vrot.slane %v3160_v22, 5 }
 0x1ea   :  { %v3290_v41 = vrot.slane %v3288_v58, 4  ;;  %v3293_v4 = vrot.slane %v3291_v54, 5  ;;  %v2213_v26 = vrot.slane %v2211_v28, 5  ;;  %v5389_v60 = vrot.slane %v3407_v59, 9 }
 0x1eb   :  { %v2208_v1 = vor.u32 %v2207_v3, %v2204_v29  ;;  %v3299_v21 = vrot.slane %v3297_v44, 5 }
 0x1ec   :  { %v3294_v39 = vor.u32 %v3293_v4, %v3290_v41  ;;  %v3482_v58 = vsel %vm6916_vm12, %v5389_v60, %v3481_v10  ;;  %v1737_v10 = vld [vmem:[#allocation2 + $0x7c] sm:$0x1]  ;;  %v1980_v60 = vld [vmem:[#allocation2 + $0x74] sm:$0x1] }
 0x1ed   :  { %v2209_v52 = vrot.slane %v2208_v1, 4  ;;  %v7305_v37 = vpop.f32.mrf.mxu1  ;;  %v3161_v48 = vld [vmem:[#allocation2 + $0x60] sm:$0xf] }
 0x1ee   :  { %v3162_v15 = vld [vmem:[#allocation2 + $0x64] sm:$0x1]  ;;  %v3302_v53 = vshrl.u32 %v3161_v48, 16  ;;  %v3305_v9 = vshll.u32 %v3161_v48, 16  ;;  %v3295_v12 = vrot.slane %v3294_v39, 4  ;;  %v5790_v39 = vld [vmem:[%s7981_s6 + $0xb8] sm:$0xff] }
 0x1ef   :  { %v2214_v17 = vsel %vm7007_vm11, %v2209_v52, %v2213_v26  ;;  %v3311_v61 = vshll.u32 %v3162_v15, 16  ;;  %v3408_v7 = vld [vmem:[#allocation2 + $0x60] sm:$0xe]  ;;  %v3485_v29 = vrot.slane %v3162_v15, 5  ;;  %v5263_v52 = vld [vmem:[#allocation2 + $0x28] sm:$0xf]  ;;  %2997 = vmatpush.bf16.msrb.mxu3 %v5790_v39 }
 0x1f0   :  { %v2356_v33 = vunpack.c.l.b16 %v2214_v17  ;;  %v3304_v62 = vrot.slane %v3302_v53, 4  ;;  %v3307_v23 = vrot.slane %v3305_v9, 5  ;;  %v3300_v50 = vsel %vm7007_vm11, %v3295_v12, %v3299_v21  ;;  %v2050_v4 = vld [vmem:[#allocation2 + $0x60] sm:$0xf]  ;;  %v1971_v17 = vld [vmem:[#allocation2 + $0x68] sm:$0xf] }
 0x1f1   :  { %v3313_v6 = vrot.slane %v3311_v61, 5  ;;  %v5390_v55 = vrot.slane %v3408_v7, 9  ;;  %v3519_v18 = vunpack.c.l.b16 %v3300_v50  ;;  %v5264_v48 = vor.u32 %v5777_v35, %v5263_v52  ;;  %v1974_v15 = vld [vmem:[#allocation2 + $0x6c] sm:$0x1]  ;;  %v5814_v12 = vld [vmem:[%s7981_s6 + $0x178] sm:$0xff] }
 0x1f2   :  { %v2367_v63 = vpack.c.b16 %v2356_v33, %v2355_v11  ;;  %v3308_v51 = vor.u32 %v3307_v23, %v3304_v62  ;;  %v2216_v44 = vshrl.u32 %v2050_v4, 16  ;;  %v2219_v30 = vshll.u32 %v2050_v4, 16  ;;  %3753 = vmatpush.bf16.msrb.mxu2 %v5814_v12  ;;  %v2066_v50 = vld [vmem:[#allocation2 + $0x64] sm:$0x1]  ;;  %v1687_v7 = vld [vmem:[#allocation2 + $0x78] sm:$0x1] }
 0x1f3   :  { %3059 = vmatmul.bf16.gmra.mxu0 %v5260_v27  ;;  %v3486_v41 = vsel %vm6916_vm12, %v5390_v55, %v3485_v29  ;;  %v1738_v55 = vsel %vm6631_vm14, 0, %v1737_v10  ;;  %v2225_v29 = vshll.u32 %v2066_v50, 16  ;;  %v5267_v52 = vld [vmem:[#allocation2 + $0x38] sm:$0xf] }
 0x1f4   :  { %2584 = vmatmul.bf16.gmra.mxu2 %v2367_v63  ;;  %v3309_v25 = vrot.slane %v3308_v51, 4  ;;  %v3552_v32 = vunpack.c.l.b16 %v3486_v41  ;;  %v2218_v51 = vrot.slane %v2216_v44, 4  ;;  %v2221_v59 = vrot.slane %v2219_v30, 5  ;;  %1739 = vst [vmem:[#allocation2 + $0x7c] sm:$0x1] %v1738_v55 }
 0x1f5   :  { %v2565_v42 = vpop.f32.mrf.mxu1  ;;  %v1690_v30 = vld [vmem:[#allocation2 + $0x80] sm:$0x1] }
 0x1f6   :  { %v7312_v13 = vadd.f32 %v2565_v42, %v7272_v16  ;;  %v3314_v34 = vsel %vm7007_vm11, %v3309_v25, %v3313_v6  ;;  %v3551_v16 = vunpack.c.l.b16 %v3482_v58  ;;  %v1977_v42 = vld [vmem:[#allocation2 + $0x70] sm:$0xf]  ;;  %v5778_v58 = vld [vmem:[#allocation2 + $0x3c] sm:$0xf0] }
 0x1f7   :  { %v3520_v5 = vunpack.c.l.b16 %v3314_v34  ;;  %v1688_v34 = vsel %vm6620_vm13, 0, %v1687_v7  ;;  %v5268_v39 = vor.u32 %v5778_v58, %v5267_v52  ;;  %v5789_v58 = vld [vmem:[%s7981_s6 + $0xb0] sm:$0xff] }
 0x1f8   :  { %v1591_v2 = vpop.f32.mrf.mxu0  ;;  %v7323_v19 = vpack.c.b16 %v3552_v32, %v3551_v16  ;;  %1689 = vst [vmem:[#allocation2 + $0x78] sm:$0x1] %v1688_v34  ;;  %2998 = vmatpush.bf16.msrb.mxu3 %v5789_v58 }
 0x1f9   :  { %v1592_v3 = vadd.f32 %v7156_v0, %v1591_v2  ;;  %v3531_v28 = vpack.c.b16 %v3520_v5, %v3519_v18  ;;  %v2222_v5 = vor.u32 %v2221_v59, %v2218_v51  ;;  %v5163_v2 = vld [vmem:[#allocation2 + $0x60] sm:$0xf] }
 0x1fb   :  { %v1616_v54 = vmax.f32 %v1592_v3, 0.0  ;;  %3732 = vmatmul.bf16.gmra.mxu1 %v3531_v28  ;;  %v2223_v4 = vrot.slane %v2222_v5, 4 }
 0x1fd   :  { %v1632_v49 = vpack.c.bf16 %v1616_v54, %v1616_v54  ;;  %v7321_v1 = vpop.f32.mrf.mxu1 }
 0x1ff   :  { %v1830_v22 = vshrl.u32 %v1632_v49, 16  ;;  %v1833_v11 = vshll.u32 %v1632_v49, 16 }
 0x200   :  { %v1593_v45 = vpop.f32.mrf.mxu0 }
 0x201   :  { %v1832_v26 = vrot.slane %v1830_v22, 7  ;;  %v1594_v40 = vadd.f32 %v7156_v0, %v1593_v45 }
 0x203   :  { %v1835_v53 = vor.u32 %v1833_v11, %v1832_v26  ;;  %v1836_v9 = vrot.slane %v1832_v26, 4  ;;  %v1617_v33 = vmax.f32 %v1594_v40, 0.0  ;;  %3064 = vmatmul.bf16.gmra.mxu0 %v5264_v48 }
 0x205   :  { %v1972_v62 = vsel %vm6778_vm1, %v1835_v53, %v1971_v17  ;;  %v1975_v23 = vsel %vm6620_vm13, %v1836_v9, %v1974_v15  ;;  %v1633_v61 = vpack.c.bf16 %v1617_v33, %v1617_v33  ;;  %v2570_v63 = vpop.f32.mrf.mxu1  ;;  %v2227_v17 = vrot.slane %v2225_v29, 5  ;;  %v5813_v29 = vld [vmem:[%s7981_s6 + $0x170] sm:$0xff] }
 0x206   :  { %1973 = vst [vmem:[#allocation2 + $0x68] sm:$0xf] %v1972_v62  ;;  %v7337_v27 = vadd.f32 %v2570_v63, %v7297_v14  ;;  %v1740_v63 = vld [vmem:[#allocation2 + $0x84] sm:$0x1]  ;;  %3754 = vmatpush.bf16.msrb.mxu2 %v5813_v29 }
 0x207   :  { %1976 = vst [vmem:[#allocation2 + $0x6c] sm:$0x1] %v1975_v23  ;;  %v1838_v21 = vshrl.u32 %v1633_v61, 16  ;;  %v1841_v6 = vshll.u32 %v1633_v61, 16  ;;  %v2228_v9 = vsel %vm7007_vm11, %v2223_v4, %v2227_v17  ;;  %v1691_v61 = vsel %vm6620_vm13, 0, %v1690_v30 }
 0x208   :  { %1692 = vst [vmem:[#allocation2 + $0x80] sm:$0x1] %v1691_v61  ;;  %v1741_v51 = vsel %vm6631_vm14, 0, %v1740_v63  ;;  %v2357_v10 = vunpack.c.l.b16 %v2228_v9  ;;  %v5787_v9 = vld [vmem:[%s7981_s6 + $0xa0] sm:$0xff] }
 0x209   :  { %v1840_v25 = vrot.slane %v1838_v21, 7  ;;  %1742 = vst [vmem:[#allocation2 + $0x84] sm:$0x1] %v1741_v51  ;;  %v5811_v61 = vld [vmem:[%s7981_s6 + $0x160] sm:$0xff] }
 0x20b   :  { %v1843_v18 = vor.u32 %v1841_v6, %v1840_v25  ;;  %v1844_v14 = vrot.slane %v1840_v25, 4 }
 0x20d   :  { %v1978_v3 = vsel %vm6778_vm1, %v1843_v18, %v1977_v42  ;;  %v1981_v28 = vsel %vm6620_vm13, %v1844_v14, %v1980_v60  ;;  %v5756_v41 = vld [vmem:[#allocation2 + $0x64] sm:$0xf0] }
 0x20e   :  { %v2051_v54 = vld [vmem:[#allocation2 + $0x68] sm:$0xf]  ;;  %1979 = vst [vmem:[#allocation2 + $0x70] sm:$0xf] %v1978_v3  ;;  %v5164_v32 = vor.u32 %v5756_v41, %v5163_v2  ;;  %v2067_v49 = vld [vmem:[#allocation2 + $0x6c] sm:$0x1] }
 0x20f   :  { %v3163_v16 = vld [vmem:[#allocation2 + $0x68] sm:$0xf]  ;;  %v2230_v35 = vshrl.u32 %v2051_v54, 16  ;;  %v2233_v22 = vshll.u32 %v2051_v54, 16  ;;  %1982 = vst [vmem:[#allocation2 + $0x74] sm:$0x1] %v1981_v28 }
 0x210   :  { %v3316_v45 = vshrl.u32 %v3163_v16, 16  ;;  %2540 = vmatmul.bf16.gmra.mxu3 %v5164_v32  ;;  %v2239_v40 = vshll.u32 %v2067_v49, 16  ;;  %v3319_v48 = vshll.u32 %v3163_v16, 16  ;;  %v3164_v33 = vld [vmem:[#allocation2 + $0x6c] sm:$0x1] }
 0x211   :  { %v2232_v26 = vrot.slane %v2230_v35, 4  ;;  %v2235_v11 = vrot.slane %v2233_v22, 5  ;;  %v3325_v25 = vshll.u32 %v3164_v33, 16  ;;  %v5788_v54 = vld [vmem:[%s7981_s6 + $0xa8] sm:$0xff]  ;;  %v5779_v35 = vld [vmem:[#allocation2 + $0x5c] sm:$0xf0] }
 0x212   :  { %v3318_v15 = vrot.slane %v3316_v45, 4  ;;  %v3321_v53 = vrot.slane %v3319_v48, 5  ;;  %v2241_v62 = vrot.slane %v2239_v40, 5  ;;  %v5812_v16 = vld [vmem:[%s7981_s6 + $0x168] sm:$0xff]  ;;  %2999 = vmatpush.bf16.msrb.mxu3 %v5788_v54  ;;  %v3489_v17 = vrot.slane %v3164_v33, 5 }
 0x213   :  { %v2236_v44 = vor.u32 %v2235_v11, %v2232_v26  ;;  %3069 = vmatmul.bf16.gmra.mxu0 %v5268_v39  ;;  %v3327_v5 = vrot.slane %v3325_v25, 5  ;;  %v2526_v32 = vpop.f32.mrf.mxu3  ;;  %v5271_v26 = vld [vmem:[#allocation2 + $0x58] sm:$0xf]  ;;  %v3409_v11 = vld [vmem:[#allocation2 + $0x68] sm:$0xe]  ;;  %3755 = vmatpush.bf16.msrb.mxu2 %v5812_v16 }
 0x214   :  { %v3322_v23 = vor.u32 %v3321_v53, %v3318_v15  ;;  %v5272_v40 = vor.u32 %v5779_v35, %v5271_v26  ;;  %v5275_v29 = vld [vmem:[#allocation2 + $0x68] sm:$0xf]  ;;  %v1989_v26 = vld [vmem:[#allocation2 + $0x80] sm:$0xf] }
 0x215   :  { %v2237_v12 = vrot.slane %v2236_v44, 4  ;;  %v3165_v21 = vld [vmem:[#allocation2 + $0x70] sm:$0xf]  ;;  %v5391_v44 = vrot.slane %v3409_v11, 9  ;;  %v1992_v11 = vld [vmem:[#allocation2 + $0x84] sm:$0x1] }
 0x216   :  { %v3166_v50 = vld [vmem:[#allocation2 + $0x74] sm:$0x1]  ;;  %v3330_v6 = vshrl.u32 %v3165_v21, 16  ;;  %v3333_v7 = vshll.u32 %v3165_v21, 16  ;;  %v3323_v60 = vrot.slane %v3322_v23, 4  ;;  %3000 = vmatpush.bf16.msrb.mxu3 %v5787_v9 }
 0x217   :  { %v2242_v59 = vsel %vm7007_vm11, %v2237_v12, %v2241_v62  ;;  %v3339_v18 = vshll.u32 %v3166_v50, 16  ;;  %v3410_v39 = vld [vmem:[#allocation2 + $0x70] sm:$0xe]  ;;  %v3493_v15 = vrot.slane %v3166_v50, 5  ;;  %v3490_v62 = vsel %vm6916_vm12, %v5391_v44, %v3489_v17  ;;  %3756 = vmatpush.bf16.msrb.mxu2 %v5811_v61 }
 0x218   :  { %v2358_v42 = vunpack.c.l.b16 %v2242_v59  ;;  %v3332_v34 = vrot.slane %v3330_v6, 4  ;;  %v3335_v55 = vrot.slane %v3333_v7, 5  ;;  %v3328_v3 = vsel %vm7007_vm11, %v3323_v60, %v3327_v5  ;;  %v2052_v25 = vld [vmem:[#allocation2 + $0x70] sm:$0xf] }
 0x219   :  { %v3341_v41 = vrot.slane %v3339_v18, 5  ;;  %v3521_v45 = vunpack.c.l.b16 %v3328_v3  ;;  %v5392_v30 = vrot.slane %v3410_v39, 9  ;;  %v3553_v63 = vunpack.c.l.b16 %v3490_v62  ;;  %v5167_v44 = vld [vmem:[#allocation2 + $0x70] sm:$0xf] }
 0x21a   :  { %v2368_v14 = vpack.c.b16 %v2358_v42, %v2357_v10  ;;  %v3336_v2 = vor.u32 %v3335_v55, %v3332_v34  ;;  %v1983_v42 = vld [vmem:[#allocation2 + $0x78] sm:$0xf]  ;;  %v1986_v34 = vld [vmem:[#allocation2 + $0x7c] sm:$0x1]  ;;  %v5780_v55 = vld [vmem:[#allocation2 + $0x6c] sm:$0xf0] }
 0x21b   :  { %v3494_v23 = vsel %vm6916_vm12, %v5392_v30, %v3493_v15  ;;  %v2244_v18 = vshrl.u32 %v2052_v25, 16  ;;  %v2247_v58 = vshll.u32 %v2052_v25, 16  ;;  %v5276_v54 = vor.u32 %v5780_v55, %v5275_v29 }
 0x21c   :  { %2589 = vmatmul.bf16.gmra.mxu2 %v2368_v14  ;;  %v3337_v28 = vrot.slane %v3336_v2, 4  ;;  %v3554_v21 = vunpack.c.l.b16 %v3494_v23 }
 0x21e   :  { %v3342_v22 = vsel %vm7007_vm11, %v3337_v28, %v3341_v41  ;;  %v7384_v59 = vpack.c.b16 %v3554_v21, %v3553_v63 }
 0x21f   :  { %v2575_v49 = vpop.f32.mrf.mxu2  ;;  %v3522_v52 = vunpack.c.l.b16 %v3342_v22 }
 0x220   :  { %v7371_v4 = vadd.f32 %v2575_v49, %v2526_v32  ;;  %v2249_v32 = vrot.slane %v2247_v58, 5  ;;  %v2068_v49 = vld [vmem:[#allocation2 + $0x74] sm:$0x1] }
 0x221   :  { %v3532_v48 = vpack.c.b16 %v3522_v52, %v3521_v45  ;;  %v1693_v45 = vld [vmem:[#allocation2 + $0x88] sm:$0x1]  ;;  %v1743_v52 = vld [vmem:[#allocation2 + $0x8c] sm:$0x1]  ;;  %v2253_v62 = vshll.u32 %v2068_v49, 16 }
 0x223   :  { %3074 = vmatmul.bf16.gmra.mxu0 %v5272_v40  ;;  %3737 = vmatmul.bf16.gmra.mxu1 %v3532_v48  ;;  %v1596_v53 = vpop.f32.mrf.mxu0  ;;  %v1694_v40 = vsel %vm6620_vm13, 0, %v1693_v45  ;;  %v1744_v48 = vsel %vm6631_vm14, 0, %v1743_v52 }
 0x224   :  { %v1597_v12 = vadd.f32 %v7156_v0, %v1596_v53  ;;  %1695 = vst [vmem:[#allocation2 + $0x88] sm:$0x1] %v1694_v40 }
 0x225   :  { %1745 = vst [vmem:[#allocation2 + $0x8c] sm:$0x1] %v1744_v48 }
 0x226   :  { %v1618_v33 = vmax.f32 %v1597_v12, 0.0 }
 0x228   :  { %v1634_v51 = vpack.c.bf16 %v1618_v33, %v1618_v33 }
 0x22a   :  { %v1846_v50 = vshrl.u32 %v1634_v51, 16  ;;  %v1849_v10 = vshll.u32 %v1634_v51, 16 }
 0x22b   :  { %v1598_v6 = vpop.f32.mrf.mxu0 }
 0x22c   :  { %v1848_v7 = vrot.slane %v1846_v50, 7  ;;  %v1599_v60 = vadd.f32 %v7156_v0, %v1598_v6  ;;  %v2246_v0 = vrot.slane %v2244_v18, 4 }
 0x22e   :  { %v1851_v14 = vor.u32 %v1849_v10, %v1848_v7  ;;  %v1852_v5 = vrot.slane %v1848_v7, 4  ;;  %v1619_v2 = vmax.f32 %v1599_v60, 0.0  ;;  %v2250_v15 = vor.u32 %v2249_v32, %v2246_v0 }
 0x230   :  { %v1984_v3 = vsel %vm6778_vm1, %v1851_v14, %v1983_v42  ;;  %v1987_v28 = vsel %vm6620_vm13, %v1852_v5, %v1986_v34  ;;  %v1635_v41 = vpack.c.bf16 %v1619_v2, %v1619_v2  ;;  %v2251_v21 = vrot.slane %v2250_v15, 4  ;;  %v5786_v5 = vld [vmem:[%s7981_s6 + $0x98] sm:$0xff] }
 0x231   :  { %1985 = vst [vmem:[#allocation2 + $0x78] sm:$0xf] %v1984_v3  ;;  %v2255_v42 = vrot.slane %v2253_v62, 5  ;;  %v5810_v2 = vld [vmem:[%s7981_s6 + $0x158] sm:$0xff]  ;;  %3001 = vmatpush.bf16.msrb.mxu3 %v5786_v5 }
 0x232   :  { %1988 = vst [vmem:[#allocation2 + $0x7c] sm:$0x1] %v1987_v28  ;;  %v1854_v16 = vshrl.u32 %v1635_v41, 16  ;;  %v1857_v22 = vshll.u32 %v1635_v41, 16  ;;  %v1696_v28 = vld [vmem:[#allocation2 + $0x90] sm:$0x1]  ;;  %3757 = vmatpush.bf16.msrb.mxu2 %v5810_v2 }
 0x233   :  { %3079 = vmatmul.bf16.gmra.mxu0 %v5276_v54  ;;  %v2256_v58 = vsel %vm7007_vm11, %v2251_v21, %v2255_v42  ;;  %v1746_v41 = vld [vmem:[#allocation2 + $0x94] sm:$0x1]  ;;  %v1697_v32 = vsel %vm6620_vm13, 0, %v1696_v28  ;;  %v5808_v42 = vld [vmem:[%s7981_s6 + $0x148] sm:$0xff]  ;;  %v5835_v28 = vld [vmem:[%s7981_s6 + $0x1e0] sm:$0xff] }
 0x234   :  { %v1856_v35 = vrot.slane %v1854_v16, 7  ;;  %v1747_v49 = vsel %vm6631_vm14, 0, %v1746_v41  ;;  %1698 = vst [vmem:[#allocation2 + $0x90] sm:$0x1] %v1697_v32  ;;  %v2359_v40 = vunpack.c.l.b16 %v2256_v58  ;;  %v5845_v41 = vld [vmem:[%s7981_s6 + $0x230] sm:$0xff] }
 0x235   :  { %1748 = vst [vmem:[#allocation2 + $0x94] sm:$0x1] %v1747_v49  ;;  %v5930_v32 = vld [vmem:[%s7980_s5] ss:$0 sm:$0xff] }
 0x236   :  { %v1859_v39 = vor.u32 %v1857_v22, %v1856_v35  ;;  %v1860_v17 = vrot.slane %v1856_v35, 4  ;;  %v7413_v35 = vpop.f32.mrf.mxu3  ;;  %v7415_v22 = vpop.f32.mrf.mxu2 }
 0x238   :  { %v1990_v53 = vsel %vm6778_vm1, %v1859_v39, %v1989_v26  ;;  %v1993_v9 = vsel %vm6620_vm13, %v1860_v17, %v1992_v11  ;;  %v5757_v30 = vld [vmem:[#allocation2 + $0x74] sm:$0xf0] }
 0x239   :  { %v2053_v12 = vld [vmem:[#allocation2 + $0x78] sm:$0xf]  ;;  %1991 = vst [vmem:[#allocation2 + $0x80] sm:$0xf] %v1990_v53  ;;  %v5168_v23 = vor.u32 %v5757_v30, %v5167_v44  ;;  %v2069_v33 = vld [vmem:[#allocation2 + $0x7c] sm:$0x1] }
 0x23a   :  { %v2258_v61 = vshrl.u32 %v2053_v12, 16  ;;  %v2261_v63 = vshll.u32 %v2053_v12, 16  ;;  %1994 = vst [vmem:[#allocation2 + $0x84] sm:$0x1] %v1993_v9  ;;  %v2267_v51 = vshll.u32 %v2069_v33, 16  ;;  %v5838_v30 = vld [vmem:[%s7981_s6 + $0x1f8] sm:$0xff] }
 0x23b   :  { %v3167_v50 = vld [vmem:[#allocation2 + $0x78] sm:$0xf]  ;;  %2545 = vmatmul.bf16.gmra.mxu3 %v5168_v23  ;;  %v7399_v14 = vld [vmem:[#allocation2 + $0x7c] sm:$0x1]  ;;  %v5785_v23 = vld [vmem:[%s7981_s6 + $0x90] sm:$0xff]  ;;  %4365 = vmatpush.bf16.msra.mxu0 %v5838_v30 }
 0x23c   :  { %v2260_v25 = vrot.slane %v2258_v61, 4  ;;  %v2263_v6 = vrot.slane %v2261_v63, 5  ;;  %v3344_v7 = vshrl.u32 %v3167_v50, 16  ;;  %v3347_v10 = vshll.u32 %v3167_v50, 16  ;;  %v5279_v18 = vld [vmem:[#allocation2 + $0x78] sm:$0xf]  ;;  %3002 = vmatpush.bf16.msrb.mxu3 %v5785_v23 }
 0x23d   :  { %v2269_v3 = vrot.slane %v2267_v51, 5  ;;  %v3353_v39 = vshll.u32 %v7399_v14, 16  ;;  %v5809_v33 = vld [vmem:[%s7981_s6 + $0x150] sm:$0xff]  ;;  %v5784_v50 = vld [vmem:[%s7981_s6 + $0x88] sm:$0xff]  ;;  %v3411_v5 = vld [vmem:[#allocation2 + $0x78] sm:$0xe] }
 0x23e   :  { %v2264_v60 = vor.u32 %v2263_v6, %v2260_v25  ;;  %v3346_v34 = vrot.slane %v3344_v7, 4  ;;  %v3349_v55 = vrot.slane %v3347_v10, 5  ;;  %v5837_v61 = vld [vmem:[%s7981_s6 + $0x1f0] sm:$0xff]  ;;  %3758 = vmatpush.bf16.msrb.mxu2 %v5809_v33  ;;  %v2531_v25 = vpop.f32.mrf.mxu3  ;;  %v5807_v23 = vld [vmem:[%s7981_s6 + $0x140] sm:$0xff] }
 0x23f   :  { %v3355_v12 = vrot.slane %v3353_v39, 5  ;;  %4366 = vmatpush.bf16.msra.mxu0 %v5837_v61  ;;  %v5843_v33 = vld [vmem:[%s7981_s6 + $0x220] sm:$0xff]  ;;  %v1995_v61 = vld [vmem:[#allocation2 + $0x88] sm:$0xf] }
 0x240   :  { %v2265_v29 = vrot.slane %v2264_v60, 4  ;;  %v5781_v54 = vld [vmem:[#allocation2 + $0x7c] sm:$0xf0]  ;;  %v3350_v0 = vor.u32 %v3349_v55, %v3346_v34  ;;  %v5846_v60 = vld [vmem:[%s7981_s6 + $0x238] sm:$0xff]  ;;  %3003 = vmatpush.bf16.msrb.mxu3 %v5784_v50 }
 0x241   :  { %v3169_v16 = vld [vmem:[#allocation2 + $0x80] sm:$0xf]  ;;  %v5280_v45 = vor.u32 %v5781_v54, %v5279_v18  ;;  %v3170_v26 = vld [vmem:[#allocation2 + $0x84] sm:$0x1]  ;;  %v5836_v18 = vld [vmem:[%s7981_s6 + $0x1e8] sm:$0xff]  ;;  %4799 = vmatpush.bf16.msrb.mxu1 %v5846_v60  ;;  %v3497_v54 = vrot.slane %v7399_v14, 5 }
 0x242   :  { %v2270_v52 = vsel %vm7007_vm11, %v2265_v29, %v2269_v3  ;;  %v3358_v11 = vshrl.u32 %v3169_v16, 16  ;;  %v3361_v17 = vshll.u32 %v3169_v16, 16  ;;  %v3351_v44 = vrot.slane %v3350_v0, 4  ;;  %3759 = vmatpush.bf16.msrb.mxu2 %v5808_v42  ;;  %v3412_v2 = vld [vmem:[#allocation2 + $0x80] sm:$0xe]  ;;  %v5842_v42 = vld [vmem:[%s7981_s6 + $0x218] sm:$0xff] }
 0x243   :  { %v2360_v48 = vunpack.c.l.b16 %v2270_v52  ;;  %3084 = vmatmul.bf16.gmra.mxu0 %v5280_v45  ;;  %v3367_v9 = vshll.u32 %v3170_v26, 16  ;;  %v5393_v29 = vrot.slane %v3411_v5, 9  ;;  %v5394_v16 = vrot.slane %v3412_v2, 9  ;;  %v5783_v14 = vld [vmem:[%s7981_s6 + $0x80] sm:$0xff] }
 0x244   :  { %v3360_v38 = vrot.slane %v3358_v11, 4  ;;  %v3363_v53 = vrot.slane %v3361_v17, 5  ;;  %v3356_v63 = vsel %vm7007_vm11, %v3351_v44, %v3355_v12  ;;  %4367 = vmatpush.bf16.msra.mxu0 %v5836_v18  ;;  %v3501_v0 = vrot.slane %v3170_v26, 5  ;;  %v5834_v26 = vld [vmem:[%s7981_s6 + $0x1d8] sm:$0xff]  ;;  %3004 = vmatpush.bf16.msrb.mxu3 %v5783_v14  ;;  %v2054_v44 = vld [vmem:[#allocation2 + $0x80] sm:$0xf] }
 0x245   :  { %v2369_v15 = vpack.c.b16 %v2360_v48, %v2359_v40  ;;  %v3369_v51 = vrot.slane %v3367_v9, 5  ;;  %v3523_v34 = vunpack.c.l.b16 %v3356_v63  ;;  %4800 = vmatpush.bf16.msrb.mxu1 %v5845_v41  ;;  %v3498_v45 = vsel %vm6916_vm12, %v5393_v29, %v3497_v54  ;;  %v5844_v40 = vld [vmem:[%s7981_s6 + $0x228] sm:$0xff]  ;;  %v5833_v9 = vld [vmem:[%s7981_s6 + $0x1d0] sm:$0xff]  ;;  %v7494_v18 = vld [vmem:[#allocation2] sm:$0xe] }
 0x246   :  { %v3364_v62 = vor.u32 %v3363_v53, %v3360_v38  ;;  %v3502_v52 = vsel %vm6916_vm12, %v5394_v16, %v3501_v0  ;;  %v3555_v48 = vunpack.c.l.b16 %v3498_v45  ;;  %v1998_v63 = vld [vmem:[#allocation2 + $0x8c] sm:$0x1]  ;;  %3760 = vmatpush.bf16.msrb.mxu2 %v5807_v23  ;;  %v7496_v29 = vld [vmem:[#allocation2 + $0x4] sm:$0x1]  ;;  %v3852_v16 = vld [vmem:[#allocation2 + $0x18] sm:$0xf] }
 0x247   :  { %2594 = vmatmul.bf16.gmra.mxu2 %v2369_v15  ;;  %v3556_v39 = vunpack.c.l.b16 %v3502_v52  ;;  %v5841_v0 = vld [vmem:[%s7981_s6 + $0x210] sm:$0xff]  ;;  %v2070_v52 = vld [vmem:[#allocation2 + $0x84] sm:$0x1] }
 0x248   :  { %v3365_v21 = vrot.slane %v3364_v62, 4  ;;  %4368 = vmatpush.bf16.msra.mxu0 %v5835_v28  ;;  %v3851_v28 = vld [vmem:[#allocation2 + $0x10] sm:$0xf]  ;;  %v2004_v45 = vld [vmem:[#allocation2 + $0x94] sm:$0x1] }
 0x249   :  { %4801 = vmatpush.bf16.msrb.mxu1 %v5844_v40  ;;  %v7473_v38 = vpack.c.b16 %v3556_v39, %v3555_v48  ;;  %v5854_v48 = vld [vmem:[%s7981_s6 + $0x278] sm:$0xff]  ;;  %v5840_v39 = vld [vmem:[%s7981_s6 + $0x208] sm:$0xff] }
 0x24a   :  { %v2580_v6 = vpop.f32.mrf.mxu2  ;;  %v3370_v10 = vsel %vm7007_vm11, %v3365_v21, %v3369_v51  ;;  %v2272_v21 = vshrl.u32 %v2054_v44, 16  ;;  %4848 = vmatpush.bf16.msra.mxu2 %v5854_v48 }
 0x24b   :  { %v7437_v7 = vadd.f32 %v2580_v6, %v2531_v25  ;;  %v3524_v55 = vunpack.c.l.b16 %v3370_v10  ;;  %v2275_v6 = vshll.u32 %v2054_v44, 16  ;;  %v5832_v10 = vld [vmem:[%s7981_s6 + $0x1c8] sm:$0xff] }
 0x24c   :  { %4369 = vmatpush.bf16.msra.mxu0 %v5834_v26  ;;  %v2274_v2 = vrot.slane %v2272_v21, 4  ;;  %v5237_v26 = vrot.slane %v7494_v18, 9  ;;  %v2644_v44 = vld [vmem:[#allocation2 + $0xc] sm:$0x1]  ;;  %v3901_v21 = vshll.u32 %v3852_v16, 16 }
 0x24d   :  { %v3533_v58 = vpack.c.b16 %v3524_v55, %v3523_v34  ;;  %4802 = vmatpush.bf16.msrb.mxu1 %v5843_v33 }
 0x24f   :  { %3742 = vmatmul.bf16.gmra.mxu1 %v3533_v58  ;;  %v2277_v58 = vrot.slane %v2275_v6, 5 }
 0x250   :  { %v1601_v3 = vpop.f32.mrf.mxu0  ;;  %4370 = vmatpush.bf16.msra.mxu0 %v5833_v9  ;;  %v3884_v9 = vshrl.u32 %v3851_v28, 16 }
 0x251   :  { %v1602_v49 = vadd.f32 %v5930_v32, %v1601_v3  ;;  %4803 = vmatpush.bf16.msrb.mxu1 %v5842_v42  ;;  %v5831_v3 = vld [vmem:[%s7981_s6 + $0x1c0] sm:$0xff]  ;;  %v2278_v14 = vor.u32 %v2277_v58, %v2274_v2  ;;  %v3903_v58 = vrot.slane %v3901_v21, 5  ;;  %v3867_v21 = vld [vmem:[#allocation2 + $0x14] sm:$0x1] }
 0x253   :  { %v1620_v11 = vmax.f32 %v1602_v49, 0.0  ;;  %v2001_v49 = vld [vmem:[#allocation2 + $0x90] sm:$0xf] }
 0x254   :  { %4371 = vmatpush.bf16.msra.mxu0 %v5832_v10  ;;  %v2279_v10 = vrot.slane %v2278_v14, 4 }
 0x255   :  { %v1636_v17 = vpack.c.bf16 %v1620_v11, %v1620_v11  ;;  %4804 = vmatpush.bf16.msrb.mxu1 %v5841_v0 }
 0x257   :  { %v1862_v15 = vshrl.u32 %v1636_v17, 16  ;;  %v1865_v12 = vshll.u32 %v1636_v17, 16  ;;  %v5171_v17 = vld [vmem:[#allocation2 + $0x80] sm:$0xf] }
 0x258   :  { %v1603_v53 = vpop.f32.mrf.mxu0  ;;  %4372 = vmatpush.bf16.msra.mxu0 %v5831_v3 }
 0x259   :  { %v1864_v30 = vrot.slane %v1862_v15, 7  ;;  %v1604_v62 = vadd.f32 %v5930_v32, %v1603_v53  ;;  %v5830_v32 = vld [vmem:[%s7981_s6 + $0x1b8] sm:$0xff]  ;;  %v2643_v15 = vld [vmem:[#allocation2 + $0x8] sm:$0xe]  ;;  %v2710_v53 = vrot.slane %v7496_v29, 5  ;;  %4805 = vmatpush.bf16.msrb.mxu1 %v5840_v39  ;;  %v5839_v29 = vld [vmem:[%s7981_s6 + $0x200] sm:$0xff] }
 0x25a   :  { %4316 = vmatpush.bf16.msra.mxu3 %v5830_v32  ;;  %v5238_v18 = vrot.slane %v2643_v15, 9 }
 0x25b   :  { %v1867_v51 = vor.u32 %v1865_v12, %v1864_v30  ;;  %v1868_v50 = vrot.slane %v1864_v30, 4  ;;  %v1621_v25 = vmax.f32 %v1604_v62, 0.0  ;;  %v3887_v30 = vshll.u32 %v3851_v28, 16 }
 0x25c   :  { %v3898_v12 = vshrl.u32 %v3852_v16, 16  ;;  %v3886_v16 = vrot.slane %v3884_v9, 4  ;;  %v2711_v48 = vsel %vm6916_vm12, %v5237_v26, %v2710_v53  ;;  %v7532_v9 = vpop.f32.mrf.mxu2 }
 0x25d   :  { %v1996_v60 = vsel %vm6778_vm1, %v1867_v51, %v1995_v61  ;;  %v1999_v34 = vsel %vm6620_vm13, %v1868_v50, %v1998_v63  ;;  %v1637_v55 = vpack.c.bf16 %v1621_v25, %v1621_v25  ;;  %v2281_v63 = vshll.u32 %v2070_v52, 16  ;;  %4806 = vmatpush.bf16.msrb.mxu1 %v5839_v29  ;;  %v5853_v29 = vld [vmem:[%s7981_s6 + $0x270] sm:$0xff] }
 0x25e   :  { %1997 = vst [vmem:[#allocation2 + $0x88] sm:$0xf] %v1996_v60  ;;  %v3900_v2 = vrot.slane %v3898_v12, 4  ;;  %v3889_v0 = vrot.slane %v3887_v30, 5  ;;  %4849 = vmatpush.bf16.msra.mxu2 %v5853_v29 }
 0x25f   :  { %2000 = vst [vmem:[#allocation2 + $0x8c] sm:$0x1] %v1999_v34  ;;  %v1870_v5 = vshrl.u32 %v1637_v55, 16  ;;  %v1873_v54 = vshll.u32 %v1637_v55, 16  ;;  %v2283_v3 = vrot.slane %v2281_v63, 5 }
 0x261   :  { %v1872_v41 = vrot.slane %v1870_v5, 7  ;;  %v2714_v5 = vrot.slane %v2644_v44, 5  ;;  %v2284_v32 = vsel %vm7007_vm11, %v2279_v10, %v2283_v3  ;;  %v7530_v44 = vpop.f32.mrf.mxu3 }
 0x263   :  { %v1875_v11 = vor.u32 %v1873_v54, %v1872_v41  ;;  %v1876_v40 = vrot.slane %v1872_v41, 4  ;;  %v2715_v39 = vsel %vm6916_vm12, %v5238_v18, %v2714_v5 }
 0x265   :  { %v2002_v62 = vsel %vm6778_vm1, %v1875_v11, %v2001_v49  ;;  %v2005_v23 = vsel %vm6620_vm13, %v1876_v40, %v2004_v45  ;;  %v5758_v33 = vld [vmem:[#allocation2 + $0x84] sm:$0xf0]  ;;  %v3868_v11 = vld [vmem:[#allocation2 + $0x1c] sm:$0x1] }
 0x266   :  { %v2055_v61 = vld [vmem:[#allocation2 + $0x88] sm:$0xf]  ;;  %2003 = vst [vmem:[#allocation2 + $0x90] sm:$0xf] %v2002_v62  ;;  %v5172_v51 = vor.u32 %v5758_v33, %v5171_v17  ;;  %v2071_v50 = vld [vmem:[#allocation2 + $0x8c] sm:$0x1]  ;;  %v3904_v33 = vor.u32 %v3903_v58, %v3900_v2 }
 0x267   :  { %v2286_v25 = vshrl.u32 %v2055_v61, 16  ;;  %v2289_v6 = vshll.u32 %v2055_v61, 16  ;;  %2006 = vst [vmem:[#allocation2 + $0x94] sm:$0x1] %v2005_v23  ;;  %v2295_v42 = vshll.u32 %v2071_v50, 16  ;;  %v2361_v61 = vunpack.c.l.b16 %v2284_v32 }
 0x268   :  { %v3171_v60 = vld [vmem:[#allocation2 + $0x88] sm:$0xf]  ;;  %2550 = vmatmul.bf16.gmra.mxu3 %v5172_v51  ;;  %v7524_v52 = vld [vmem:[#allocation2 + $0x8c] sm:$0x1]  ;;  %v3890_v50 = vor.u32 %v3889_v0, %v3886_v16  ;;  %v3905_v18 = vrot.slane %v3904_v33, 4 }
 0x269   :  { %v2288_v8 = vrot.slane %v2286_v25, 4  ;;  %v2291_v34 = vrot.slane %v2289_v6, 5  ;;  %v3372_v36 = vshrl.u32 %v3171_v60, 16  ;;  %v3375_v55 = vshll.u32 %v3171_v60, 16  ;;  %v5283_v40 = vld [vmem:[#allocation2 + $0x88] sm:$0xf] }
 0x26a   :  { %v2297_v45 = vrot.slane %v2295_v42, 5  ;;  %v3381_v26 = vshll.u32 %v7524_v52, 16  ;;  %v3907_v25 = vshll.u32 %v3868_v11, 16  ;;  %v5829_v6 = vld [vmem:[%s7981_s6 + $0x1b0] sm:$0xff]  ;;  %v3854_v58 = vld [vmem:[#allocation2 + $0x28] sm:$0xf] }
 0x26b   :  { %v2292_v28 = vor.u32 %v2291_v34, %v2288_v8  ;;  %v3374_v41 = vrot.slane %v3372_v36, 4  ;;  %v3377_v54 = vrot.slane %v3375_v55, 5  ;;  %v2788_v34 = vunpack.c.l.b16 %v2711_v48  ;;  %4317 = vmatpush.bf16.msra.mxu3 %v5829_v6  ;;  %v3853_v0 = vld [vmem:[#allocation2 + $0x20] sm:$0xf]  ;;  %v2536_v32 = vpop.f32.mrf.mxu3  ;;  %v3413_v48 = vld [vmem:[#allocation2 + $0x88] sm:$0xe] }
 0x26c   :  { %v2789_v36 = vunpack.c.l.b16 %v2715_v39  ;;  %v3893_v55 = vshll.u32 %v3867_v21, 16  ;;  %v3383_v5 = vrot.slane %v3381_v26, 5  ;;  %v3891_v3 = vrot.slane %v3890_v50, 4 }
 0x26d   :  { %v2293_v49 = vrot.slane %v2292_v28, 4  ;;  %v5782_v14 = vld [vmem:[#allocation2 + $0x8c] sm:$0xf0]  ;;  %v3378_v15 = vor.u32 %v3377_v54, %v3374_v41  ;;  %v3909_v28 = vrot.slane %v3907_v25, 5  ;;  %v3505_v33 = vrot.slane %v7524_v52, 5 }
 0x26e   :  { %v3173_v17 = vld [vmem:[#allocation2 + $0x90] sm:$0xf]  ;;  %v5284_v30 = vor.u32 %v5782_v14, %v5283_v40  ;;  %v7536_v62 = vld [vmem:[#allocation2 + $0x94] sm:$0x1]  ;;  %v3895_v11 = vrot.slane %v3893_v55, 5  ;;  %v3926_v14 = vshrl.u32 %v3854_v58, 16 }
 0x26f   :  { %v2298_v12 = vsel %vm7007_vm11, %v2293_v49, %v2297_v45  ;;  %v3386_v23 = vshrl.u32 %v3173_v17, 16  ;;  %v3389_v53 = vshll.u32 %v3173_v17, 16  ;;  %v3379_v42 = vrot.slane %v3378_v15, 4  ;;  %v3414_v39 = vld [vmem:[#allocation2 + $0x90] sm:$0xe] }
 0x270   :  { %v2362_v63 = vunpack.c.l.b16 %v2298_v12  ;;  %3089 = vmatmul.bf16.gmra.mxu0 %v5284_v30  ;;  %v3395_v8 = vshll.u32 %v7536_v62, 16  ;;  %v2804_v45 = vpack.c.b16 %v2789_v36, %v2788_v34  ;;  %v3910_v40 = vsel %vm7007_vm11, %v3905_v18, %v3909_v28  ;;  %v2647_v30 = vld [vmem:[#allocation2 + $0x18] sm:$0xe]  ;;  %v2648_v12 = vld [vmem:[#allocation2 + $0x1c] sm:$0x1] }
 0x271   :  { %v3388_v51 = vrot.slane %v3386_v23, 4  ;;  %v3391_v60 = vrot.slane %v3389_v53, 5  ;;  %v3384_v41 = vsel %vm7007_vm11, %v3379_v42, %v3383_v5  ;;  %v3929_v23 = vshll.u32 %v3854_v58, 16  ;;  %v2645_v42 = vld [vmem:[#allocation2 + $0x10] sm:$0xe] }
 0x272   :  { %v2370_v10 = vpack.c.b16 %v2362_v63, %v2361_v61  ;;  %v3397_v16 = vrot.slane %v3395_v8, 5  ;;  %v3525_v61 = vunpack.c.l.b16 %v3384_v41  ;;  %v3896_v26 = vsel %vm7007_vm11, %v3891_v3, %v3895_v11  ;;  %v4465_v58 = vld [vmem:[#allocation2 + $0x1c] sm:$0x1]  ;;  %v4462_v41 = vld [vmem:[#allocation2 + $0x10] sm:$0xe] }
 0x273   :  { %v3392_v2 = vor.u32 %v3391_v60, %v3388_v51  ;;  %v3912_v53 = vshrl.u32 %v3853_v0, 16  ;;  %v3915_v21 = vshll.u32 %v3853_v0, 16  ;;  %v5395_v51 = vrot.slane %v3413_v48, 9  ;;  %v2646_v60 = vld [vmem:[#allocation2 + $0x14] sm:$0x1] }
 0x274   :  { %2599 = vmatmul.bf16.gmra.mxu2 %v2370_v10  ;;  %v5396_v50 = vrot.slane %v3414_v39, 9  ;;  %v3509_v25 = vrot.slane %v7536_v62, 5  ;;  %v4156_v10 = vunpack.c.l.b16 %v3910_v40  ;;  %v5240_v8 = vrot.slane %v2647_v30, 9 }
 0x275   :  { %v3393_v54 = vrot.slane %v3392_v2, 4  ;;  %v2722_v34 = vrot.slane %v2648_v12, 5  ;;  %v3928_v36 = vrot.slane %v3926_v14, 4  ;;  %v3931_v52 = vrot.slane %v3929_v23, 5  ;;  %v4464_v2 = vld [vmem:[#allocation2 + $0x18] sm:$0xe] }
 0x276   :  { %v3506_v55 = vsel %vm6916_vm12, %v5395_v51, %v3505_v33  ;;  %v3510_v18 = vsel %vm6916_vm12, %v5396_v50, %v3509_v25  ;;  %v4155_v5 = vunpack.c.l.b16 %v3896_v26  ;;  %v5239_v3 = vrot.slane %v2645_v42, 9  ;;  %v5852_v51 = vld [vmem:[%s7981_s6 + $0x268] sm:$0xff]  ;;  %v3856_v25 = vld [vmem:[#allocation2 + $0x38] sm:$0xf] }
 0x277   :  { %v2585_v49 = vpop.f32.mrf.mxu2  ;;  %v3398_v15 = vsel %vm7007_vm11, %v3393_v54, %v3397_v16  ;;  %v3557_v29 = vunpack.c.l.b16 %v3506_v55  ;;  %v3558_v62 = vunpack.c.l.b16 %v3510_v18  ;;  %v2718_v28 = vrot.slane %v2646_v60, 5  ;;  %4850 = vmatpush.bf16.msra.mxu2 %v5852_v51 }
 0x278   :  { %v7550_v17 = vadd.f32 %v2585_v49, %v2536_v32  ;;  %3005 = vmatmul.bf16.vlgmr.msrb.gmra.mxu3 %v2804_v45  ;;  %v3526_v63 = vunpack.c.l.b16 %v3398_v15  ;;  %v3914_v54 = vrot.slane %v3912_v53, 4  ;;  %v3917_v16 = vrot.slane %v3915_v21, 5  ;;  %v4463_v32 = vld [vmem:[#allocation2 + $0x14] sm:$0x1]  ;;  %v3870_v49 = vld [vmem:[#allocation2 + $0x2c] sm:$0x1] }
 0x279   :  { %v4171_v0 = vpack.c.b16 %v4156_v10, %v4155_v5  ;;  %v7562_v45 = vpack.c.b16 %v3558_v62, %v3557_v29  ;;  %v2723_v11 = vsel %vm6916_vm12, %v5240_v8, %v2722_v34  ;;  %v5622_v40 = vrot.slane %v4464_v2, 9  ;;  %v3869_v15 = vld [vmem:[#allocation2 + $0x24] sm:$0x1]  ;;  %v3855_v8 = vld [vmem:[#allocation2 + $0x30] sm:$0xf] }
 0x27a   :  { %v3534_v6 = vpack.c.b16 %v3526_v63, %v3525_v61  ;;  %v4532_v14 = vrot.slane %v4465_v58, 5  ;;  %v3932_v48 = vor.u32 %v3931_v52, %v3928_v36  ;;  %v5621_v39 = vrot.slane %v4462_v41, 9  ;;  %v5828_v61 = vld [vmem:[%s7981_s6 + $0x1a8] sm:$0xff]  ;;  %v2649_v29 = vld [vmem:[#allocation2 + $0x20] sm:$0xe] }
 0x27b   :  { %v2719_v30 = vsel %vm6916_vm12, %v5239_v3, %v2718_v28  ;;  %v4528_v12 = vrot.slane %v4463_v32, 5  ;;  %v3918_v23 = vor.u32 %v3917_v16, %v3914_v54  ;;  %v3935_v33 = vshll.u32 %v3870_v49, 16  ;;  %4318 = vmatpush.bf16.msra.mxu3 %v5828_v61  ;;  %v2651_v5 = vld [vmem:[#allocation2 + $0x28] sm:$0xe]  ;;  %v2652_v2 = vld [vmem:[#allocation2 + $0x2c] sm:$0x1] }
 0x27c   :  { %3747 = vmatmul.bf16.gmra.mxu1 %v3534_v6  ;;  %v2791_v63 = vunpack.c.l.b16 %v2723_v11  ;;  %v4533_v26 = vsel %vm6916_vm12, %v5622_v40, %v4532_v14  ;;  %v3921_v53 = vshll.u32 %v3869_v15, 16  ;;  %v3933_v21 = vrot.slane %v3932_v48, 4  ;;  %v2650_v62 = vld [vmem:[#allocation2 + $0x24] sm:$0x1]  ;;  %v4468_v48 = vld [vmem:[#allocation2 + $0x28] sm:$0xe] }
 0x27d   :  { %v2790_v50 = vunpack.c.l.b16 %v2719_v30  ;;  %v4529_v6 = vsel %vm6916_vm12, %v5621_v39, %v4528_v12  ;;  %v3919_v10 = vrot.slane %v3918_v23, 4  ;;  %v3937_v42 = vrot.slane %v3935_v33, 5  ;;  %v4469_v39 = vld [vmem:[#allocation2 + $0x2c] sm:$0x1]  ;;  %v4466_v23 = vld [vmem:[#allocation2 + $0x20] sm:$0xe] }
 0x27e   :  { %v3923_v34 = vrot.slane %v3921_v53, 5  ;;  %v3954_v52 = vshrl.u32 %v3856_v25, 16  ;;  %v3957_v55 = vshll.u32 %v3856_v25, 16  ;;  %v4590_v18 = vunpack.c.l.b16 %v4529_v6  ;;  %v4467_v33 = vld [vmem:[#allocation2 + $0x24] sm:$0x1] }
 0x27f   :  { %v2805_v60 = vpack.c.b16 %v2791_v63, %v2790_v50  ;;  %v3938_v36 = vsel %vm7007_vm11, %v3933_v21, %v3937_v42  ;;  %v3940_v3 = vshrl.u32 %v3855_v8, 16  ;;  %v3943_v28 = vshll.u32 %v3855_v8, 16  ;;  %v3872_v61 = vld [vmem:[#allocation2 + $0x3c] sm:$0x1]  ;;  %v3871_v21 = vld [vmem:[#allocation2 + $0x34] sm:$0x1] }
 0x280   :  { %4373 = vmatmul.bf16.vlgmr.msra.gmra.mxu0 %v4171_v0  ;;  %v3924_v58 = vsel %vm7007_vm11, %v3919_v10, %v3923_v34  ;;  %v4158_v54 = vunpack.c.l.b16 %v3938_v36  ;;  %v5242_v16 = vrot.slane %v2651_v5, 9  ;;  %v2730_v0 = vrot.slane %v2652_v2, 5  ;;  %v5827_v25 = vld [vmem:[%s7981_s6 + $0x1a0] sm:$0xff]  ;;  %v3858_v5 = vld [vmem:[#allocation2 + $0x48] sm:$0xf] }
 0x281   :  { %v3956_v32 = vrot.slane %v3954_v52, 4  ;;  %v3959_v49 = vrot.slane %v3957_v55, 5  ;;  %v4157_v11 = vunpack.c.l.b16 %v3924_v58  ;;  %v5241_v40 = vrot.slane %v2649_v29, 9  ;;  %4319 = vmatpush.bf16.msra.mxu3 %v5827_v25  ;;  %v3857_v52 = vld [vmem:[#allocation2 + $0x40] sm:$0xf] }
 0x282   :  { %v2726_v14 = vrot.slane %v2650_v62, 5  ;;  %v3942_v15 = vrot.slane %v3940_v3, 4  ;;  %v3945_v30 = vrot.slane %v3943_v28, 5  ;;  %v2731_v63 = vsel %vm6916_vm12, %v5242_v16, %v2730_v0  ;;  %v5851_v55 = vld [vmem:[%s7981_s6 + $0x260] sm:$0xff]  ;;  %v7598_v62 = vpop.f32.mrf.mxu3 }
 0x283   :  { %v4172_v12 = vpack.c.b16 %v4158_v54, %v4157_v11  ;;  %v4540_v53 = vrot.slane %v4469_v39, 5  ;;  %v3960_v51 = vor.u32 %v3959_v49, %v3956_v32  ;;  %v5623_v6 = vrot.slane %v4466_v23, 9  ;;  %4851 = vmatpush.bf16.msra.mxu2 %v5851_v55  ;;  %v2655_v54 = vld [vmem:[#allocation2 + $0x38] sm:$0xe]  ;;  %v2656_v32 = vld [vmem:[#allocation2 + $0x3c] sm:$0x1] }
 0x284   :  { %3761 = vmatmul.bf16.vlgmr.msrb.gmra.mxu2 %v6940_v24  ;;  %v4591_v24 = vunpack.c.l.b16 %v4533_v26  ;;  %v5624_v26 = vrot.slane %v4468_v48, 9  ;;  %v2727_v50 = vsel %vm6916_vm12, %v5241_v40, %v2726_v14  ;;  %v4536_v10 = vrot.slane %v4467_v33, 5  ;;  %v2653_v39 = vld [vmem:[#allocation2 + $0x30] sm:$0xe] }
 0x285   :  { %v3946_v42 = vor.u32 %v3945_v30, %v3942_v15  ;;  %v3949_v8 = vshll.u32 %v3871_v21, 16  ;;  %v3961_v36 = vrot.slane %v3960_v51, 4  ;;  %v3968_v16 = vshrl.u32 %v3857_v52, 16  ;;  %v2654_v15 = vld [vmem:[#allocation2 + $0x34] sm:$0x1] }
 0x286   :  { %v4606_v41 = vpack.c.b16 %v4591_v24, %v4590_v18  ;;  %v2793_v24 = vunpack.c.l.b16 %v2731_v63  ;;  %v4541_v34 = vsel %vm6916_vm12, %v5624_v26, %v4540_v53  ;;  %v2792_v18 = vunpack.c.l.b16 %v2727_v50  ;;  %v4470_v30 = vld [vmem:[#allocation2 + $0x30] sm:$0xe]  ;;  %v4471_v63 = vld [vmem:[#allocation2 + $0x34] sm:$0x1]  ;;  %v4472_v26 = vld [vmem:[#allocation2 + $0x38] sm:$0xe] }
 0x287   :  { %v4537_v2 = vsel %vm6916_vm12, %v5623_v6, %v4536_v10  ;;  %v3947_v58 = vrot.slane %v3946_v42, 4  ;;  %v4593_v28 = vunpack.c.l.b16 %v4541_v34  ;;  %v3971_v49 = vshll.u32 %v3857_v52, 16  ;;  %v4473_v53 = vld [vmem:[#allocation2 + $0x3c] sm:$0x1]  ;;  %v3874_v10 = vld [vmem:[#allocation2 + $0x4c] sm:$0x1] }
 0x288   :  { %3010 = vmatmul.bf16.gmra.mxu3 %v2805_v60  ;;  %v3963_v60 = vshll.u32 %v3872_v61, 16  ;;  %v2806_v3 = vpack.c.b16 %v2793_v24, %v2792_v18  ;;  %v3982_v11 = vshrl.u32 %v3858_v5, 16  ;;  %v3985_v40 = vshll.u32 %v3858_v5, 16 }
 0x289   :  { %v4592_v14 = vunpack.c.l.b16 %v4537_v2  ;;  %v5244_v33 = vrot.slane %v2655_v54, 9  ;;  %v2738_v61 = vrot.slane %v2656_v32, 5  ;;  %v3970_v21 = vrot.slane %v3968_v16, 4  ;;  %v3873_v2 = vld [vmem:[#allocation2 + $0x44] sm:$0x1]  ;;  %v5826_v16 = vld [vmem:[%s7981_s6 + $0x198] sm:$0xff] }
 0x28a   :  { %v3965_v29 = vrot.slane %v3963_v60, 5  ;;  %v3973_v51 = vrot.slane %v3971_v49, 5  ;;  %v3984_v50 = vrot.slane %v3982_v11, 4  ;;  %v3987_v25 = vrot.slane %v3985_v40, 5  ;;  %4320 = vmatpush.bf16.msra.mxu3 %v5826_v16 }
 0x28b   :  { %v5243_v42 = vrot.slane %v2653_v39, 9  ;;  %v2734_v60 = vrot.slane %v2654_v15, 5  ;;  %v5625_v24 = vrot.slane %v4470_v30, 9  ;;  %v2739_v55 = vsel %vm6916_vm12, %v5244_v33, %v2738_v61  ;;  %v3860_v15 = vld [vmem:[#allocation2 + $0x68] sm:$0xf] }
 0x28c   :  { %4807 = vmatmul.bf16.vlgmr.msrb.gmra.mxu1 %v4606_v41  ;;  %v3951_v41 = vrot.slane %v3949_v8, 5  ;;  %v3966_v0 = vsel %vm7007_vm11, %v3961_v36, %v3965_v29  ;;  %v4544_v8 = vrot.slane %v4471_v63, 5  ;;  %v5626_v18 = vrot.slane %v4472_v26, 9  ;;  %v3859_v61 = vld [vmem:[#allocation2 + $0x60] sm:$0xf] }
 0x28d   :  { %v4160_v23 = vunpack.c.l.b16 %v3966_v0  ;;  %v4548_v5 = vrot.slane %v4473_v53, 5  ;;  %v3974_v29 = vor.u32 %v3973_v51, %v3970_v21  ;;  %v3977_v54 = vshll.u32 %v3873_v2, 16  ;;  %v2657_v26 = vld [vmem:[#allocation2 + $0x50] sm:$0xe]  ;;  %v2658_v53 = vld [vmem:[#allocation2 + $0x54] sm:$0x1] }
 0x28e   :  { %v3952_v48 = vsel %vm7007_vm11, %v3947_v58, %v3951_v41  ;;  %v2735_v41 = vsel %vm6916_vm12, %v5243_v42, %v2734_v60  ;;  %v2795_v0 = vunpack.c.l.b16 %v2739_v55  ;;  %v4545_v49 = vsel %vm6916_vm12, %v5625_v24, %v4544_v8  ;;  %v7627_v60 = vpop.f32.mrf.mxu0  ;;  %v4475_v55 = vld [vmem:[#allocation2 + $0x44] sm:$0x1]  ;;  %v4476_v2 = vld [vmem:[#allocation2 + $0x48] sm:$0xe] }
 0x28f   :  { %v4159_v6 = vunpack.c.l.b16 %v3952_v48  ;;  %v4549_v32 = vsel %vm6916_vm12, %v5626_v18, %v4548_v5  ;;  %v3975_v11 = vrot.slane %v3974_v29, 4  ;;  %v5850_v48 = vld [vmem:[%s7981_s6 + $0x258] sm:$0xff]  ;;  %v2794_v39 = vunpack.c.l.b16 %v2735_v41  ;;  %v7629_v41 = vpop.f32.mrf.mxu1 }
 0x290   :  { %4378 = vmatmul.bf16.gmra.mxu0 %v4172_v12  ;;  %v4607_v12 = vpack.c.b16 %v4593_v28, %v4592_v14  ;;  %v3991_v28 = vshll.u32 %v3874_v10, 16  ;;  %v4595_v30 = vunpack.c.l.b16 %v4549_v32  ;;  %4852 = vmatpush.bf16.msra.mxu2 %v5850_v48  ;;  %v4594_v33 = vunpack.c.l.b16 %v4545_v49 }
 0x291   :  { %v4173_v52 = vpack.c.b16 %v4160_v23, %v4159_v6  ;;  %v2807_v23 = vpack.c.b16 %v2795_v0, %v2794_v39  ;;  %v4010_v21 = vshrl.u32 %v3860_v15, 16  ;;  %v4013_v51 = vshll.u32 %v3860_v15, 16 }
 0x292   :  { %v3993_v14 = vrot.slane %v3991_v28, 5  ;;  %v4608_v6 = vpack.c.b16 %v4595_v30, %v4594_v33  ;;  %v3996_v10 = vshrl.u32 %v3859_v61, 16  ;;  %v3999_v42 = vshll.u32 %v3859_v61, 16  ;;  %v4477_v28 = vld [vmem:[#allocation2 + $0x4c] sm:$0x1] }
 0x293   :  { %v2541_v34 = vpop.f32.mrf.mxu3  ;;  %v4012_v29 = vrot.slane %v4010_v21, 4  ;;  %v4552_v49 = vrot.slane %v4475_v55, 5  ;;  %v4556_v39 = vrot.slane %v4477_v28, 5  ;;  %v3875_v30 = vld [vmem:[#allocation2 + $0x64] sm:$0x1] }
 0x294   :  { %3766 = vmatmul.bf16.gmra.mxu2 %v7077_v57  ;;  %v7600_v57 = vpop.f32.mrf.mxu2  ;;  %v4001_v16 = vrot.slane %v3999_v42, 5 }
 0x298   :  { %3015 = vmatmul.bf16.gmra.mxu3 %v2806_v3  ;;  %v3988_v3 = vor.u32 %v3987_v25, %v3984_v50  ;;  %v2659_v50 = vld [vmem:[#allocation2 + $0x58] sm:$0xe]  ;;  %v2660_v25 = vld [vmem:[#allocation2 + $0x5c] sm:$0x1] }
 0x299   :  { %v5246_v18 = vrot.slane %v2659_v50, 9  ;;  %v2746_v5 = vrot.slane %v2660_v25, 5  ;;  %v3862_v50 = vld [vmem:[#allocation2 + $0x78] sm:$0xf] }
 0x29a   :  { %v3989_v40 = vrot.slane %v3988_v3, 4  ;;  %v4015_v3 = vrot.slane %v4013_v51, 5  ;;  %v7643_v51 = vpop.f32.mrf.mxu0  ;;  %v4038_v55 = vshrl.u32 %v3862_v50, 16 }
 0x29b   :  { %v2747_v48 = vsel %vm6916_vm12, %v5246_v18, %v2746_v5  ;;  %v4041_v18 = vshll.u32 %v3862_v50, 16  ;;  %v2663_v5 = vld [vmem:[#allocation2 + $0x68] sm:$0xe] }
 0x29c   :  { %4812 = vmatmul.bf16.gmra.mxu1 %v4607_v12  ;;  %v3979_v12 = vrot.slane %v3977_v54, 5  ;;  %v3994_v63 = vsel %vm7007_vm11, %v3989_v40, %v3993_v14  ;;  %v3998_v54 = vrot.slane %v3996_v10, 4  ;;  %v3876_v40 = vld [vmem:[#allocation2 + $0x6c] sm:$0x1]  ;;  %v4016_v15 = vor.u32 %v4015_v3, %v4012_v29  ;;  %v5849_v10 = vld [vmem:[%s7981_s6 + $0x250] sm:$0xff] }
 0x29d   :  { %v4162_v8 = vunpack.c.l.b16 %v3994_v63  ;;  %v4019_v33 = vshll.u32 %v3876_v40, 16  ;;  %4853 = vmatpush.bf16.msra.mxu2 %v5849_v10  ;;  %v4040_v40 = vrot.slane %v4038_v55, 4 }
 0x29e   :  { %v4017_v21 = vrot.slane %v4016_v15, 4  ;;  %v4481_v15 = vld [vmem:[#allocation2 + $0x6c] sm:$0x1] }
 0x29f   :  { %v2590_v36 = vpop.f32.mrf.mxu2 }
 0x2a0   :  { %v7608_v58 = vadd.f32 %v2590_v36, %v2541_v34  ;;  %4383 = vmatmul.bf16.gmra.mxu0 %v4173_v52  ;;  %v5245_v34 = vrot.slane %v2657_v26, 9  ;;  %v2742_v36 = vrot.slane %v2658_v53, 5  ;;  %v4474_v52 = vld [vmem:[#allocation2 + $0x40] sm:$0xe]  ;;  %v4005_v53 = vshll.u32 %v3875_v30, 16 }
 0x2a1   :  { %v5627_v32 = vrot.slane %v4474_v52, 9 }
 0x2a2   :  { %v2743_v14 = vsel %vm6916_vm12, %v5245_v34, %v2742_v36  ;;  %v7648_v34 = vpop.f32.mrf.mxu1  ;;  %v4007_v36 = vrot.slane %v4005_v53, 5  ;;  %v3878_v53 = vld [vmem:[#allocation2 + $0x7c] sm:$0x1] }
 0x2a3   :  { %v2796_v61 = vunpack.c.l.b16 %v2743_v14  ;;  %v4553_v63 = vsel %vm6916_vm12, %v5627_v32, %v4552_v49  ;;  %v2662_v32 = vld [vmem:[#allocation2 + $0x64] sm:$0x1]  ;;  %v5248_v49 = vrot.slane %v2663_v5, 9  ;;  %v4043_v14 = vrot.slane %v4041_v18, 5  ;;  %v7665_v18 = vpop.f32.mrf.mxu3 }
 0x2a4   :  { %3771 = vmatmul.bf16.gmra.mxu2 %v7177_v47  ;;  %v3980_v47 = vsel %vm7007_vm11, %v3975_v11, %v3979_v12  ;;  %v5628_v11 = vrot.slane %v4476_v2, 9  ;;  %v5825_v12 = vld [vmem:[%s7981_s6 + $0x190] sm:$0xff]  ;;  %v2664_v2 = vld [vmem:[#allocation2 + $0x6c] sm:$0x1]  ;;  %v4047_v55 = vshll.u32 %v3878_v53, 16 }
 0x2a5   :  { %v4161_v24 = vunpack.c.l.b16 %v3980_v47  ;;  %v2797_v47 = vunpack.c.l.b16 %v2747_v48  ;;  %4321 = vmatpush.bf16.msra.mxu3 %v5825_v12  ;;  %v2750_v12 = vrot.slane %v2662_v32, 5  ;;  %v2666_v53 = vld [vmem:[#allocation2 + $0x74] sm:$0x1] }
 0x2a6   :  { %v4557_v26 = vsel %vm6916_vm12, %v5628_v11, %v4556_v39  ;;  %v2754_v11 = vrot.slane %v2664_v2, 5  ;;  %v4480_v39 = vld [vmem:[#allocation2 + $0x68] sm:$0xe] }
 0x2a7   :  { %v4174_v0 = vpack.c.b16 %v4162_v8, %v4161_v24  ;;  %v2808_v42 = vpack.c.b16 %v2797_v47, %v2796_v61  ;;  %v4596_v24 = vunpack.c.l.b16 %v4553_v63  ;;  %v3861_v8 = vld [vmem:[#allocation2 + $0x70] sm:$0xf]  ;;  %v7654_v47 = vpop.f32.mrf.mxu0  ;;  %v5630_v50 = vrot.slane %v4480_v39, 9  ;;  %v7667_v5 = vpop.f32.mrf.mxu2 }
 0x2a8   :  { %3020 = vmatmul.bf16.gmra.mxu3 %v2807_v23  ;;  %v4002_v23 = vor.u32 %v4001_v16, %v3998_v54  ;;  %v4024_v3 = vshrl.u32 %v3861_v8, 16  ;;  %v4027_v28 = vshll.u32 %v3861_v8, 16 }
 0x2aa   :  { %v4003_v25 = vrot.slane %v4002_v23, 4  ;;  %v4478_v23 = vld [vmem:[#allocation2 + $0x60] sm:$0xe]  ;;  %v4029_v61 = vrot.slane %v4027_v28, 5 }
 0x2ab   :  { %v5629_v10 = vrot.slane %v4478_v23, 9 }
 0x2ac   :  { %4817 = vmatmul.bf16.gmra.mxu1 %v4608_v6  ;;  %v4021_v6 = vrot.slane %v4019_v33, 5  ;;  %v4008_v29 = vsel %vm7007_vm11, %v4003_v25, %v4007_v36  ;;  %v4026_v33 = vrot.slane %v4024_v3, 4  ;;  %v4564_v25 = vrot.slane %v4481_v15, 5  ;;  %v2667_v15 = vld [vmem:[#allocation2 + $0x78] sm:$0xe] }
 0x2ad   :  { %v4163_v48 = vunpack.c.l.b16 %v4008_v29 }
 0x2ae   :  { %v4022_v52 = vsel %vm7007_vm11, %v4017_v21, %v4021_v6  ;;  %v2755_v21 = vsel %vm6916_vm12, %v5248_v49, %v2754_v11  ;;  %v4044_v6 = vor.u32 %v4043_v14, %v4040_v40  ;;  %v4565_v29 = vsel %vm6916_vm12, %v5630_v50, %v4564_v25 }
 0x2af   :  { %v4164_v16 = vunpack.c.l.b16 %v4022_v52  ;;  %v4030_v52 = vor.u32 %v4029_v61, %v4026_v33  ;;  %v2799_v2 = vunpack.c.l.b16 %v2755_v21  ;;  %v4049_v11 = vrot.slane %v4047_v55, 5  ;;  %v7679_v23 = vpop.f32.mrf.mxu0  ;;  %v2668_v61 = vld [vmem:[#allocation2 + $0x7c] sm:$0x1] }
 0x2b0   :  { %4388 = vmatmul.bf16.gmra.mxu0 %v4174_v0  ;;  %v2661_v0 = vld [vmem:[#allocation2 + $0x60] sm:$0xe]  ;;  %v4045_v28 = vrot.slane %v4044_v6, 4  ;;  %v4599_v14 = vunpack.c.l.b16 %v4565_v29 }
 0x2b1   :  { %v5247_v30 = vrot.slane %v2661_v0, 9  ;;  %v4175_v63 = vpack.c.b16 %v4164_v16, %v4163_v48  ;;  %v3864_v0 = vld [vmem:[#allocation2 + $0x88] sm:$0xf]  ;;  %v4031_v49 = vrot.slane %v4030_v52, 4 }
 0x2b2   :  { %v4050_v39 = vsel %vm7007_vm11, %v4045_v28, %v4049_v11  ;;  %v2758_v28 = vrot.slane %v2666_v53, 5  ;;  %v4482_v11 = vld [vmem:[#allocation2 + $0x70] sm:$0xe] }
 0x2b3   :  { %v2751_v8 = vsel %vm6916_vm12, %v5247_v30, %v2750_v12  ;;  %v4066_v30 = vshrl.u32 %v3864_v0, 16  ;;  %v4069_v12 = vshll.u32 %v3864_v0, 16 }
 0x2b4   :  { %3776 = vmatmul.bf16.gmra.mxu2 %v7281_v46  ;;  %v4597_v46 = vunpack.c.l.b16 %v4557_v26  ;;  %v4479_v26 = vld [vmem:[#allocation2 + $0x64] sm:$0x1]  ;;  %v2798_v16 = vunpack.c.l.b16 %v2751_v8 }
 0x2b5   :  { %v4560_v36 = vrot.slane %v4479_v26, 5  ;;  %v2665_v26 = vld [vmem:[#allocation2 + $0x70] sm:$0xe]  ;;  %v4068_v52 = vrot.slane %v4066_v30, 4  ;;  %v4071_v55 = vrot.slane %v4069_v12, 5 }
 0x2b6   :  { %v4609_v54 = vpack.c.b16 %v4597_v46, %v4596_v24  ;;  %v5824_v24 = vld [vmem:[%s7981_s6 + $0x188] sm:$0xff]  ;;  %v7661_v46 = vpop.f32.mrf.mxu1  ;;  %v2809_v40 = vpack.c.b16 %v2799_v2, %v2798_v16  ;;  %v4485_v16 = vld [vmem:[#allocation2 + $0x7c] sm:$0x1] }
 0x2b7   :  { %4322 = vmatpush.bf16.msra.mxu3 %v5824_v24  ;;  %v4561_v32 = vsel %vm6916_vm12, %v5629_v10, %v4560_v36  ;;  %v5250_v24 = vrot.slane %v2667_v15, 9  ;;  %v2762_v36 = vrot.slane %v2668_v61, 5  ;;  %v3879_v15 = vld [vmem:[#allocation2 + $0x84] sm:$0x1]  ;;  %v4072_v30 = vor.u32 %v4071_v55, %v4068_v52  ;;  %v3866_v52 = vld [vmem:[#allocation2 + $0x98] sm:$0xf] }
 0x2b8   :  { %3025 = vmatmul.bf16.gmra.mxu3 %v2808_v42  ;;  %v3877_v42 = vld [vmem:[#allocation2 + $0x74] sm:$0x1]  ;;  %v4598_v33 = vunpack.c.l.b16 %v4561_v32  ;;  %v5631_v61 = vrot.slane %v4482_v11, 9  ;;  %v2672_v11 = vld [vmem:[#allocation2 + $0x8c] sm:$0x1] }
 0x2b9   :  { %v4033_v3 = vshll.u32 %v3877_v42, 16  ;;  %v4166_v42 = vunpack.c.l.b16 %v4050_v39  ;;  %v4572_v39 = vrot.slane %v4485_v16, 5 }
 0x2ba   :  { %v4610_v10 = vpack.c.b16 %v4599_v14, %v4598_v33  ;;  %v3880_v14 = vld [vmem:[#allocation2 + $0x8c] sm:$0x1]  ;;  %v5823_v33 = vld [vmem:[%s7981_s6 + $0x180] sm:$0xff] }
 0x2bb   :  { %v4035_v48 = vrot.slane %v4033_v3, 5  ;;  %v5249_v3 = vrot.slane %v2665_v26, 9  ;;  %v4075_v53 = vshll.u32 %v3880_v14, 16  ;;  %4323 = vmatpush.bf16.msra.mxu3 %v5823_v33  ;;  %v4094_v14 = vshrl.u32 %v3866_v52, 16  ;;  %v2670_v33 = vld [vmem:[#allocation2 + $0x84] sm:$0x1] }
 0x2bc   :  { %4822 = vmatmul.bf16.gmra.mxu1 %v4609_v54  ;;  %v5848_v54 = vld [vmem:[%s7981_s6 + $0x248] sm:$0xff] }
 0x2bd   :  { %4854 = vmatpush.bf16.msra.mxu2 %v5848_v54  ;;  %v4484_v54 = vld [vmem:[#allocation2 + $0x78] sm:$0xe]  ;;  %v2759_v12 = vsel %vm6916_vm12, %v5249_v3, %v2758_v28  ;;  %v4077_v3 = vrot.slane %v4075_v53, 5 }
 0x2be   :  { %v2546_v25 = vpop.f32.mrf.mxu3  ;;  %v7685_v2 = vpop.f32.mrf.mxu1 }
 0x2c0   :  { %4393 = vmatmul.bf16.gmra.mxu0 %v4175_v63  ;;  %v4036_v63 = vsel %vm7007_vm11, %v4031_v49, %v4035_v48  ;;  %v5632_v48 = vrot.slane %v4484_v54, 9 }
 0x2c1   :  { %v4165_v29 = vunpack.c.l.b16 %v4036_v63 }
 0x2c3   :  { %v4176_v49 = vpack.c.b16 %v4166_v42, %v4165_v29  ;;  %v3865_v42 = vld [vmem:[#allocation2 + $0x90] sm:$0xf] }
 0x2c4   :  { %3781 = vmatmul.bf16.gmra.mxu2 %v7323_v19  ;;  %v3863_v19 = vld [vmem:[#allocation2 + $0x80] sm:$0xf] }
 0x2c5   :  { %v4052_v21 = vshrl.u32 %v3863_v19, 16  ;;  %v4055_v50 = vshll.u32 %v3863_v19, 16  ;;  %v2763_v19 = vsel %vm6916_vm12, %v5250_v24, %v2762_v36  ;;  %v5847_v24 = vld [vmem:[%s7981_s6 + $0x240] sm:$0xff]  ;;  %v2800_v36 = vunpack.c.l.b16 %v2759_v12 }
 0x2c6   :  { %4855 = vmatpush.bf16.msra.mxu2 %v5847_v24  ;;  %v7704_v28 = vpop.f32.mrf.mxu1  ;;  %v2669_v12 = vld [vmem:[#allocation2 + $0x80] sm:$0xe]  ;;  %v4489_v24 = vld [vmem:[#allocation2 + $0x8c] sm:$0x1] }
 0x2c7   :  { %v4054_v0 = vrot.slane %v4052_v21, 4  ;;  %v4057_v32 = vrot.slane %v4055_v50, 5  ;;  %v7694_v21 = vpop.f32.mrf.mxu0  ;;  %v2801_v50 = vunpack.c.l.b16 %v2763_v19  ;;  %v4097_v19 = vshll.u32 %v3866_v52, 16 }
 0x2c8   :  { %3030 = vmatmul.bf16.gmra.mxu3 %v2809_v40  ;;  %v4483_v40 = vld [vmem:[#allocation2 + $0x74] sm:$0x1]  ;;  %v5251_v52 = vrot.slane %v2669_v12, 9  ;;  %v7718_v12 = vpop.f32.mrf.mxu3 }
 0x2c9   :  { %v4568_v63 = vrot.slane %v4483_v40, 5  ;;  %v4058_v26 = vor.u32 %v4057_v32, %v4054_v0  ;;  %v2671_v0 = vld [vmem:[#allocation2 + $0x88] sm:$0xe]  ;;  %v4080_v32 = vshrl.u32 %v3865_v42, 16  ;;  %v4083_v40 = vshll.u32 %v3865_v42, 16 }
 0x2ca   :  { %v2595_v6 = vpop.f32.mrf.mxu2 }
 0x2cb   :  { %v7683_v8 = vadd.f32 %v2595_v6, %v2546_v25  ;;  %v4061_v25 = vshll.u32 %v3879_v15, 16  ;;  %v4573_v6 = vsel %vm6916_vm12, %v5632_v48, %v4572_v39  ;;  %v4569_v55 = vsel %vm6916_vm12, %v5631_v61, %v4568_v63 }
 0x2cc   :  { %4827 = vmatmul.bf16.gmra.mxu1 %v4610_v10  ;;  %v4073_v10 = vrot.slane %v4072_v30, 4  ;;  %v4059_v29 = vrot.slane %v4058_v26, 4  ;;  %v4601_v54 = vunpack.c.l.b16 %v4573_v6  ;;  %v4600_v48 = vunpack.c.l.b16 %v4569_v55  ;;  %v4488_v26 = vld [vmem:[#allocation2 + $0x88] sm:$0xe] }
 0x2cd   :  { %v4063_v16 = vrot.slane %v4061_v25, 5  ;;  %v5252_v61 = vrot.slane %v2671_v0, 9  ;;  %v2770_v63 = vrot.slane %v2672_v11, 5  ;;  %v4082_v53 = vrot.slane %v4080_v32, 4  ;;  %v3881_v0 = vld [vmem:[#allocation2 + $0x94] sm:$0x1] }
 0x2ce   :  { %v4611_v15 = vpack.c.b16 %v4601_v54, %v4600_v48  ;;  %v4096_v25 = vrot.slane %v4094_v14, 4  ;;  %v4099_v6 = vrot.slane %v4097_v19, 5  ;;  %v2766_v55 = vrot.slane %v2670_v33, 5  ;;  %v4487_v54 = vld [vmem:[#allocation2 + $0x84] sm:$0x1]  ;;  %v7714_v14 = vpop.f32.mrf.mxu1 }
 0x2cf   :  { %v4064_v39 = vsel %vm7007_vm11, %v4059_v29, %v4063_v16  ;;  %v4486_v29 = vld [vmem:[#allocation2 + $0x80] sm:$0xe]  ;;  %v5634_v16 = vrot.slane %v4488_v26, 9  ;;  %v4580_v32 = vrot.slane %v4489_v24, 5 }
 0x2d0   :  { %4398 = vmatmul.bf16.gmra.mxu0 %v4176_v49  ;;  %v4078_v49 = vsel %vm7007_vm11, %v4073_v10, %v4077_v3  ;;  %v7710_v10 = vpop.f32.mrf.mxu0  ;;  %v4167_v42 = vunpack.c.l.b16 %v4064_v39  ;;  %v4100_v11 = vor.u32 %v4099_v6, %v4096_v25  ;;  %v2767_v19 = vsel %vm6916_vm12, %v5251_v52, %v2766_v55 }
 0x2d1   :  { %v4168_v30 = vunpack.c.l.b16 %v4078_v49  ;;  %v5633_v48 = vrot.slane %v4486_v29, 9  ;;  %v4576_v39 = vrot.slane %v4487_v54, 5  ;;  %v4581_v33 = vsel %vm6916_vm12, %v5634_v16, %v4580_v32  ;;  %v4490_v16 = vld [vmem:[#allocation2 + $0x90] sm:$0xe]  ;;  %v4492_v32 = vld [vmem:[#allocation2 + $0x98] sm:$0xe] }
 0x2d2   :  { %v4603_v24 = vunpack.c.l.b16 %v4581_v33  ;;  %v5636_v56 = vrot.slane %v4492_v32, 9  ;;  %v5816_v32 = vld [vmem:[#allocation2 + $0x24] sm:$0xf0] }
 0x2d3   :  { %v4177_v3 = vpack.c.b16 %v4168_v30, %v4167_v42 }
 0x2d4   :  { %3786 = vmatmul.bf16.gmra.mxu2 %v7384_v59  ;;  %v2810_v59 = vpack.c.b16 %v2801_v50, %v2800_v36  ;;  %v4085_v50 = vrot.slane %v4083_v40, 5  ;;  %v3882_v36 = vld [vmem:[#allocation2 + $0x9c] sm:$0x1] }
 0x2d5   :  { %v4103_v40 = vshll.u32 %v3882_v36, 16 }
 0x2d6   :  { %v4086_v49 = vor.u32 %v4085_v50, %v4082_v53  ;;  %v2802_v53 = vunpack.c.l.b16 %v2767_v19  ;;  %v4577_v50 = vsel %vm6916_vm12, %v5633_v48, %v4576_v39  ;;  %v7731_v55 = vpop.f32.mrf.mxu1  ;;  %v5635_v19 = vrot.slane %v4490_v16, 9 }
 0x2d7   :  { %v4105_v26 = vrot.slane %v4103_v40, 5  ;;  %v4602_v52 = vunpack.c.l.b16 %v4577_v50 }
 0x2d8   :  { %3035 = vmatmul.bf16.gmra.mxu3 %v2810_v59  ;;  %v2771_v59 = vsel %vm6916_vm12, %v5252_v61, %v2770_v63  ;;  %v4087_v61 = vrot.slane %v4086_v49, 4  ;;  %v4101_v63 = vrot.slane %v4100_v11, 4  ;;  %v7725_v6 = vpop.f32.mrf.mxu0  ;;  %v4493_v49 = vld [vmem:[#allocation2 + $0x9c] sm:$0x1]  ;;  %v7733_v11 = vpop.f32.mrf.mxu2 }
 0x2d9   :  { %v2803_v30 = vunpack.c.l.b16 %v2771_v59  ;;  %v4612_v29 = vpack.c.b16 %v4603_v24, %v4602_v52  ;;  %v4588_v39 = vrot.slane %v4493_v49, 5  ;;  %v5499_v49 = vld [vmem:[#allocation2 + $0x20] sm:$0xf] }
 0x2db   :  { %v2811_v42 = vpack.c.b16 %v2803_v30, %v2802_v53  ;;  %v5495_v53 = vld [vmem:[#allocation2 + $0x10] sm:$0xf] }
 0x2dc   :  { %4832 = vmatmul.bf16.gmra.mxu1 %v4611_v15  ;;  %v4089_v15 = vshll.u32 %v3881_v0, 16  ;;  %v4491_v0 = vld [vmem:[#allocation2 + $0x94] sm:$0x1] }
 0x2dd   :  { %v4584_v48 = vrot.slane %v4491_v0, 5 }
 0x2de   :  { %v4091_v25 = vrot.slane %v4089_v15, 5  ;;  %v7737_v30 = vpop.f32.mrf.mxu1 }
 0x2e0   :  { %4403 = vmatmul.bf16.gmra.mxu0 %v4177_v3  ;;  %v4092_v36 = vsel %vm7007_vm11, %v4087_v61, %v4091_v25  ;;  %v7735_v15 = vpop.f32.mrf.mxu0  ;;  %v5815_v61 = vld [vmem:[#allocation2 + $0x14] sm:$0xf0] }
 0x2e1   :  { %v4169_v3 = vunpack.c.l.b16 %v4092_v36  ;;  %v5496_v25 = vor.u32 %v5815_v61, %v5495_v53 }
 0x2e4   :  { %3791 = vmatmul.bf16.gmra.mxu2 %v7473_v38  ;;  %v4106_v38 = vsel %vm7007_vm11, %v4101_v63, %v4105_v26  ;;  %v4585_v63 = vsel %vm6916_vm12, %v5635_v19, %v4584_v48  ;;  %v4589_v26 = vsel %vm6916_vm12, %v5636_v56, %v4588_v39  ;;  %v5500_v19 = vor.u32 %v5816_v32, %v5499_v49  ;;  %v5932_v56 = vld [vmem:[%s7977_s3 + $0x18] sm:$0xf]  ;;  %v5934_v32 = vld [vmem:[%s7977_s3 + $0x28] sm:$0xf] }
 0x2e5   :  { %v4170_v59 = vunpack.c.l.b16 %v4106_v38  ;;  %v4605_v24 = vunpack.c.l.b16 %v4589_v26  ;;  %v7749_v38 = vld [vmem:[%s7982_s7] ss:$0 sm:$0xff]  ;;  %v2015_v39 = vsel %vm1184_vm0, %v5932_v56, 0  ;;  %v2019_v49 = vsel %vm1184_vm0, %v5934_v32, 0 }
 0x2e6   :  { %v7753_v43 = vpop.f32.mrf.mxu1  ;;  %v4641_v26 = vunpack.c.l.b16 %v2015_v39  ;;  %v2611_v53 = vadd.f32 %v7749_v38, %v7337_v27  ;;  %v2613_v56 = vadd.f32 %v7749_v38, %v7371_v4  ;;  %v5818_v4 = vld [vmem:[#allocation2 + $0x44] sm:$0xf0] }
 0x2e7   :  { %v4178_v40 = vpack.c.b16 %v4170_v59, %v4169_v3 }
 0x2e8   :  { %3040 = vmatmul.bf16.gmra.mxu3 %v2811_v42  ;;  %v4604_v42 = vunpack.c.l.b16 %v4585_v63 }
 0x2eb   :  { %v2551_v54 = vpop.f32.mrf.mxu3 }
 0x2ec   :  { %4837 = vmatmul.bf16.gmra.mxu1 %v4612_v29  ;;  %v2609_v29 = vadd.f32 %v7749_v38, %v7312_v13  ;;  %v5931_v13 = vld [vmem:[%s7977_s3 + $0x10] sm:$0xf] }
 0x2f0   :  { %4408 = vmatmul.bf16.gmra.mxu0 %v4178_v40 }
 0x2f3   :  { %v2553_v33 = vpop.f32.mrf.mxu3 }
 0x2f4   :  { %3796 = vmatmul.bf16.gmra.mxu2 %v7562_v45  ;;  %v4613_v45 = vpack.c.b16 %v4605_v24, %v4604_v42 }
 0x2f7   :  { %v2600_v50 = vpop.f32.mrf.mxu2 }
 0x2f8   :  { %v7744_v36 = vadd.f32 %v2600_v50, %v2551_v54  ;;  %4324 = vmatmul.bf16.vlgmr.msra.gmra.mxu3 %v5496_v25 }
 0x2fb   :  { %v3006_v52 = vpop.f32.mrf.mxu3 }
 0x2fc   :  { %v3056_v3 = vadd.f32 %v7627_v60, %v3006_v52  ;;  %4842 = vmatmul.bf16.gmra.mxu1 %v4613_v45  ;;  %v2013_v60 = vsel %vm1184_vm0, %v5931_v13, 0 }
 0x2fd   :  { %v4640_v63 = vunpack.c.l.b16 %v2013_v60  ;;  %v4643_v60 = vunpack.c.l.b16 %v2019_v49 }
 0x2fe   :  { %v3111_v59 = vadd.f32 %v3056_v3, %v2609_v29  ;;  %v5503_v3 = vld [vmem:[#allocation2 + $0x30] sm:$0xf] }
 0x2ff   :  { %v2602_v16 = vpop.f32.mrf.mxu2 }
 0x300   :  { %v7756_v54 = vadd.f32 %v2602_v16, %v2553_v33 }
 0x303   :  { %v3008_v0 = vpop.f32.mrf.mxu3 }
 0x304   :  { %4856 = vmatmul.bf16.vlgmr.msra.gmra.mxu2 %v6039_v31  ;;  %v2568_v31 = vadd.f32 %v7321_v1, %v7283_v20  ;;  %v4655_v20 = vpack.c.b16 %v4641_v26, %v4640_v63 }
 0x306   :  { %v2610_v25 = vadd.f32 %v7749_v38, %v2568_v31 }
 0x307   :  { %v3762_v40 = vpop.f32.mrf.mxu2 }
 0x308   :  { %v3763_v48 = vadd.f32 %v3762_v40, %v7648_v34  ;;  %4329 = vmatmul.bf16.gmra.mxu3 %v5500_v19  ;;  %v3058_v34 = vadd.f32 %v7643_v51, %v3008_v0  ;;  %v5817_v51 = vld [vmem:[#allocation2 + $0x34] sm:$0xf0]  ;;  %v5933_v0 = vld [vmem:[%s7977_s3 + $0x20] sm:$0xf]  ;;  %v2573_v40 = vadd.f32 %v7629_v41, %v7305_v37 }
 0x309   :  { %v5504_v27 = vor.u32 %v5817_v51, %v5503_v3  ;;  %v2578_v51 = vadd.f32 %v7415_v22, %v7413_v35 }
 0x30a   :  { %v7770_v33 = vadd.f32 %v3763_v48, %v3111_v59  ;;  %v3112_v45 = vadd.f32 %v3058_v34, %v2610_v25  ;;  %v7780_v59 = vpop.f32.mrf.mxu0  ;;  %v2612_v31 = vadd.f32 %v7749_v38, %v2573_v40  ;;  %v7800_v34 = vpop.f32.mrf.mxu1  ;;  %v5507_v25 = vld [vmem:[#allocation2 + $0x40] sm:$0xf] }
 0x30b   :  { %v3011_v61 = vpop.f32.mrf.mxu3  ;;  %v2614_v49 = vadd.f32 %v7749_v38, %v2578_v51 }
 0x30c   :  { %v3061_v50 = vadd.f32 %v7654_v47, %v3011_v61 }
 0x30e   :  { %v3113_v42 = vadd.f32 %v3061_v50, %v2611_v53 }
 0x30f   :  { %v3764_v24 = vpop.f32.mrf.mxu2 }
 0x310   :  { %v3765_v52 = vadd.f32 %v3764_v24, %v7661_v46  ;;  %v2017_v46 = vsel %vm1184_vm0, %v5933_v0, 0 }
 0x311   :  { %v4642_v13 = vunpack.c.l.b16 %v2017_v46  ;;  %v2615_v46 = vadd.f32 %v7749_v38, %v7437_v7  ;;  %v5511_v7 = vld [vmem:[#allocation2 + $0x60] sm:$0xf] }
 0x312   :  { %v7778_v1 = vadd.f32 %v3765_v52, %v3112_v45  ;;  %v7803_v53 = vpop.f32.mrf.mxu0  ;;  %v7808_v45 = vpop.f32.mrf.mxu1 }
 0x313   :  { %v3013_v29 = vpop.f32.mrf.mxu3  ;;  %v4656_v41 = vpack.c.b16 %v4643_v60, %v4642_v13 }
 0x314   :  { %4861 = vmatmul.bf16.gmra.mxu2 %v4655_v20  ;;  %v5936_v20 = vld [vmem:[%s7977_s3 + $0x38] sm:$0xf] }
 0x317   :  { %v3767_v16 = vpop.f32.mrf.mxu2 }
 0x318   :  { %v3768_v47 = vadd.f32 %v3767_v16, %v7685_v2  ;;  %4334 = vmatmul.bf16.gmra.mxu3 %v5504_v27  ;;  %v3063_v2 = vadd.f32 %v7679_v23, %v3013_v29  ;;  %v2023_v29 = vsel %vm1184_vm0, %v5936_v20, 0 }
 0x319   :  { %v4645_v0 = vunpack.c.l.b16 %v2023_v29 }
 0x31a   :  { %v7793_v19 = vadd.f32 %v3768_v47, %v3113_v42  ;;  %v3114_v26 = vadd.f32 %v3063_v2, %v2612_v31  ;;  %v7830_v13 = vpop.f32.mrf.mxu1 }
 0x31b   :  { %v3016_v48 = vpop.f32.mrf.mxu3 }
 0x31c   :  { %v3066_v39 = vadd.f32 %v7694_v21, %v3016_v48  ;;  %v5508_v21 = vor.u32 %v5818_v4, %v5507_v25 }
 0x31e   :  { %v3115_v61 = vadd.f32 %v3066_v39, %v2613_v56  ;;  %v5819_v56 = vld [vmem:[#allocation2 + $0x64] sm:$0xf0] }
 0x31f   :  { %v3769_v63 = vpop.f32.mrf.mxu2 }
 0x320   :  { %v3770_v37 = vadd.f32 %v3769_v63, %v7704_v28  ;;  %v5935_v28 = vld [vmem:[%s7977_s3 + $0x30] sm:$0xf] }
 0x321   :  { %v2021_v52 = vsel %vm1184_vm0, %v5935_v28, 0 }
 0x322   :  { %v7805_v23 = vadd.f32 %v3770_v37, %v3114_v26  ;;  %v4644_v47 = vunpack.c.l.b16 %v2021_v52  ;;  %v5938_v26 = vld [vmem:[%s7977_s3 + $0x50] sm:$0xf]  ;;  %v7849_v25 = vpop.f32.mrf.mxu1 }
 0x323   :  { %v3018_v50 = vpop.f32.mrf.mxu3  ;;  %v2027_v37 = vsel %vm1184_vm0, %v5938_v26, 0 }
 0x324   :  { %4866 = vmatmul.bf16.gmra.mxu2 %v4656_v41  ;;  %v3068_v16 = vadd.f32 %v7710_v10, %v3018_v50  ;;  %v4657_v22 = vpack.c.b16 %v4645_v0, %v4644_v47  ;;  %v2583_v41 = vadd.f32 %v7532_v9, %v7530_v44  ;;  %v5820_v0 = vld [vmem:[#allocation2 + $0x74] sm:$0xf0] }
 0x326   :  { %v3116_v48 = vadd.f32 %v3068_v16, %v2614_v49  ;;  %v2616_v52 = vadd.f32 %v7749_v38, %v2583_v41 }
 0x327   :  { %v3772_v42 = vpop.f32.mrf.mxu2 }
 0x328   :  { %v3773_v24 = vadd.f32 %v3772_v42, %v7714_v14  ;;  %4339 = vmatmul.bf16.gmra.mxu3 %v5508_v21  ;;  %v7822_v14 = vpop.f32.mrf.mxu0  ;;  %v4647_v21 = vunpack.c.l.b16 %v2027_v37 }
 0x32a   :  { %v7820_v3 = vadd.f32 %v3773_v24, %v3115_v61  ;;  %v2617_v24 = vadd.f32 %v7749_v38, %v7550_v17 }
 0x32b   :  { %v3021_v27 = vpop.f32.mrf.mxu3 }
 0x32c   :  { %v3071_v32 = vadd.f32 %v7725_v6, %v3021_v27  ;;  %v5512_v6 = vor.u32 %v5819_v56, %v5511_v7 }
 0x32e   :  { %v3117_v40 = vadd.f32 %v3071_v32, %v2615_v46  ;;  %v5515_v46 = vld [vmem:[#allocation2 + $0x70] sm:$0xf] }
 0x32f   :  { %v3774_v2 = vpop.f32.mrf.mxu2  ;;  %v5516_v32 = vor.u32 %v5820_v0, %v5515_v46  ;;  %v2621_v46 = vadd.f32 %v7749_v38, %v7683_v8 }
 0x330   :  { %v3775_v35 = vadd.f32 %v3774_v2, %v7731_v55  ;;  %v7834_v39 = vpop.f32.mrf.mxu0  ;;  %v5937_v55 = vld [vmem:[%s7977_s3 + $0x48] sm:$0xf]  ;;  %v5940_v2 = vld [vmem:[%s7977_s3 + $0x60] sm:$0xf] }
 0x331   :  { %v2025_v63 = vsel %vm1184_vm0, %v5937_v55, 0 }
 0x332   :  { %v7832_v60 = vadd.f32 %v3775_v35, %v3116_v48  ;;  %v4646_v42 = vunpack.c.l.b16 %v2025_v63  ;;  %v2031_v48 = vsel %vm1184_vm0, %v5940_v2, 0  ;;  %v2588_v35 = vadd.f32 %v7600_v57, %v7598_v62 }
 0x333   :  { %v3023_v10 = vpop.f32.mrf.mxu3  ;;  %v4649_v7 = vunpack.c.l.b16 %v2031_v48 }
 0x334   :  { %4871 = vmatmul.bf16.gmra.mxu2 %v4657_v22  ;;  %v4658_v16 = vpack.c.b16 %v4647_v21, %v4646_v42  ;;  %v2618_v55 = vadd.f32 %v7749_v38, %v2588_v35 }
 0x337   :  { %v3777_v31 = vpop.f32.mrf.mxu2 }
 0x338   :  { %v3778_v61 = vadd.f32 %v3777_v31, %v7737_v30  ;;  %4344 = vmatmul.bf16.gmra.mxu3 %v5512_v6  ;;  %v3073_v30 = vadd.f32 %v7735_v15, %v3023_v10  ;;  %v3085_v20 = vpop.f32.mrf.mxu0  ;;  %v7859_v15 = vpop.f32.mrf.mxu1  ;;  %v2619_v31 = vadd.f32 %v7749_v38, %v7608_v58  ;;  %v5519_v58 = vld [vmem:[#allocation2 + $0x80] sm:$0xf] }
 0x33a   :  { %v7847_v50 = vadd.f32 %v3778_v61, %v3117_v40  ;;  %v3118_v44 = vadd.f32 %v3073_v30, %v2616_v52  ;;  %v5942_v52 = vld [vmem:[%s7977_s3 + $0x70] sm:$0xf] }
 0x33b   :  { %v3026_v4 = vpop.f32.mrf.mxu3 }
 0x33c   :  { %v3076_v28 = vadd.f32 %v7780_v59, %v3026_v4  ;;  %v5821_v4 = vld [vmem:[#allocation2 + $0x84] sm:$0xf0] }
 0x33e   :  { %v3119_v29 = vadd.f32 %v3076_v28, %v2617_v24  ;;  %v5520_v24 = vor.u32 %v5821_v4, %v5519_v58  ;;  %v5941_v28 = vld [vmem:[%s7977_s3 + $0x68] sm:$0xf] }
 0x33f   :  { %v3779_v51 = vpop.f32.mrf.mxu2 }
 0x340   :  { %v3780_v9 = vadd.f32 %v3779_v51, %v7753_v43  ;;  %v7862_v49 = vpop.f32.mrf.mxu0  ;;  %v5939_v43 = vld [vmem:[%s7977_s3 + $0x58] sm:$0xf]  ;;  %v7879_v6 = vpop.f32.mrf.mxu1  ;;  %v2593_v51 = vadd.f32 %v7667_v5, %v7665_v18 }
 0x341   :  { %v2029_v40 = vsel %vm1184_vm0, %v5939_v43, 0 }
 0x342   :  { %v7857_v27 = vadd.f32 %v3780_v9, %v3118_v44  ;;  %v4648_v56 = vunpack.c.l.b16 %v2029_v40 }
 0x343   :  { %v3028_v47 = vpop.f32.mrf.mxu3 }
 0x344   :  { %4876 = vmatmul.bf16.gmra.mxu2 %v4658_v16  ;;  %v4659_v57 = vpack.c.b16 %v4649_v7, %v4648_v56 }
 0x347   :  { %v3782_v17 = vpop.f32.mrf.mxu2 }
 0x348   :  { %v3783_v59 = vadd.f32 %v3782_v17, %v7800_v34  ;;  %4349 = vmatmul.bf16.gmra.mxu3 %v5516_v32  ;;  %v3078_v34 = vadd.f32 %v7803_v53, %v3028_v47  ;;  %v3090_v41 = vpop.f32.mrf.mxu0  ;;  %v7886_v42 = vpop.f32.mrf.mxu1  ;;  %v2620_v32 = vadd.f32 %v7749_v38, %v2593_v51 }
 0x34a   :  { %v7874_v22 = vadd.f32 %v3783_v59, %v3119_v29  ;;  %v3120_v37 = vadd.f32 %v3078_v34, %v2618_v55  ;;  %v2035_v29 = vsel %vm1184_vm0, %v5942_v52, 0  ;;  %v5822_v34 = vld [vmem:[#allocation2 + $0x94] sm:$0xf0] }
 0x34b   :  { %v3031_v10 = vpop.f32.mrf.mxu3  ;;  %v4651_v0 = vunpack.c.l.b16 %v2035_v29  ;;  %v2624_v29 = vadd.f32 %v7749_v38, %v7756_v54 }
 0x34c   :  { %v3081_v61 = vadd.f32 %v7822_v14, %v3031_v10 }
 0x34e   :  { %v3121_v63 = vadd.f32 %v3081_v61, %v2619_v31  ;;  %v5943_v31 = vld [vmem:[%s7977_s3 + $0x78] sm:$0xf]  ;;  %v5944_v61 = vld [vmem:[%s7977_s3 + $0x80] sm:$0xf] }
 0x34f   :  { %v3784_v26 = vpop.f32.mrf.mxu2  ;;  %v2039_v55 = vsel %vm1184_vm0, %v5944_v61, 0 }
 0x350   :  { %v3785_v62 = vadd.f32 %v3784_v26, %v7808_v45  ;;  %v2033_v45 = vsel %vm1184_vm0, %v5941_v28, 0  ;;  %v3092_v9 = vpop.f32.mrf.mxu0  ;;  %v3750_v59 = vpop.f32.mrf.mxu1 }
 0x351   :  { %v4650_v47 = vunpack.c.l.b16 %v2033_v45 }
 0x352   :  { %v7884_v53 = vadd.f32 %v3785_v62, %v3120_v37 }
 0x353   :  { %v3033_v30 = vpop.f32.mrf.mxu3  ;;  %v4660_v5 = vpack.c.b16 %v4651_v0, %v4650_v47 }
 0x354   :  { %4881 = vmatmul.bf16.gmra.mxu2 %v4659_v57  ;;  %v4653_v57 = vunpack.c.l.b16 %v2039_v55 }
 0x357   :  { %v3787_v21 = vpop.f32.mrf.mxu2 }
 0x358   :  { %v3788_v14 = vadd.f32 %v3787_v21, %v7830_v13  ;;  %4354 = vmatmul.bf16.gmra.mxu3 %v5520_v24  ;;  %v3083_v13 = vadd.f32 %v7834_v39, %v3033_v30  ;;  %v5523_v39 = vld [vmem:[#allocation2 + $0x90] sm:$0xf]  ;;  %v4374_v10 = vpop.f32.mrf.mxu0  ;;  %v2623_v30 = vadd.f32 %v7749_v38, %v7744_v36 }
 0x359   :  { %v5524_v7 = vor.u32 %v5822_v34, %v5523_v39 }
 0x35a   :  { %v7899_v44 = vadd.f32 %v3788_v14, %v3121_v63  ;;  %v3122_v2 = vadd.f32 %v3083_v13, %v2620_v32  ;;  %v2598_v63 = vadd.f32 %v7733_v11, %v7718_v12 }
 0x35b   :  { %v3036_v16 = vpop.f32.mrf.mxu3 }
 0x35c   :  { %v3086_v17 = vadd.f32 %v3085_v20, %v3036_v16  ;;  %v4808_v20 = vpop.f32.mrf.mxu1  ;;  %v2622_v58 = vadd.f32 %v7749_v38, %v2598_v63 }
 0x35e   :  { %v3123_v43 = vadd.f32 %v3086_v17, %v2621_v46 }
 0x35f   :  { %v3789_v40 = vpop.f32.mrf.mxu2 }
 0x360   :  { %v3790_v18 = vadd.f32 %v3789_v40, %v7849_v25  ;;  %v2037_v25 = vsel %vm1184_vm0, %v5943_v31, 0  ;;  %v4376_v21 = vpop.f32.mrf.mxu0 }
 0x361   :  { %v4652_v62 = vunpack.c.l.b16 %v2037_v25 }
 0x362   :  { %v7906_v48 = vadd.f32 %v3790_v18, %v3122_v2 }
 0x363   :  { %v3038_v35 = vpop.f32.mrf.mxu3  ;;  %v4661_v12 = vpack.c.b16 %v4653_v57, %v4652_v62 }
 0x364   :  { %4886 = vmatmul.bf16.gmra.mxu2 %v4660_v5  ;;  %v4810_v52 = vpop.f32.mrf.mxu1 }
 0x367   :  { %v3792_v56 = vpop.f32.mrf.mxu2 }
 0x368   :  { %v3793_v8 = vadd.f32 %v3792_v56, %v7859_v15  ;;  %4359 = vmatmul.bf16.gmra.mxu3 %v5524_v7  ;;  %v3088_v15 = vadd.f32 %v7862_v49, %v3038_v35  ;;  %v4379_v16 = vpop.f32.mrf.mxu0 }
 0x36a   :  { %v7919_v26 = vadd.f32 %v3793_v8, %v3123_v43  ;;  %v3124_v28 = vadd.f32 %v3088_v15, %v2622_v58 }
 0x36b   :  { %v3041_v37 = vpop.f32.mrf.mxu3 }
 0x36c   :  { %v3091_v4 = vadd.f32 %v3090_v41, %v3041_v37  ;;  %v4813_v46 = vpop.f32.mrf.mxu1 }
 0x36e   :  { %v3125_v24 = vadd.f32 %v3091_v4, %v2623_v30 }
 0x36f   :  { %v3794_v14 = vpop.f32.mrf.mxu2 }
 0x370   :  { %v3795_v45 = vadd.f32 %v3794_v14, %v7879_v6  ;;  %v4381_v43 = vpop.f32.mrf.mxu0 }
 0x372   :  { %v7926_v11 = vadd.f32 %v3795_v45, %v3124_v28 }
 0x373   :  { %v3043_v49 = vpop.f32.mrf.mxu3 }
 0x374   :  { %4891 = vmatmul.bf16.gmra.mxu2 %v4661_v12  ;;  %v3093_v51 = vadd.f32 %v3092_v9, %v3043_v49  ;;  %v4815_v2 = vpop.f32.mrf.mxu1 }
 0x376   :  { %v3126_v36 = vadd.f32 %v3093_v51, %v2624_v29 }
 0x377   :  { %v3797_v41 = vpop.f32.mrf.mxu2 }
 0x378   :  { %v3798_v13 = vadd.f32 %v3797_v41, %v7886_v42  ;;  %v4384_v35 = vpop.f32.mrf.mxu0 }
 0x37a   :  { %v7931_v47 = vadd.f32 %v3798_v13, %v3125_v24 }
 0x37b   :  { %v4325_v0 = vpop.f32.mrf.mxu3 }
 0x37c   :  { %v4375_v5 = vadd.f32 %v4374_v10, %v4325_v0  ;;  %v4818_v8 = vpop.f32.mrf.mxu1 }
 0x37e   :  { %v4430_v42 = vadd.f32 %v4375_v5, %v7770_v33 }
 0x37f   :  { %v3799_v6 = vpop.f32.mrf.mxu2 }
 0x380   :  { %v3800_v17 = vadd.f32 %v3799_v6, %v3750_v59  ;;  %v4386_v63 = vpop.f32.mrf.mxu0 }
 0x382   :  { %v7933_v32 = vadd.f32 %v3800_v17, %v3126_v36 }
 0x383   :  { %v4327_v40 = vpop.f32.mrf.mxu3 }
 0x384   :  { %v4377_v38 = vadd.f32 %v4376_v21, %v4327_v40 }
 0x386   :  { %v4431_v34 = vadd.f32 %v4377_v38, %v7778_v1 }
 0x387   :  { %v4857_v18 = vpop.f32.mrf.mxu2 }
 0x388   :  { %v4858_v54 = vadd.f32 %v4857_v18, %v4808_v20  ;;  %v4820_v20 = vpop.f32.mrf.mxu1  ;;  %v4389_v21 = vpop.f32.mrf.mxu0 }
 0x38a   :  { %v4913_v56 = vadd.f32 %v4858_v54, %v4430_v42 }
 0x38b   :  { %v4330_v9 = vpop.f32.mrf.mxu3 }
 0x38c   :  { %v4961_v31 = vmax.f32 %v4913_v56, 0.0  ;;  %v4380_v10 = vadd.f32 %v4379_v16, %v4330_v9 }
 0x38e   :  { %v4432_v1 = vadd.f32 %v4380_v10, %v7793_v19 }
 0x38f   :  { %v4859_v39 = vpop.f32.mrf.mxu2 }
 0x390   :  { %v4860_v7 = vadd.f32 %v4859_v39, %v4810_v52  ;;  %v4823_v12 = vpop.f32.mrf.mxu1  ;;  %v4391_v51 = vpop.f32.mrf.mxu0 }
 0x392   :  { %v4914_v59 = vadd.f32 %v4860_v7, %v4431_v34 }
 0x393   :  { %v4332_v61 = vpop.f32.mrf.mxu3 }
 0x394   :  { %v4962_v25 = vmax.f32 %v4914_v59, 0.0  ;;  %v4382_v33 = vadd.f32 %v4381_v43, %v4332_v61 }
 0x396   :  { %v5858_v55 = vpack.c.bf16 %v4962_v25, %v4961_v31  ;;  %v4433_v30 = vadd.f32 %v4382_v33, %v7805_v23 }
 0x397   :  { %v4862_v15 = vpop.f32.mrf.mxu2 }
 0x398   :  { %5859 = vst [vmem:[%s7983_s8] sm:$0xff] %v5858_v55   ;;  %v4863_v37 = vadd.f32 %v4862_v15, %v4813_v46  ;;  %v4825_v13 = vpop.f32.mrf.mxu1  ;;  %v4394_v18 = vpop.f32.mrf.mxu0 }
 0x39a   :  { %v4915_v4 = vadd.f32 %v4863_v37, %v4432_v1 }
 0x39b   :  { %v4335_v62 = vpop.f32.mrf.mxu3 }
 0x39c   :  { %v4963_v14 = vmax.f32 %v4915_v4, 0.0  ;;  %v4385_v29 = vadd.f32 %v4384_v35, %v4335_v62 }
 0x39e   :  { %v4434_v23 = vadd.f32 %v4385_v29, %v7820_v3 }
 0x39f   :  { %v4864_v57 = vpop.f32.mrf.mxu2 }
 0x3a0   :  { %v4865_v58 = vadd.f32 %v4864_v57, %v4815_v2  ;;  %v4828_v54 = vpop.f32.mrf.mxu1  ;;  %v4396_v39 = vpop.f32.mrf.mxu0 }
 0x3a2   :  { %v4916_v24 = vadd.f32 %v4865_v58, %v4433_v30 }
 0x3a3   :  { %v4337_v45 = vpop.f32.mrf.mxu3 }
 0x3a4   :  { %v4964_v28 = vmax.f32 %v4916_v24, 0.0  ;;  %v4387_v19 = vadd.f32 %v4386_v63, %v4337_v45 }
 0x3a6   :  { %v5863_v52 = vpack.c.bf16 %v4964_v28, %v4963_v14  ;;  %v4435_v0 = vadd.f32 %v4387_v19, %v7832_v60 }
 0x3a7   :  { %v4867_v49 = vpop.f32.mrf.mxu2 }
 0x3a8   :  { %5895 = vst [vmem:[%s7983_s8 + $0x8] sm:$0xff] %v5863_v52   ;;  %v4868_v36 = vadd.f32 %v4867_v49, %v4818_v8  ;;  %v4830_v31 = vpop.f32.mrf.mxu1  ;;  %v4399_v10 = vpop.f32.mrf.mxu0 }
 0x3aa   :  { %v4917_v46 = vadd.f32 %v4868_v36, %v4434_v23 }
 0x3ab   :  { %v4340_v41 = vpop.f32.mrf.mxu3 }
 0x3ac   :  { %v4965_v43 = vmax.f32 %v4917_v46, 0.0  ;;  %v4390_v9 = vadd.f32 %v4389_v21, %v4340_v41 }
 0x3ae   :  { %v4436_v60 = vadd.f32 %v4390_v9, %v7847_v50 }
 0x3af   :  { %v4869_v16 = vpop.f32.mrf.mxu2 }
 0x3b0   :  { %v4870_v6 = vadd.f32 %v4869_v16, %v4820_v20  ;;  %v4833_v62 = vpop.f32.mrf.mxu1  ;;  %v4401_v21 = vpop.f32.mrf.mxu0 }
 0x3b2   :  { %v4918_v17 = vadd.f32 %v4870_v6, %v4435_v0 }
 0x3b3   :  { %v4342_v2 = vpop.f32.mrf.mxu3 }
 0x3b4   :  { %v4966_v40 = vmax.f32 %v4918_v17, 0.0  ;;  %v4392_v3 = vadd.f32 %v4391_v51, %v4342_v2 }
 0x3b6   :  { %v5868_v5 = vpack.c.bf16 %v4966_v40, %v4965_v43  ;;  %v4437_v56 = vadd.f32 %v4392_v3, %v7857_v27 }
 0x3b7   :  { %v4872_v38 = vpop.f32.mrf.mxu2 }
 0x3b8   :  { %5896 = vst [vmem:[%s7983_s8 + $0x10] sm:$0xff] %v5868_v5   ;;  %v4873_v35 = vadd.f32 %v4872_v38, %v4823_v12  ;;  %v4835_v12 = vpop.f32.mrf.mxu1  ;;  %v4404_v19 = vpop.f32.mrf.mxu0 }
 0x3ba   :  { %v4919_v7 = vadd.f32 %v4873_v35, %v4436_v60 }
 0x3bb   :  { %v4345_v42 = vpop.f32.mrf.mxu3 }
 0x3bc   :  { %v4967_v25 = vmax.f32 %v4919_v7, 0.0  ;;  %v4395_v20 = vadd.f32 %v4394_v18, %v4345_v42 }
 0x3be   :  { %v4438_v27 = vadd.f32 %v4395_v20, %v7874_v22 }
 0x3bf   :  { %v4874_v34 = vpop.f32.mrf.mxu2 }
 0x3c0   :  { %v4875_v8 = vadd.f32 %v4874_v34, %v4825_v13  ;;  %v4838_v16 = vpop.f32.mrf.mxu1  ;;  %v4406_v40 = vpop.f32.mrf.mxu0 }
 0x3c2   :  { %v4920_v59 = vadd.f32 %v4875_v8, %v4437_v56 }
 0x3c3   :  { %v4347_v55 = vpop.f32.mrf.mxu3 }
 0x3c4   :  { %v4968_v61 = vmax.f32 %v4920_v59, 0.0  ;;  %v4397_v50 = vadd.f32 %v4396_v39, %v4347_v55 }
 0x3c6   :  { %v5873_v63 = vpack.c.bf16 %v4968_v61, %v4967_v25  ;;  %v4439_v57 = vadd.f32 %v4397_v50, %v7884_v53 }
 0x3c7   :  { %v4877_v15 = vpop.f32.mrf.mxu2 }
 0x3c8   :  { %5897 = vst [vmem:[%s7983_s8 + $0x18] sm:$0xff] %v5873_v63   ;;  %v4878_v33 = vadd.f32 %v4877_v15, %v4828_v54  ;;  %v4840_v5 = vpop.f32.mrf.mxu1  ;;  %v4409_v60 = vpop.f32.mrf.mxu0 }
 0x3ca   :  { %v4921_v30 = vadd.f32 %v4878_v33, %v4438_v27 }
 0x3cb   :  { %v4350_v37 = vpop.f32.mrf.mxu3 }
 0x3cc   :  { %v4969_v24 = vmax.f32 %v4921_v30, 0.0  ;;  %v4400_v49 = vadd.f32 %v4399_v10, %v4350_v37 }
 0x3ce   :  { %v4440_v53 = vadd.f32 %v4400_v49, %v7899_v44 }
 0x3cf   :  { %v4879_v1 = vpop.f32.mrf.mxu2 }
 0x3d0   :  { %v4880_v4 = vadd.f32 %v4879_v1, %v4830_v31  ;;  %v4843_v7 = vpop.f32.mrf.mxu1 }
 0x3d2   :  { %v4922_v58 = vadd.f32 %v4880_v4, %v4439_v57 }
 0x3d3   :  { %v4352_v28 = vpop.f32.mrf.mxu3 }
 0x3d4   :  { %v4970_v14 = vmax.f32 %v4922_v58, 0.0  ;;  %v4402_v29 = vadd.f32 %v4401_v21, %v4352_v28 }
 0x3d6   :  { %v5878_v45 = vpack.c.bf16 %v4970_v14, %v4969_v24  ;;  %v4441_v41 = vadd.f32 %v4402_v29, %v7906_v48 }
 0x3d7   :  { %v4882_v52 = vpop.f32.mrf.mxu2 }
 0x3d8   :  { %5898 = vst [vmem:[%s7983_s8 + $0x20] sm:$0xff] %v5878_v45   ;;  %v4883_v22 = vadd.f32 %v4882_v52, %v4833_v62  ;;  %v4845_v63 = vpop.f32.mrf.mxu1 }
 0x3da   :  { %v4923_v23 = vadd.f32 %v4883_v22, %v4440_v53 }
 0x3db   :  { %v4355_v51 = vpop.f32.mrf.mxu3 }
 0x3dc   :  { %v4971_v46 = vmax.f32 %v4923_v23, 0.0  ;;  %v4405_v18 = vadd.f32 %v4404_v19, %v4355_v51 }
 0x3de   :  { %v4442_v48 = vadd.f32 %v4405_v18, %v7919_v26  ;;  %v4411_v26 = vpop.f32.mrf.mxu0 }
 0x3df   :  { %v4884_v36 = vpop.f32.mrf.mxu2 }
 0x3e0   :  { %v4885_v13 = vadd.f32 %v4884_v36, %v4835_v12 }
 0x3e2   :  { %v4924_v0 = vadd.f32 %v4885_v13, %v4441_v41 }
 0x3e3   :  { %v4357_v17 = vpop.f32.mrf.mxu3 }
 0x3e4   :  { %v4972_v6 = vmax.f32 %v4924_v0, 0.0  ;;  %v4407_v44 = vadd.f32 %v4406_v40, %v4357_v17 }
 0x3e6   :  { %v5883_v43 = vpack.c.bf16 %v4972_v6, %v4971_v46  ;;  %v4443_v3 = vadd.f32 %v4407_v44, %v7926_v11 }
 0x3e7   :  { %v4887_v2 = vpop.f32.mrf.mxu2 }
 0x3e8   :  { %5899 = vst [vmem:[%s7983_s8 + $0x28] sm:$0xff] %v5883_v43   ;;  %v4888_v38 = vadd.f32 %v4887_v2, %v4838_v16 }
 0x3ea   :  { %v4925_v35 = vadd.f32 %v4888_v38, %v4442_v48 }
 0x3eb   :  { %v4360_v54 = vpop.f32.mrf.mxu3 }
 0x3ec   :  { %v4973_v34 = vmax.f32 %v4925_v35, 0.0  ;;  %v4410_v25 = vadd.f32 %v4409_v60, %v4360_v54 }
 0x3ee   :  { %v4444_v11 = vadd.f32 %v4410_v25, %v7931_v47 }
 0x3ef   :  { %v4889_v9 = vpop.f32.mrf.mxu2 }
 0x3f0   :  { %v4890_v42 = vadd.f32 %v4889_v9, %v4840_v5 }
 0x3f2   :  { %v4926_v39 = vadd.f32 %v4890_v42, %v4443_v3 }
 0x3f3   :  { %v4362_v31 = vpop.f32.mrf.mxu3 }
 0x3f4   :  { %v4974_v56 = vmax.f32 %v4926_v39, 0.0  ;;  %v4412_v61 = vadd.f32 %v4411_v26, %v4362_v31 }
 0x3f6   :  { %v5888_v8 = vpack.c.bf16 %v4974_v56, %v4973_v34  ;;  %v4445_v10 = vadd.f32 %v4412_v61, %v7933_v32 }
 0x3f7   :  { %v4892_v59 = vpop.f32.mrf.mxu2 }
 0x3f8   :  { %5900 = vst [vmem:[%s7983_s8 + $0x30] sm:$0xff] %v5888_v8   ;;  %v4893_v55 = vadd.f32 %v4892_v59, %v4843_v7 }
 0x3fa   :  { %v4927_v20 = vadd.f32 %v4893_v55, %v4444_v11 }
 0x3fc   :  { %v4975_v37 = vmax.f32 %v4927_v20, 0.0 }
 0x3ff   :  { %v4894_v15 = vpop.f32.mrf.mxu2 }
 0x400   :  { %v4895_v50 = vadd.f32 %v4894_v15, %v4845_v63 }
 0x402   :  { %v4928_v33 = vadd.f32 %v4895_v50, %v4445_v10 }
 0x404   :  { %v4976_v62 = vmax.f32 %v4928_v33, 0.0 }
 0x406   :  { %v5893_v27 = vpack.c.bf16 %v4976_v62, %v4975_v37 }
 0x408   :  { %5901 = vst [vmem:[%s7983_s8 + $0x38] sm:$0xff] %v5893_v27  }

</bundles_post_ra>
